<compile_context>
chip_gen: v6e
topology: v6e:2x2x1
jax: 0.10.0
libtpu: 0.0.40
codegen_flags: <defaults>
</compile_context>

<pallas_src>
import functools

import jax
import jax.numpy as jnp
from jax.experimental import pallas as pl
from jax.experimental.pallas import tpu as pltpu

LANE = 128


def _round_up(x, m):
    return ((x + m - 1) // m) * m


def _pick_tile_h(h, max_tile=32):
    for cand in range(min(h, max_tile), 0, -1):
        if h % cand == 0:
            return cand
    return h


def _double_conv_kernel(x_ref, halo_ref, w1_ref, s1_ref, b1_ref,
                        w2_ref, s2_ref, b2_ref, out_ref,
                        xwin_ref, a1win_ref, acc1_ref, acc2_ref):
    """Fused (conv3x3 -> BN -> ReLU) x 2 for one (tile_h, W) row-slab of one image.

    x_ref    : (1, tile_h, W, C1)   bf16  input rows of this tile
    halo_ref : (1, 4, W, C1)        bf16  2 rows above + 2 rows below the tile
                                          (zeros where outside the image)
    w1_ref   : (3, 3*C1, C2)        bf16  conv1 weight, row index = dx*C1 + c
    s1_ref   : (1, C2)              f32   BN1 scale  (gamma / sqrt(var+eps))
    b1_ref   : (1, C2)              f32   BN1 bias   (beta - mean*scale)
    w2_ref   : (3, 3*C2, C3)        bf16  conv2 weight
    s2_ref   : (1, C3)              f32
    b2_ref   : (1, C3)              f32
    out_ref  : (1, tile_h, W, C3)   f32
    xwin_ref : (tile_h+4, W+2, C1)  bf16  zero-padded input window   (scratch)
    a1win_ref: (tile_h+2, W+2, C2)  bf16  zero-padded act1 window    (scratch)
    acc1_ref : ((tile_h+2)*W, C2)   f32   conv1 accumulator          (scratch)
    acc2_ref : (tile_h*W, C3)       f32   conv2 accumulator          (scratch)
    """
    th = x_ref.shape[1]
    w = x_ref.shape[2]
    c1 = x_ref.shape[3]
    c2 = s1_ref.shape[1]
    c3 = s2_ref.shape[1]
    t = pl.program_id(1)
    n_t = pl.num_programs(1)

    # ---- assemble the zero-padded input window for conv1 --------------------
    xwin_ref[:, 0:1, :] = jnp.zeros((th + 4, 1, c1), xwin_ref.dtype)
    xwin_ref[:, w + 1:w + 2, :] = jnp.zeros((th + 4, 1, c1), xwin_ref.dtype)
    xwin_ref[0:2, 1:w + 1, :] = halo_ref[0, 0:2, :, :]
    xwin_ref[2:th + 2, 1:w + 1, :] = x_ref[0]
    xwin_ref[th + 2:th + 4, 1:w + 1, :] = halo_ref[0, 2:4, :, :]

    # ---- conv1: single W-shift im2col + 3 dy matmuls (bf16 MXU, f32 acc) ----
    xs = jnp.concatenate(
        [xwin_ref[:, 0:w, :], xwin_ref[:, 1:w + 1, :], xwin_ref[:, 2:w + 2, :]],
        axis=-1)                                        # (th+4, W, 3*C1)
    for dy in range(3):
        patch = xs[dy:dy + th + 2].reshape((th + 2) * w, 3 * c1)
        tap = jnp.dot(patch, w1_ref[dy], preferred_element_type=jnp.float32)
        if dy == 0:
            acc1_ref[...] = tap
        else:
            acc1_ref[...] += tap

    a1 = jnp.maximum(acc1_ref[...] * s1_ref[...] + b1_ref[...], 0.0)

    # ---- stage act1 into a zero-padded window for conv2 ---------------------
    a1win_ref[:, 0:1, :] = jnp.zeros((th + 2, 1, c2), a1win_ref.dtype)
    a1win_ref[:, w + 1:w + 2, :] = jnp.zeros((th + 2, 1, c2), a1win_ref.dtype)
    a1win_ref[:, 1:w + 1, :] = a1.reshape(th + 2, w, c2).astype(a1win_ref.dtype)

    # conv2 zero-pads act1 at the *image* boundary: the extra act row of the
    # first/last H-tile lies outside the image and must be zero, not conv1(pad).
    @pl.when(t == 0)
    def _():
        a1win_ref[0:1, :, :] = jnp.zeros((1, w + 2, c2), a1win_ref.dtype)

    @pl.when(t == n_t - 1)
    def _():
        a1win_ref[th + 1:th + 2, :, :] = jnp.zeros((1, w + 2, c2),
                                                   a1win_ref.dtype)

    # ---- conv2: same structure ----------------------------------------------
    a1s = jnp.concatenate(
        [a1win_ref[:, 0:w, :], a1win_ref[:, 1:w + 1, :],
         a1win_ref[:, 2:w + 2, :]],
        axis=-1)                                        # (th+2, W, 3*C2)
    for dy in range(3):
        patch = a1s[dy:dy + th].reshape(th * w, 3 * c2)
        tap = jnp.dot(patch, w2_ref[dy], preferred_element_type=jnp.float32)
        if dy == 0:
            acc2_ref[...] = tap
        else:
            acc2_ref[...] += tap

    y = jnp.maximum(acc2_ref[...] * s2_ref[...] + b2_ref[...], 0.0)
    out_ref[...] = y.reshape(1, th, w, c3).astype(out_ref.dtype)


def prepare_double_conv_params(params, eps=1e-5):
    """One-time parameter prep (hoisted out of the per-forward path).

    Folds BN running stats into per-channel scale/bias, converts conv weights
    OIHW -> HWIO, zero-pads channels to multiples of 128 and repacks to
    (3, 3*Cin_pad, Cout_pad) in the dx-major order used by the in-kernel im2col.
    """
    # TODO(synk): training-mode BatchNorm (batch statistics / running-stat
    # updates) is not implemented; this is eval-mode BN only.
    def fold_bn(gamma, beta, mean, var, c_pad):
        scale = (gamma / jnp.sqrt(var + eps)).astype(jnp.float32)
        bias = (beta - mean * scale).astype(jnp.float32)
        scale = jnp.pad(scale, (0, c_pad - scale.shape[0]))
        bias = jnp.pad(bias, (0, c_pad - bias.shape[0]))
        return scale.reshape(1, c_pad), bias.reshape(1, c_pad)

    def pack_w(w_oihw, ci_pad, co_pad):
        co, ci, kh, kw = w_oihw.shape
        w_hwio = jnp.transpose(w_oihw, (2, 3, 1, 0)).astype(jnp.float32)
        w_hwio = jnp.pad(w_hwio, ((0, 0), (0, 0),
                                  (0, ci_pad - ci), (0, co_pad - co)))
        return w_hwio.reshape(kh, kw * ci_pad, co_pad).astype(jnp.bfloat16)

    c_in = params["w1"].shape[1]
    c_mid = params["w1"].shape[0]
    c_out = params["w2"].shape[0]
    c1 = _round_up(c_in, LANE)
    c2 = _round_up(c_mid, LANE)
    c3 = _round_up(c_out, LANE)

    s1, b1 = fold_bn(params["gamma1"], params["beta1"], params["mean1"],
                     params["var1"], c2)
    s2, b2 = fold_bn(params["gamma2"], params["beta2"], params["mean2"],
                     params["var2"], c3)
    return {"w1": pack_w(params["w1"], c1, c2), "s1": s1, "b1": b1,
            "w2": pack_w(params["w2"], c2, c3), "s2": s2, "b2": b2}


@functools.partial(jax.jit, static_argnames=("out_channels", "tile_h"))
def double_conv(x_nchw, prep, *, out_channels, tile_h=None):
    """DoubleConv forward. Input/output are NCHW to match the PyTorch module."""
    n, c_in, h, w = x_nchw.shape
    c1 = prep["w1"].shape[1] // 3
    c2 = prep["w2"].shape[1] // 3
    c3 = prep["w2"].shape[2]

    if tile_h is None:
        tile_h = _pick_tile_h(h)
    assert h % tile_h == 0, "H must be divisible by tile_h"
    n_t = h // tile_h

    # NCHW -> NHWC, bf16 MXU inputs, channels zero-padded to a lane multiple.
    x = jnp.transpose(x_nchw, (0, 2, 3, 1)).astype(jnp.bfloat16)
    x = jnp.pad(x, ((0, 0), (0, 0), (0, 0), (0, c1 - c_in)))

    # Halo rows: 2 above + 2 below each H tile (zeros outside the image).
    # Replaces a full materialized jnp.pad of the input; only 4/tile_h extra rows.
    starts = jnp.arange(n_t) * tile_h
    idx = jnp.stack([starts - 2, starts - 1,
                     starts + tile_h, starts + tile_h + 1], axis=1)   # (n_t, 4)
    valid = (idx >= 0) & (idx < h)
    gathered = x[:, jnp.clip(idx, 0, h - 1).reshape(-1), :, :]
    gathered = gathered.reshape(n, n_t, 4, w, c1)
    halo = jnp.where(valid[None, :, :, None, None], gathered,
                     jnp.zeros((), x.dtype))
    halo = halo.reshape(n * n_t, 4, w, c1)

    grid_spec = pltpu.PrefetchScalarGridSpec(
        num_scalar_prefetch=0,
        grid=(n, n_t),
        in_specs=[
            pl.BlockSpec((1, tile_h, w, c1), lambda i, t: (i, t, 0, 0)),
            pl.BlockSpec((1, 4, w, c1), lambda i, t: (i * n_t + t, 0, 0, 0)),
            pl.BlockSpec((3, 3 * c1, c2), lambda i, t: (0, 0, 0)),
            pl.BlockSpec((1, c2), lambda i, t: (0, 0)),
            pl.BlockSpec((1, c2), lambda i, t: (0, 0)),
            pl.BlockSpec((3, 3 * c2, c3), lambda i, t: (0, 0, 0)),
            pl.BlockSpec((1, c3), lambda i, t: (0, 0)),
            pl.BlockSpec((1, c3), lambda i, t: (0, 0)),
        ],
        out_specs=pl.BlockSpec((1, tile_h, w, c3), lambda i, t: (i, t, 0, 0)),
        scratch_shapes=[
            pltpu.VMEM((tile_h + 4, w + 2, c1), jnp.bfloat16),
            pltpu.VMEM((tile_h + 2, w + 2, c2), jnp.bfloat16),
            pltpu.VMEM(((tile_h + 2) * w, c2), jnp.float32),
            pltpu.VMEM((tile_h * w, c3), jnp.float32),
        ],
    )
    out = pl.pallas_call(
        _double_conv_kernel,
        out_shape=jax.ShapeDtypeStruct((n, h, w, c3), jnp.float32),
        grid_spec=grid_spec,
        compiler_params=pltpu.CompilerParams(
            dimension_semantics=("parallel", "parallel"),
            vmem_limit_bytes=32 * 1024 * 1024),
    )(x, halo, prep["w1"], prep["s1"], prep["b1"],
      prep["w2"], prep["s2"], prep["b2"])

    # NHWC -> NCHW, drop the lane padding.
    return jnp.transpose(out[..., :out_channels], (0, 3, 1, 2))


def _reference_double_conv(x_nchw, params, eps=1e-5):
    """Pure-JAX f32 reference (lax conv) for correctness checking."""
    def step(x, w, g, b, m, v):
        y = jax.lax.conv_general_dilated(
            x, w, window_strides=(1, 1), padding=((1, 1), (1, 1)),
            dimension_numbers=("NCHW", "OIHW", "NCHW"))
        scale = g / jnp.sqrt(v + eps)
        y = y * scale[None, :, None, None] + (b - m * scale)[None, :, None, None]
        return jnp.maximum(y, 0.0)

    x = step(x_nchw, params["w1"], params["gamma1"], params["beta1"],
             params["mean1"], params["var1"])
    x = step(x, params["w2"], params["gamma2"], params["beta2"],
             params["mean2"], params["var2"])
    return x


def make_params(key, in_channels, out_channels, mid_channels=None):
    if not mid_channels:
        mid_channels = out_channels
    ks = jax.random.split(key, 8)
    return {
        "w1": 0.1 * jax.random.normal(ks[0], (mid_channels, in_channels, 3, 3),
                                      jnp.float32),
        "gamma1": 1.0 + 0.1 * jax.random.normal(ks[1], (mid_channels,),
                                                jnp.float32),
        "beta1": 0.1 * jax.random.normal(ks[2], (mid_channels,), jnp.float32),
        "mean1": 0.1 * jax.random.normal(ks[3], (mid_channels,), jnp.float32),
        "var1": jnp.abs(jax.random.normal(ks[4], (mid_channels,),
                                          jnp.float32)) + 0.5,
        "w2": 0.1 * jax.random.normal(ks[5], (out_channels, mid_channels, 3, 3),
                                      jnp.float32),
        "gamma2": 1.0 + 0.1 * jax.random.normal(ks[6], (out_channels,),
                                                jnp.float32),
        "beta2": 0.1 * jax.random.normal(ks[7], (out_channels,), jnp.float32),
        "mean2": jnp.zeros((out_channels,), jnp.float32),
        "var2": jnp.ones((out_channels,), jnp.float32),
    }


if __name__ == "__main__":
    key = jax.random.PRNGKey(0)
    kx, kp = jax.random.split(key)

    in_channels, out_channels = 4, 8
    x = jax.random.normal(kx, (2, in_channels, 16, 16), jnp.float32)  # NCHW
    params = make_params(kp, in_channels, out_channels)
    prep = prepare_double_conv_params(params)

    # tile_h=8 -> grid (2 batches, 2 row-tiles): exercises the halo logic.
    out = jax.block_until_ready(
        double_conv(x, prep, out_channels=out_channels, tile_h=8))
    ref = jax.block_until_ready(_reference_double_conv(x, params))

    assert out.shape == (2, out_channels, 16, 16), out.shape
    # bf16 MXU inputs with f32 accumulation -> relaxed tolerance vs f32 reference.
    assert jnp.allclose(out, ref, atol=5e-2, rtol=5e-2), (
        float(jnp.max(jnp.abs(out - ref))))
    print("KERNEL_OK")
</pallas_src>

<mosaic_0001>
module attributes {stable_mosaic.version = 11 : i64} {
  func.func @_double_conv_kernel(%arg0: i32, %arg1: i32, %arg2: memref<1x8x16x128xbf16, #tpu.memory_space<vmem>>, %arg3: memref<1x4x16x128xbf16, #tpu.memory_space<vmem>>, %arg4: memref<3x384x128xbf16, #tpu.memory_space<vmem>>, %arg5: memref<1x128xf32, #tpu.memory_space<vmem>>, %arg6: memref<1x128xf32, #tpu.memory_space<vmem>>, %arg7: memref<3x384x128xbf16, #tpu.memory_space<vmem>>, %arg8: memref<1x128xf32, #tpu.memory_space<vmem>>, %arg9: memref<1x128xf32, #tpu.memory_space<vmem>>, %arg10: memref<1x8x16x128xf32, #tpu.memory_space<vmem>>, %arg11: memref<12x18x128xbf16, #tpu.memory_space<vmem>>, %arg12: memref<10x18x128xbf16, #tpu.memory_space<vmem>>, %arg13: memref<160x128xf32, #tpu.memory_space<vmem>>, %arg14: memref<128x128xf32, #tpu.memory_space<vmem>>) attributes {dimension_semantics = [#tpu.dimension_semantics<parallel>, #tpu.dimension_semantics<parallel>], iteration_bounds = array<i64: 2, 2>, scalar_prefetch = 0 : i64, scratch_operands = 4 : i64, tpu.core_type = #tpu.core_type<tc>, window_params = [{transform_indices = @transform_0, window_bounds = array<i64: 1, 8, 16, 128>}, {transform_indices = @transform_1, window_bounds = array<i64: 1, 4, 16, 128>}, {pipeline_mode = #tpu.pipeline_mode<synchronous>, transform_indices = @transform_2, window_bounds = array<i64: 3, 384, 128>}, {pipeline_mode = #tpu.pipeline_mode<synchronous>, transform_indices = @transform_3, window_bounds = array<i64: 1, 128>}, {pipeline_mode = #tpu.pipeline_mode<synchronous>, transform_indices = @transform_4, window_bounds = array<i64: 1, 128>}, {pipeline_mode = #tpu.pipeline_mode<synchronous>, transform_indices = @transform_5, window_bounds = array<i64: 3, 384, 128>}, {pipeline_mode = #tpu.pipeline_mode<synchronous>, transform_indices = @transform_6, window_bounds = array<i64: 1, 128>}, {pipeline_mode = #tpu.pipeline_mode<synchronous>, transform_indices = @transform_7, window_bounds = array<i64: 1, 128>}, {transform_indices = @transform_8, window_bounds = array<i64: 1, 8, 16, 128>}]} {
    %cst = arith.constant 0.000000e+00 : bf16
    %0 = vector.broadcast %cst : bf16 to vector<12x1x128xbf16>
    %c0 = arith.constant 0 : index
    %c0_0 = arith.constant 0 : index
    %c0_1 = arith.constant 0 : index
    %1 = vector.load %arg11[%c0, %c0_0, %c0_1] : memref<12x18x128xbf16, #tpu.memory_space<vmem>>, vector<12x1x128xbf16>
    tpu.vector_store %arg11[%c0, %c0_0, %c0_1], %0 {strides = array<i32>} : memref<12x18x128xbf16, #tpu.memory_space<vmem>>, vector<12x1x128xbf16>,
    %cst_2 = arith.constant 0.000000e+00 : bf16
    %2 = vector.broadcast %cst_2 : bf16 to vector<12x1x128xbf16>
    %c0_3 = arith.constant 0 : index
    %c17 = arith.constant 17 : index
    %c0_4 = arith.constant 0 : index
    %3 = vector.load %arg11[%c0_3, %c17, %c0_4] : memref<12x18x128xbf16, #tpu.memory_space<vmem>>, vector<12x1x128xbf16>
    tpu.vector_store %arg11[%c0_3, %c17, %c0_4], %2 {strides = array<i32>} : memref<12x18x128xbf16, #tpu.memory_space<vmem>>, vector<12x1x128xbf16>,
    %c0_5 = arith.constant 0 : index
    %c0_6 = arith.constant 0 : index
    %c0_7 = arith.constant 0 : index
    %c0_8 = arith.constant 0 : index
    %4 = vector.load %arg3[%c0_5, %c0_6, %c0_7, %c0_8] : memref<1x4x16x128xbf16, #tpu.memory_space<vmem>>, vector<1x2x16x128xbf16>
    %5 = vector.shape_cast %4 : vector<1x2x16x128xbf16> to vector<2x16x128xbf16>
    %c0_9 = arith.constant 0 : index
    %c1 = arith.constant 1 : index
    %c0_10 = arith.constant 0 : index
    %6 = vector.load %arg11[%c0_9, %c1, %c0_10] : memref<12x18x128xbf16, #tpu.memory_space<vmem>>, vector<2x16x128xbf16>
    tpu.vector_store %arg11[%c0_9, %c1, %c0_10], %5 {strides = array<i32>} : memref<12x18x128xbf16, #tpu.memory_space<vmem>>, vector<2x16x128xbf16>,
    %c0_11 = arith.constant 0 : index
    %c0_12 = arith.constant 0 : index
    %c0_13 = arith.constant 0 : index
    %c0_14 = arith.constant 0 : index
    %7 = vector.load %arg2[%c0_11, %c0_12, %c0_13, %c0_14] : memref<1x8x16x128xbf16, #tpu.memory_space<vmem>>, vector<1x8x16x128xbf16>
    %8 = vector.shape_cast %7 : vector<1x8x16x128xbf16> to vector<8x16x128xbf16>
    %c2 = arith.constant 2 : index
    %c1_15 = arith.constant 1 : index
    %c0_16 = arith.constant 0 : index
    %9 = vector.load %arg11[%c2, %c1_15, %c0_16] : memref<12x18x128xbf16, #tpu.memory_space<vmem>>, vector<8x16x128xbf16>
    tpu.vector_store %arg11[%c2, %c1_15, %c0_16], %8 {strides = array<i32>} : memref<12x18x128xbf16, #tpu.memory_space<vmem>>, vector<8x16x128xbf16>,
    %c0_17 = arith.constant 0 : index
    %c2_18 = arith.constant 2 : index
    %c0_19 = arith.constant 0 : index
    %c0_20 = arith.constant 0 : index
    %10 = vector.load %arg3[%c0_17, %c2_18, %c0_19, %c0_20] : memref<1x4x16x128xbf16, #tpu.memory_space<vmem>>, vector<1x2x16x128xbf16>
    %11 = vector.shape_cast %10 : vector<1x2x16x128xbf16> to vector<2x16x128xbf16>
    %c10 = arith.constant 10 : index
    %c1_21 = arith.constant 1 : index
    %c0_22 = arith.constant 0 : index
    %12 = vector.load %arg11[%c10, %c1_21, %c0_22] : memref<12x18x128xbf16, #tpu.memory_space<vmem>>, vector<2x16x128xbf16>
    tpu.vector_store %arg11[%c10, %c1_21, %c0_22], %11 {strides = array<i32>} : memref<12x18x128xbf16, #tpu.memory_space<vmem>>, vector<2x16x128xbf16>,
    %c0_23 = arith.constant 0 : index
    %c0_24 = arith.constant 0 : index
    %c0_25 = arith.constant 0 : index
    %13 = vector.load %arg11[%c0_23, %c0_24, %c0_25] : memref<12x18x128xbf16, #tpu.memory_space<vmem>>, vector<12x16x128xbf16>
    %c0_26 = arith.constant 0 : index
    %c1_27 = arith.constant 1 : index
    %c0_28 = arith.constant 0 : index
    %14 = vector.load %arg11[%c0_26, %c1_27, %c0_28] : memref<12x18x128xbf16, #tpu.memory_space<vmem>>, vector<12x16x128xbf16>
    %c0_29 = arith.constant 0 : index
    %c2_30 = arith.constant 2 : index
    %c0_31 = arith.constant 0 : index
    %15 = vector.load %arg11[%c0_29, %c2_30, %c0_31] : memref<12x18x128xbf16, #tpu.memory_space<vmem>>, vector<12x16x128xbf16>
    %16 = tpu.concatenate %13, %14, %15 in 2 : vector<12x16x128xbf16>, vector<12x16x128xbf16>, vector<12x16x128xbf16> -> vector<12x16x384xbf16>
    %17 = vector.extract_strided_slice %16 {offsets = [0, 0, 0], sizes = [10, 16, 384], strides = [1, 1, 1]} : vector<12x16x384xbf16> to vector<10x16x384xbf16>
    %18 = vector.shape_cast %17 : vector<10x16x384xbf16> to vector<160x384xbf16>
    %c0_32 = arith.constant 0 : index
    %c0_33 = arith.constant 0 : index
    %c0_34 = arith.constant 0 : index
    %19 = vector.load %arg4[%c0_32, %c0_33, %c0_34] : memref<3x384x128xbf16, #tpu.memory_space<vmem>>, vector<1x384x128xbf16>
    %20 = vector.shape_cast %19 : vector<1x384x128xbf16> to vector<384x128xbf16>
    %cst_35 = arith.constant dense<0.000000e+00> : vector<160x128xf32>
    %21 = tpu.matmul %18, %20, %cst_35 {dimension_numbers = #tpu.dot_dimension_numbers<[1], [0], [0], [1], [0, 0, 1, 1], [], []>} : vector<160x384xbf16>, vector<384x128xbf16>, vector<160x128xf32> -> vector<160x128xf32>
    %c0_36 = arith.constant 0 : index
    %c0_37 = arith.constant 0 : index
    %22 = vector.load %arg13[%c0_36, %c0_37] : memref<160x128xf32, #tpu.memory_space<vmem>>, vector<160x128xf32>
    tpu.vector_store %arg13[%c0_36, %c0_37], %21 {strides = array<i32>} : memref<160x128xf32, #tpu.memory_space<vmem>>, vector<160x128xf32>,
    %23 = vector.extract_strided_slice %16 {offsets = [1, 0, 0], sizes = [10, 16, 384], strides = [1, 1, 1]} : vector<12x16x384xbf16> to vector<10x16x384xbf16>
    %24 = vector.shape_cast %23 : vector<10x16x384xbf16> to vector<160x384xbf16>
    %c1_38 = arith.constant 1 : index
    %c0_39 = arith.constant 0 : index
    %c0_40 = arith.constant 0 : index
    %25 = vector.load %arg4[%c1_38, %c0_39, %c0_40] : memref<3x384x128xbf16, #tpu.memory_space<vmem>>, vector<1x384x128xbf16>
    %26 = vector.shape_cast %25 : vector<1x384x128xbf16> to vector<384x128xbf16>
    %cst_41 = arith.constant dense<0.000000e+00> : vector<160x128xf32>
    %27 = tpu.matmul %24, %26, %cst_41 {dimension_numbers = #tpu.dot_dimension_numbers<[1], [0], [0], [1], [0, 0, 1, 1], [], []>} : vector<160x384xbf16>, vector<384x128xbf16>, vector<160x128xf32> -> vector<160x128xf32>
    %c0_42 = arith.constant 0 : index
    %c0_43 = arith.constant 0 : index
    %28 = vector.load %arg13[%c0_42, %c0_43] : memref<160x128xf32, #tpu.memory_space<vmem>>, vector<160x128xf32>
    %29 = arith.addf %28, %27 : vector<160x128xf32>
    %c0_44 = arith.constant 0 : index
    %c0_45 = arith.constant 0 : index
    %30 = vector.load %arg13[%c0_44, %c0_45] : memref<160x128xf32, #tpu.memory_space<vmem>>, vector<160x128xf32>
    tpu.vector_store %arg13[%c0_44, %c0_45], %29 {strides = array<i32>} : memref<160x128xf32, #tpu.memory_space<vmem>>, vector<160x128xf32>,
    %31 = vector.extract_strided_slice %16 {offsets = [2, 0, 0], sizes = [10, 16, 384], strides = [1, 1, 1]} : vector<12x16x384xbf16> to vector<10x16x384xbf16>
    %32 = vector.shape_cast %31 : vector<10x16x384xbf16> to vector<160x384xbf16>
    %c2_46 = arith.constant 2 : index
    %c0_47 = arith.constant 0 : index
    %c0_48 = arith.constant 0 : index
    %33 = vector.load %arg4[%c2_46, %c0_47, %c0_48] : memref<3x384x128xbf16, #tpu.memory_space<vmem>>, vector<1x384x128xbf16>
    %34 = vector.shape_cast %33 : vector<1x384x128xbf16> to vector<384x128xbf16>
    %cst_49 = arith.constant dense<0.000000e+00> : vector<160x128xf32>
    %35 = tpu.matmul %32, %34, %cst_49 {dimension_numbers = #tpu.dot_dimension_numbers<[1], [0], [0], [1], [0, 0, 1, 1], [], []>} : vector<160x384xbf16>, vector<384x128xbf16>, vector<160x128xf32> -> vector<160x128xf32>
    %c0_50 = arith.constant 0 : index
    %c0_51 = arith.constant 0 : index
    %36 = vector.load %arg13[%c0_50, %c0_51] : memref<160x128xf32, #tpu.memory_space<vmem>>, vector<160x128xf32>
    %37 = arith.addf %36, %35 : vector<160x128xf32>
    %c0_52 = arith.constant 0 : index
    %c0_53 = arith.constant 0 : index
    %38 = vector.load %arg13[%c0_52, %c0_53] : memref<160x128xf32, #tpu.memory_space<vmem>>, vector<160x128xf32>
    tpu.vector_store %arg13[%c0_52, %c0_53], %37 {strides = array<i32>} : memref<160x128xf32, #tpu.memory_space<vmem>>, vector<160x128xf32>,
    %c0_54 = arith.constant 0 : index
    %c0_55 = arith.constant 0 : index
    %39 = vector.load %arg13[%c0_54, %c0_55] : memref<160x128xf32, #tpu.memory_space<vmem>>, vector<160x128xf32>
    %c0_56 = arith.constant 0 : index
    %c0_57 = arith.constant 0 : index
    %40 = vector.load %arg5[%c0_56, %c0_57] : memref<1x128xf32, #tpu.memory_space<vmem>>, vector<1x128xf32>
    %41 = vector.broadcast %40 : vector<1x128xf32> to vector<160x128xf32>
    %42 = arith.mulf %39, %41 : vector<160x128xf32>
    %c0_58 = arith.constant 0 : index
    %c0_59 = arith.constant 0 : index
    %43 = vector.load %arg6[%c0_58, %c0_59] : memref<1x128xf32, #tpu.memory_space<vmem>>, vector<1x128xf32>
    %44 = vector.broadcast %43 : vector<1x128xf32> to vector<160x128xf32>
    %45 = arith.addf %42, %44 : vector<160x128xf32>
    %cst_60 = arith.constant 0.000000e+00 : f32
    %46 = vector.broadcast %cst_60 : f32 to vector<160x128xf32>
    %47 = arith.maximumf %45, %46 : vector<160x128xf32>
    %cst_61 = arith.constant 0.000000e+00 : bf16
    %48 = vector.broadcast %cst_61 : bf16 to vector<10x1x128xbf16>
    %c0_62 = arith.constant 0 : index
    %c0_63 = arith.constant 0 : index
    %c0_64 = arith.constant 0 : index
    %49 = vector.load %arg12[%c0_62, %c0_63, %c0_64] : memref<10x18x128xbf16, #tpu.memory_space<vmem>>, vector<10x1x128xbf16>
    tpu.vector_store %arg12[%c0_62, %c0_63, %c0_64], %48 {strides = array<i32>} : memref<10x18x128xbf16, #tpu.memory_space<vmem>>, vector<10x1x128xbf16>,
    %cst_65 = arith.constant 0.000000e+00 : bf16
    %50 = vector.broadcast %cst_65 : bf16 to vector<10x1x128xbf16>
    %c0_66 = arith.constant 0 : index
    %c17_67 = arith.constant 17 : index
    %c0_68 = arith.constant 0 : index
    %51 = vector.load %arg12[%c0_66, %c17_67, %c0_68] : memref<10x18x128xbf16, #tpu.memory_space<vmem>>, vector<10x1x128xbf16>
    tpu.vector_store %arg12[%c0_66, %c17_67, %c0_68], %50 {strides = array<i32>} : memref<10x18x128xbf16, #tpu.memory_space<vmem>>, vector<10x1x128xbf16>,
    %52 = vector.shape_cast %47 : vector<160x128xf32> to vector<10x16x128xf32>
    %53 = arith.truncf %52 : vector<10x16x128xf32> to vector<10x16x128xbf16>
    %c0_69 = arith.constant 0 : index
    %c1_70 = arith.constant 1 : index
    %c0_71 = arith.constant 0 : index
    %54 = vector.load %arg12[%c0_69, %c1_70, %c0_71] : memref<10x18x128xbf16, #tpu.memory_space<vmem>>, vector<10x16x128xbf16>
    tpu.vector_store %arg12[%c0_69, %c1_70, %c0_71], %53 {strides = array<i32>} : memref<10x18x128xbf16, #tpu.memory_space<vmem>>, vector<10x16x128xbf16>,
    %c0_i32 = arith.constant 0 : i32
    %55 = arith.cmpi eq, %arg1, %c0_i32 : i32
    %56 = arith.extui %55 : i1 to i32
    %c0_i32_72 = arith.constant 0 : i32
    %57 = arith.cmpi ne, %56, %c0_i32_72 : i32
    scf.if %57 {
      %cst_116 = arith.constant 0.000000e+00 : bf16
      %98 = vector.broadcast %cst_116 : bf16 to vector<1x18x128xbf16>
      %c0_117 = arith.constant 0 : index
      %c0_118 = arith.constant 0 : index
      %c0_119 = arith.constant 0 : index
      %99 = vector.load %arg12[%c0_117, %c0_118, %c0_119] : memref<10x18x128xbf16, #tpu.memory_space<vmem>>, vector<1x18x128xbf16>
      tpu.vector_store %arg12[%c0_117, %c0_118, %c0_119], %98 {strides = array<i32>} : memref<10x18x128xbf16, #tpu.memory_space<vmem>>, vector<1x18x128xbf16>,
    } else {
    }
    %c1_i32 = arith.constant 1 : i32
    %58 = arith.cmpi eq, %arg1, %c1_i32 : i32
    %59 = arith.extui %58 : i1 to i32
    %c0_i32_73 = arith.constant 0 : i32
    %60 = arith.cmpi ne, %59, %c0_i32_73 : i32
    scf.if %60 {
      %cst_116 = arith.constant 0.000000e+00 : bf16
      %98 = vector.broadcast %cst_116 : bf16 to vector<1x18x128xbf16>
      %c9 = arith.constant 9 : index
      %c0_117 = arith.constant 0 : index
      %c0_118 = arith.constant 0 : index
      %99 = vector.load %arg12[%c9, %c0_117, %c0_118] : memref<10x18x128xbf16, #tpu.memory_space<vmem>>, vector<1x18x128xbf16>
      tpu.vector_store %arg12[%c9, %c0_117, %c0_118], %98 {strides = array<i32>} : memref<10x18x128xbf16, #tpu.memory_space<vmem>>, vector<1x18x128xbf16>,
    } else {
    }
    %c0_74 = arith.constant 0 : index
    %c0_75 = arith.constant 0 : index
    %c0_76 = arith.constant 0 : index
    %61 = vector.load %arg12[%c0_74, %c0_75, %c0_76] : memref<10x18x128xbf16, #tpu.memory_space<vmem>>, vector<10x16x128xbf16>
    %c0_77 = arith.constant 0 : index
    %c1_78 = arith.constant 1 : index
    %c0_79 = arith.constant 0 : index
    %62 = vector.load %arg12[%c0_77, %c1_78, %c0_79] : memref<10x18x128xbf16, #tpu.memory_space<vmem>>, vector<10x16x128xbf16>
    %c0_80 = arith.constant 0 : index
    %c2_81 = arith.constant 2 : index
    %c0_82 = arith.constant 0 : index
    %63 = vector.load %arg12[%c0_80, %c2_81, %c0_82] : memref<10x18x128xbf16, #tpu.memory_space<vmem>>, vector<10x16x128xbf16>
    %64 = tpu.concatenate %61, %62, %63 in 2 : vector<10x16x128xbf16>, vector<10x16x128xbf16>, vector<10x16x128xbf16> -> vector<10x16x384xbf16>
    %65 = vector.extract_strided_slice %64 {offsets = [0, 0, 0], sizes = [8, 16, 384], strides = [1, 1, 1]} : vector<10x16x384xbf16> to vector<8x16x384xbf16>
    %66 = vector.shape_cast %65 : vector<8x16x384xbf16> to vector<128x384xbf16>
    %c0_83 = arith.constant 0 : index
    %c0_84 = arith.constant 0 : index
    %c0_85 = arith.constant 0 : index
    %67 = vector.load %arg7[%c0_83, %c0_84, %c0_85] : memref<3x384x128xbf16, #tpu.memory_space<vmem>>, vector<1x384x128xbf16>
    %68 = vector.shape_cast %67 : vector<1x384x128xbf16> to vector<384x128xbf16>
    %cst_86 = arith.constant dense<0.000000e+00> : vector<128x128xf32>
    %69 = tpu.matmul %66, %68, %cst_86 {dimension_numbers = #tpu.dot_dimension_numbers<[1], [0], [0], [1], [0, 0, 1, 1], [], []>} : vector<128x384xbf16>, vector<384x128xbf16>, vector<128x128xf32> -> vector<128x128xf32>
    %c0_87 = arith.constant 0 : index
    %c0_88 = arith.constant 0 : index
    %70 = vector.load %arg14[%c0_87, %c0_88] : memref<128x128xf32, #tpu.memory_space<vmem>>, vector<128x128xf32>
    tpu.vector_store %arg14[%c0_87, %c0_88], %69 {strides = array<i32>} : memref<128x128xf32, #tpu.memory_space<vmem>>, vector<128x128xf32>,
    %71 = vector.extract_strided_slice %64 {offsets = [1, 0, 0], sizes = [8, 16, 384], strides = [1, 1, 1]} : vector<10x16x384xbf16> to vector<8x16x384xbf16>
    %72 = vector.shape_cast %71 : vector<8x16x384xbf16> to vector<128x384xbf16>
    %c1_89 = arith.constant 1 : index
    %c0_90 = arith.constant 0 : index
    %c0_91 = arith.constant 0 : index
    %73 = vector.load %arg7[%c1_89, %c0_90, %c0_91] : memref<3x384x128xbf16, #tpu.memory_space<vmem>>, vector<1x384x128xbf16>
    %74 = vector.shape_cast %73 : vector<1x384x128xbf16> to vector<384x128xbf16>
    %cst_92 = arith.constant dense<0.000000e+00> : vector<128x128xf32>
    %75 = tpu.matmul %72, %74, %cst_92 {dimension_numbers = #tpu.dot_dimension_numbers<[1], [0], [0], [1], [0, 0, 1, 1], [], []>} : vector<128x384xbf16>, vector<384x128xbf16>, vector<128x128xf32> -> vector<128x128xf32>
    %c0_93 = arith.constant 0 : index
    %c0_94 = arith.constant 0 : index
    %76 = vector.load %arg14[%c0_93, %c0_94] : memref<128x128xf32, #tpu.memory_space<vmem>>, vector<128x128xf32>
    %77 = arith.addf %76, %75 : vector<128x128xf32>
    %c0_95 = arith.constant 0 : index
    %c0_96 = arith.constant 0 : index
    %78 = vector.load %arg14[%c0_95, %c0_96] : memref<128x128xf32, #tpu.memory_space<vmem>>, vector<128x128xf32>
    tpu.vector_store %arg14[%c0_95, %c0_96], %77 {strides = array<i32>} : memref<128x128xf32, #tpu.memory_space<vmem>>, vector<128x128xf32>,
    %79 = vector.extract_strided_slice %64 {offsets = [2, 0, 0], sizes = [8, 16, 384], strides = [1, 1, 1]} : vector<10x16x384xbf16> to vector<8x16x384xbf16>
    %80 = vector.shape_cast %79 : vector<8x16x384xbf16> to vector<128x384xbf16>
    %c2_97 = arith.constant 2 : index
    %c0_98 = arith.constant 0 : index
    %c0_99 = arith.constant 0 : index
    %81 = vector.load %arg7[%c2_97, %c0_98, %c0_99] : memref<3x384x128xbf16, #tpu.memory_space<vmem>>, vector<1x384x128xbf16>
    %82 = vector.shape_cast %81 : vector<1x384x128xbf16> to vector<384x128xbf16>
    %cst_100 = arith.constant dense<0.000000e+00> : vector<128x128xf32>
    %83 = tpu.matmul %80, %82, %cst_100 {dimension_numbers = #tpu.dot_dimension_numbers<[1], [0], [0], [1], [0, 0, 1, 1], [], []>} : vector<128x384xbf16>, vector<384x128xbf16>, vector<128x128xf32> -> vector<128x128xf32>
    %c0_101 = arith.constant 0 : index
    %c0_102 = arith.constant 0 : index
    %84 = vector.load %arg14[%c0_101, %c0_102] : memref<128x128xf32, #tpu.memory_space<vmem>>, vector<128x128xf32>
    %85 = arith.addf %84, %83 : vector<128x128xf32>
    %c0_103 = arith.constant 0 : index
    %c0_104 = arith.constant 0 : index
    %86 = vector.load %arg14[%c0_103, %c0_104] : memref<128x128xf32, #tpu.memory_space<vmem>>, vector<128x128xf32>
    tpu.vector_store %arg14[%c0_103, %c0_104], %85 {strides = array<i32>} : memref<128x128xf32, #tpu.memory_space<vmem>>, vector<128x128xf32>,
    %c0_105 = arith.constant 0 : index
    %c0_106 = arith.constant 0 : index
    %87 = vector.load %arg14[%c0_105, %c0_106] : memref<128x128xf32, #tpu.memory_space<vmem>>, vector<128x128xf32>
    %c0_107 = arith.constant 0 : index
    %c0_108 = arith.constant 0 : index
    %88 = vector.load %arg8[%c0_107, %c0_108] : memref<1x128xf32, #tpu.memory_space<vmem>>, vector<1x128xf32>
    %89 = vector.broadcast %88 : vector<1x128xf32> to vector<128x128xf32>
    %90 = arith.mulf %87, %89 : vector<128x128xf32>
    %c0_109 = arith.constant 0 : index
    %c0_110 = arith.constant 0 : index
    %91 = vector.load %arg9[%c0_109, %c0_110] : memref<1x128xf32, #tpu.memory_space<vmem>>, vector<1x128xf32>
    %92 = vector.broadcast %91 : vector<1x128xf32> to vector<128x128xf32>
    %93 = arith.addf %90, %92 : vector<128x128xf32>
    %cst_111 = arith.constant 0.000000e+00 : f32
    %94 = vector.broadcast %cst_111 : f32 to vector<128x128xf32>
    %95 = arith.maximumf %93, %94 : vector<128x128xf32>
    %96 = vector.shape_cast %95 : vector<128x128xf32> to vector<1x8x16x128xf32>
    %c0_112 = arith.constant 0 : index
    %c0_113 = arith.constant 0 : index
    %c0_114 = arith.constant 0 : index
    %c0_115 = arith.constant 0 : index
    %97 = vector.load %arg10[%c0_112, %c0_113, %c0_114, %c0_115] : memref<1x8x16x128xf32, #tpu.memory_space<vmem>>, vector<1x8x16x128xf32>
    tpu.vector_store %arg10[%c0_112, %c0_113, %c0_114, %c0_115], %96 {strides = array<i32>} : memref<1x8x16x128xf32, #tpu.memory_space<vmem>>, vector<1x8x16x128xf32>,
    return
  }
  func.func @transform_0(%arg0: i32, %arg1: i32) -> (i32, i32, i32, i32) {
    %c0_i32 = arith.constant 0 : i32
    %c0_i32_0 = arith.constant 0 : i32
    %c0_i32_1 = arith.constant 0 : i32
    return %arg0, %arg1, %c0_i32, %c0_i32_0 : i32, i32, i32, i32
  }
  func.func @transform_1(%arg0: i32, %arg1: i32) -> (i32, i32, i32, i32) {
    %c2_i32 = arith.constant 2 : i32
    %0 = arith.muli %arg0, %c2_i32 : i32
    %1 = arith.addi %0, %arg1 : i32
    %c0_i32 = arith.constant 0 : i32
    %c0_i32_0 = arith.constant 0 : i32
    %c0_i32_1 = arith.constant 0 : i32
    %c0_i32_2 = arith.constant 0 : i32
    return %1, %c0_i32, %c0_i32_0, %c0_i32_1 : i32, i32, i32, i32
  }
  func.func @transform_2(%arg0: i32, %arg1: i32) -> (i32, i32, i32) {
    %c0_i32 = arith.constant 0 : i32
    %c0_i32_0 = arith.constant 0 : i32
    %c0_i32_1 = arith.constant 0 : i32
    %c0_i32_2 = arith.constant 0 : i32
    return %c0_i32, %c0_i32_0, %c0_i32_1 : i32, i32, i32
  }
  func.func @transform_3(%arg0: i32, %arg1: i32) -> (i32, i32) {
    %c0_i32 = arith.constant 0 : i32
    %c0_i32_0 = arith.constant 0 : i32
    %c0_i32_1 = arith.constant 0 : i32
    return %c0_i32, %c0_i32_0 : i32, i32
  }
  func.func @transform_4(%arg0: i32, %arg1: i32) -> (i32, i32) {
    %c0_i32 = arith.constant 0 : i32
    %c0_i32_0 = arith.constant 0 : i32
    %c0_i32_1 = arith.constant 0 : i32
    return %c0_i32, %c0_i32_0 : i32, i32
  }
  func.func @transform_5(%arg0: i32, %arg1: i32) -> (i32, i32, i32) {
    %c0_i32 = arith.constant 0 : i32
    %c0_i32_0 = arith.constant 0 : i32
    %c0_i32_1 = arith.constant 0 : i32
    %c0_i32_2 = arith.constant 0 : i32
    return %c0_i32, %c0_i32_0, %c0_i32_1 : i32, i32, i32
  }
  func.func @transform_6(%arg0: i32, %arg1: i32) -> (i32, i32) {
    %c0_i32 = arith.constant 0 : i32
    %c0_i32_0 = arith.constant 0 : i32
    %c0_i32_1 = arith.constant 0 : i32
    return %c0_i32, %c0_i32_0 : i32, i32
  }
  func.func @transform_7(%arg0: i32, %arg1: i32) -> (i32, i32) {
    %c0_i32 = arith.constant 0 : i32
    %c0_i32_0 = arith.constant 0 : i32
    %c0_i32_1 = arith.constant 0 : i32
    return %c0_i32, %c0_i32_0 : i32, i32
  }
  func.func @transform_8(%arg0: i32, %arg1: i32) -> (i32, i32, i32, i32) {
    %c0_i32 = arith.constant 0 : i32
    %c0_i32_0 = arith.constant 0 : i32
    %c0_i32_1 = arith.constant 0 : i32
    return %arg0, %arg1, %c0_i32, %c0_i32_0 : i32, i32, i32, i32
  }
}

</mosaic_0001>

<bundles_post_ra>
// kernel: double_conv.1
= control target key start
LH: loop header
LB: loop body
LE: loop exit
PB: predicated region body
PF: predicated region fallthrough
CT: control target
= control target key end

     0   :  { %s6455_s27 = smov 0   ;;  %s6457_s28 = smov 0   ;;  %s8064_s0 = inlined_call_operand.vmem [shape: bf16[2,16,16,128], index: 0, kind: input, shape index: {}]   ;;  %s8065_s1 = inlined_call_operand.vmem [shape: bf16[4,4,16,128], index: 1, kind: input, shape index: {}]   ;;  %s8066_s2 = inlined_call_operand.vmem [shape: bf16[3,384,128], index: 2, kind: input, shape index: {}]   ;;  %s8067_s3 = inlined_call_operand.vmem [shape: f32[1,128], index: 3, kind: input, shape index: {}]   ;;  %s8068_s4 = inlined_call_operand.vmem [shape: f32[1,128], index: 4, kind: input, shape index: {}]   ;;  %s8069_s5 = inlined_call_operand.vmem [shape: bf16[3,384,128], index: 5, kind: input, shape index: {}]   ;;  %s8070_s6 = inlined_call_operand.vmem [shape: f32[1,128], index: 6, kind: input, shape index: {}]   ;;  %s8071_s7 = inlined_call_operand.vmem [shape: f32[1,128], index: 7, kind: input, shape index: {}]   ;;  %s8072_s8 = inlined_call_operand.vmem [shape: f32[2,16,16,128], index: 8, kind: output, shape index: {}]  }
   0x1   :  { %s6459_s29 = smov 0   ;;  %s6461_s30 = smov 0  }
   0x2   :  { %s6463_s9 = smov 0  }
   0x3 LB: > { %s27_s10 = sadd.s32 1, %s6398_s29  ;;  %s30_s11 = sadd.s32 1, %s6402_s30  ;;  %s6406_s9 = sphi %s6463_s9, %s18_s9   ;;  %s6402_s30 = sphi %s6461_s30, %s8084_s30   ;;  %s6398_s29 = sphi %s6459_s29, %s8083_s29   ;;  %s6394_s28 = sphi %s6457_s28, %s8082_s28   ;;  %s6390_s27 = sphi %s6455_s27, %s8081_s27  }
   0x4   : > { %p28_p0 = scmp.ge.s32.totalorder %s27_s10, 2  ;;  %p4923_p1 = scmp.ge.s32.totalorder %s6406_s9, 1 }
   0x5   : > { %p302_p2 = scmp.lt.s32.totalorder %s6406_s9, 5 }
   0x6   : > { %s8086_s10 = smov (%p28_p0, %s27_s10), 0  ;;  %s8088_s11 = smov (!%p28_p0, %s30_s11), %s6402_s30 }
   0x7   : > { %p303_p3 = pnand %p4923_p1, %p302_p2  ;;  %p32_p4 = scmp.ge.s32.totalorder %s8088_s11, 2 }
   0x8   : > { %s4928_s14 = sshll.u32 (!%p303_p3), %s6394_s28, 1  ;;  %s4924_s15 = sshll.u32 (!%p303_p3), %s6390_s27, 3 }
   0x9   : > { %s8090_s11 = smov (%p32_p4, %s8088_s11), 0  ;;  %306 = sbr.rel (%p303_p3) target bundleno = 888 (0x378), region = 52 }
   0xa   : > { %s6503_s21 = sadd.s32 (!%p303_p3), %s6390_s27, %s4928_s14  ;;  %p354_p6 = scmp.lt.s32.totalorder (!%p303_p3), %s6394_s28, 1 }
   0xb   : > { %p366_p5 = scmp.lt.s32.totalorder (!%p303_p3), %s6503_s21, 3  ;;  %p356_p7 = scmp.lt.s32.totalorder (!%p303_p3), %s4924_s15, 15 }
   0xc   : > { %p5165_p8 = scmp.ne.s32.totalorder (!%p303_p3), %s6390_s27, 0 }
   0xe   : > { %v6158_v0 = vld [vmem:[%s8066_s2 + $0x78] sm:$0xff]   ;;  %v6161_v3 = vld [vmem:[%s8066_s2 + $0x70] sm:$0xff]   ;;  %v6164_v6 = vld [vmem:[%s8066_s2 + $0x68] sm:$0xff]   ;;  %s8092_s28 = smov (!%p354_p6, %s6394_s28), 1  ;;  %s8094_s15 = smov (!%p356_p7, %s4924_s15), 15  ;;  %vm385_vm0 = vcmask 1040384  }
   0xf   : > { %v6159_v1 = vld [vmem:[%s8066_s2 + $0xb8] sm:$0xff]   ;;  %5390 = vmatprep.subr.bf16.mxu0 %v6158_v0  ;;  %v6162_v4 = vld [vmem:[%s8066_s2 + $0xb0] sm:$0xff]   ;;  %v6165_v7 = vld [vmem:[%s8066_s2 + $0xa8] sm:$0xff]   ;;  %s4926_s12 = sshll.u32 %s8092_s28, 5  ;;  %s4925_s16 = sshll.u32 %s8094_s15, 1  ;;  %vm508_vm4 = vcmask 1043456  }
  0x10   : > { %v6160_v2 = vld [vmem:[%s8066_s2 + $0x38] sm:$0xff]   ;;  %5912 = vmatprep.subr.bf16.mxu1 %v6159_v1  ;;  %v6163_v5 = vld [vmem:[%s8066_s2 + $0x30] sm:$0xff]   ;;  %v6166_v8 = vld [vmem:[%s8066_s2 + $0x28] sm:$0xff]   ;;  %s8096_s21 = smov (!%p366_p5, %s6503_s21), 3  ;;  %s6545_s19 = sadd.s32 %s4926_s12, %s4925_s16  ;;  %vm386_vm1 = vsmask.f32 256 }
  0x11   : > { %5391 = vmatpush3.bf16.msra.mxu0 %v6160_v2  ;;  %5913 = vmatpush3.bf16.msra.mxu1 %v6159_v1  ;;  %v6167_v9 = vld [vmem:[%s8066_s2 + $0x60] sm:$0xff]   ;;  %v6170_v12 = vld [vmem:[%s8066_s2 + $0x58] sm:$0xff]   ;;  %v6173_v15 = vld [vmem:[%s8066_s2 + $0x50] sm:$0xff]   ;;  %s4934_s22 = sshll.u32 %s6545_s19, 3  ;;  %s5369_s14 = sshll.u32 %s8096_s21, 5  ;;  %vm1166_vm10 = vcmask 1046528  }
  0x12   : > { %5392 = vmatprep.subr.bf16.mxu0 %v6161_v3  ;;  %5914 = vmatprep.subr.bf16.mxu1 %v6162_v4  ;;  %v6168_v10 = vld [vmem:[%s8066_s2 + $0xa0] sm:$0xff]   ;;  %v6171_v13 = vld [vmem:[%s8066_s2 + $0x98] sm:$0xff]   ;;  %v6174_v16 = vld [vmem:[%s8066_s2 + $0x90] sm:$0xff]   ;;  %s6557_s26 = scalar_lea.vmem %s8072_s8, %s4934_s22  ;;  %s6574_s21 = scalar_lea.vmem %s8065_s1, %s5369_s14  ;;  %vm424_vm2 = vsmask.f32 7938 }
  0x13   : > { %v6169_v11 = vld [vmem:[%s8066_s2 + $0x20] sm:$0xff]   ;;  %v6172_v14 = vld [vmem:[%s8066_s2 + $0x18] sm:$0xff]   ;;  %v6175_v17 = vld [vmem:[%s8066_s2 + $0x10] sm:$0xff]   ;;  %vm466_vm6 = vsmask.f32 4368  ;;  %s4927_s17 = sshll.u32 %s6545_s19, 2 }
  0x14   : > { %v6176_v18 = vld [vmem:[%s8066_s2 + $0x48] sm:$0xff]   ;;  %v6179_v21 = vld [vmem:[%s8066_s2 + $0x40] sm:$0xff]   ;;  %vm6584_vm3 = vmand %vm385_vm0, %vm386_vm1  ;;  %s6627_s15 = scalar_lea.vmem %s8064_s0, %s4927_s17  ;;  %vm973_vm9 = vsmask.f32 7424 }
  0x15   : > { %5393 = vmatpush3.bf16.msra.mxu0 %v6163_v5  ;;  %5915 = vmatpush3.bf16.msra.mxu1 %v6162_v4  ;;  %v6177_v19 = vld [vmem:[%s8066_s2 + $0x88] sm:$0xff]   ;;  %v6180_v22 = vld [vmem:[%s8066_s2 + $0x80] sm:$0xff]   ;;  %vm6593_vm5 = vmand %vm385_vm0, %vm424_vm2 }
  0x16   : > { %5394 = vmatprep.subr.bf16.mxu0 %v6164_v6  ;;  %5916 = vmatprep.subr.bf16.mxu1 %v6165_v7  ;;  %v6178_v20 = vld [vmem:[%s8066_s2 + $0x8] sm:$0xff]   ;;  %v388_v23 = vld [vmem:[#allocation2] sm:$0x1]  ;;  %v463_v29 = vld [vmem:[%s6574_s21 + $0x4] sm:$0xf] }
  0x17   : > { %v426_v25 = vld [vmem:[#allocation2 + $0x8] sm:$0x1]  ;;  %v462_v26 = vld [vmem:[%s6574_s21] sm:$0xf]  ;;  %v389_v27 = vsel %vm6584_vm3, 0, %v388_v23  ;;  %v477_v34 = vshrl.u32 %v463_v29, 16  ;;  %vm6619_vm7 = vmor %vm386_vm1, %vm466_vm6 }
  0x18   : > { %v469_v30 = vshrl.u32 %v462_v26, 16  ;;  %v6181_v31 = vld [vmem:[%s8066_s2] sm:$0xff]   ;;  %390 = vst [vmem:[#allocation2] sm:$0x1] %v389_v27  ;;  %v427_v32 = vsel %vm6593_vm5, 0, %v426_v25  ;;  %v472_v33 = vshll.u32 %v462_v26, 16  ;;  %vm6631_vm8 = vmand %vm508_vm4, %vm424_vm2 }
  0x19   : > { %5395 = vmatpush3.bf16.msra.mxu0 %v6166_v8  ;;  %5917 = vmatpush3.bf16.msra.mxu1 %v6165_v7  ;;  %v480_v35 = vshll.u32 %v463_v29, 16  ;;  %428 = vst [vmem:[#allocation2 + $0x8] sm:$0x1] %v427_v32  ;;  %v391_v37 = vld [vmem:[#allocation2 + $0xc] sm:$0x1]  ;;  %v6607_v39 = vld [vmem:[%s8066_s2 + $0x178] sm:$0xff]  }
  0x1a   : > { %5396 = vmatprep.subr.bf16.mxu0 %v6167_v9  ;;  %5918 = vmatprep.subr.bf16.mxu1 %v6168_v10  ;;  %v471_v36 = vrot.slane %v469_v30, 7  ;;  %v429_v38 = vld [vmem:[#allocation2 + $0x14] sm:$0x1]  ;;  %v479_v40 = vrot.slane %v477_v34, 7  ;;  %v392_v41 = vsel %vm6584_vm3, 0, %v391_v37  ;;  %v6195_v44 = vld [vmem:[%s8066_s2 + $0x138] sm:$0xff]  }
  0x1b   : > { %v430_v42 = vsel %vm6593_vm5, 0, %v429_v38  ;;  %v464_v43 = vld [vmem:[%s6574_s21 + $0x8] sm:$0xf]  ;;  %393 = vst [vmem:[#allocation2 + $0xc] sm:$0x1] %v392_v41 }
  0x1c   : > { %v475_v46 = vrot.slane %v471_v36, 4  ;;  %431 = vst [vmem:[#allocation2 + $0x14] sm:$0x1] %v430_v42  ;;  %v465_v47 = vld [vmem:[%s6574_s21 + $0xc] sm:$0xf]  ;;  %v486_v48 = vshrl.u32 %v464_v43, 16  ;;  %v474_v50 = vor.u32 %v472_v33, %v471_v36  ;;  %v482_v51 = vor.u32 %v480_v35, %v479_v40 }
  0x1d   : > { %5397 = vmatpush3.bf16.msra.mxu0 %v6169_v11  ;;  %5919 = vmatpush3.bf16.msra.mxu1 %v6168_v10  ;;  %v489_v49 = vshll.u32 %v464_v43, 16  ;;  %v494_v52 = vshrl.u32 %v465_v47, 16  ;;  %v497_v53 = vshll.u32 %v465_v47, 16  ;;  %v484_v54 = vrot.slane %v479_v40, 4  ;;  %v394_v57 = vld [vmem:[#allocation2 + $0x18] sm:$0x1] }
  0x1e   : > { %5398 = vmatprep.subr.bf16.mxu0 %v6170_v12  ;;  %5920 = vmatprep.subr.bf16.mxu1 %v6171_v13  ;;  %v488_v56 = vrot.slane %v486_v48, 7  ;;  %v483_v58 = vsel %vm6619_vm7, %v475_v46, %v482_v51  ;;  %v395_v60 = vsel %vm6584_vm3, 0, %v394_v57  ;;  %v432_v61 = vld [vmem:[#allocation2 + $0x20] sm:$0x1]  ;;  %v525_v3 = vld [vmem:[%s6627_s15 + $0x4] sm:$0xf] }
  0x1f   : > { %v496_v59 = vrot.slane %v494_v52, 7  ;;  %v524_v62 = vld [vmem:[%s6627_s15] sm:$0xf]  ;;  %513 = vst [vmem:[#allocation2 + $0x4] sm:$0xf] %v483_v58  ;;  %v433_v2 = vsel %vm6593_vm5, 0, %v432_v61 }
  0x20   : > { %v510_v63 = vld [vmem:[#allocation2] sm:$0xf]  ;;  %v491_v0 = vor.u32 %v489_v49, %v488_v56  ;;  %v492_v1 = vrot.slane %v488_v56, 4  ;;  %396 = vst [vmem:[#allocation2 + $0x18] sm:$0x1] %v395_v60  ;;  %v541_v8 = vshrl.u32 %v524_v62, 16 }
  0x21   : > { %5399 = vmatpush3.bf16.msra.mxu0 %v6172_v14  ;;  %5921 = vmatpush3.bf16.msra.mxu1 %v6171_v13  ;;  %v511_v4 = vsel %vm6631_vm8, %v474_v50, %v510_v63  ;;  %v514_v5 = vld [vmem:[#allocation2 + $0x8] sm:$0x1]  ;;  %v499_v6 = vor.u32 %v497_v53, %v496_v59  ;;  %v501_v7 = vrot.slane %v496_v59, 4  ;;  %434 = vst [vmem:[#allocation2 + $0x20] sm:$0x1] %v433_v2  ;;  %v544_v11 = vshll.u32 %v524_v62, 16 }
  0x22   : > { %5400 = vmatprep.subr.bf16.mxu0 %v6173_v15  ;;  %5922 = vmatprep.subr.bf16.mxu1 %v6174_v16  ;;  %v397_v9 = vld [vmem:[#allocation2 + $0x24] sm:$0x1]  ;;  %512 = vst [vmem:[#allocation2] sm:$0xf] %v511_v4  ;;  %v515_v10 = vsel %vm6584_vm3, %v484_v54, %v514_v5  ;;  %v549_v12 = vshrl.u32 %v525_v3, 16  ;;  %v552_v13 = vshll.u32 %v525_v3, 16 }
  0x23   : > { %v435_v14 = vld [vmem:[#allocation2 + $0x2c] sm:$0x1]  ;;  %516 = vst [vmem:[#allocation2 + $0x8] sm:$0x1] %v515_v10  ;;  %v500_v15 = vsel %vm6619_vm7, %v492_v1, %v499_v6  ;;  %v526_v25 = vld [vmem:[%s6627_s15 + $0x8] sm:$0xf] }
  0x24   : > { %520 = vst [vmem:[#allocation2 + $0x10] sm:$0xf] %v500_v15  ;;  %v436_v23 = vsel %vm6593_vm5, 0, %v435_v14  ;;  %v527_v26 = vld [vmem:[%s6627_s15 + $0xc] sm:$0xf]  ;;  %v558_v30 = vshrl.u32 %v526_v25, 16 }
  0x25   : > { %5401 = vmatpush3.bf16.msra.mxu0 %v6175_v17  ;;  %5923 = vmatpush3.bf16.msra.mxu1 %v6174_v16  ;;  %v517_v16 = vld [vmem:[#allocation2 + $0xc] sm:$0xf]  ;;  %v521_v17 = vld [vmem:[#allocation2 + $0x14] sm:$0x1]  ;;  %437 = vst [vmem:[#allocation2 + $0x2c] sm:$0x1] %v436_v23 }
  0x26   : > { %5402 = vmatprep.subr.bf16.mxu0 %v6176_v18  ;;  %5924 = vmatprep.subr.bf16.mxu1 %v6177_v19  ;;  %v543_v18 = vrot.slane %v541_v8, 7  ;;  %v566_v34 = vshrl.u32 %v527_v26, 16  ;;  %v569_v35 = vshll.u32 %v527_v26, 16  ;;  %v818_v36 = vld [vmem:[#allocation2 + $0x4] sm:$0xf]  ;;  %v560_v38 = vrot.slane %v558_v30, 7 }
  0x27   : > { %v701_v37 = vld [vmem:[#allocation2 + $0x18] sm:$0xf] }
  0x28   : > { %v546_v27 = vor.u32 %v544_v11, %v543_v18  ;;  %v547_v29 = vrot.slane %v543_v18, 4  ;;  %v705_v42 = vld [vmem:[#allocation2 + $0x20] sm:$0x1]  ;;  %v568_v43 = vrot.slane %v566_v34, 7  ;;  %v564_v49 = vrot.slane %v560_v38, 4  ;;  %v6196_v8 = vld [vmem:[%s8066_s2 + $0xf8] sm:$0xff]  }
  0x29   : > { %5403 = vmatpush3.bf16.msra.mxu0 %v6178_v20  ;;  %5925 = vmatpush3.bf16.msra.mxu1 %v6177_v19  ;;  %v398_v19 = vsel %vm6584_vm3, 0, %v397_v9  ;;  %v518_v20 = vsel %vm6631_vm8, %v491_v0, %v517_v16  ;;  %v853_v46 = vld [vmem:[#allocation2] sm:$0xe]  ;;  %v6197_v18 = vld [vmem:[%s8066_s2 + $0x170] sm:$0xff]   ;;  %v6206_v34 = vld [vmem:[%s8066_s2 + $0x128] sm:$0xff]  }
  0x2a   : > { %5404 = vmatprep.subr.bf16.mxu0 %v6179_v21  ;;  %5926 = vmatprep.subr.bf16.mxu1 %v6180_v22  ;;  %v522_v21 = vsel %vm6584_vm3, %v501_v7, %v521_v17  ;;  %399 = vst [vmem:[#allocation2 + $0x24] sm:$0x1] %v398_v19  ;;  %519 = vst [vmem:[#allocation2 + $0xc] sm:$0xf] %v518_v20  ;;  %v702_v41 = vsel %vm6631_vm8, %v546_v27, %v701_v37  ;;  %v573_v54 = vrot.slane %v568_v43, 4 }
  0x2b   : > { %523 = vst [vmem:[#allocation2 + $0x14] sm:$0x1] %v522_v21  ;;  %703 = vst [vmem:[#allocation2 + $0x18] sm:$0xf] %v702_v41  ;;  %v4963_v52 = vcombine.low %v853_v46, %v818_v36  ;;  %v571_v53 = vor.u32 %v569_v35, %v568_v43  ;;  %v820_v56 = vld [vmem:[#allocation2 + $0x10] sm:$0xf] }
  0x2c   : > { %v6183_v51 = vld [vmem:[#allocation2 + $0x8] ss:$0 sps:$4 sm:$0x11]  }
  0x2d   : > { %5405 = vmatpush3.bf16.msra.mxu0 %v6181_v31  ;;  %5927 = vmatpush3.bf16.msra.mxu1 %v6180_v22  ;;  %v551_v22 = vrot.slane %v549_v12, 7  ;;  %v561_v31 = vshll.u32 %v526_v25, 16  ;;  %v982_v60 = vshll.u32 %v6183_v51, 16  ;;  %v1167_v61 = vrot.slane %v4963_v52, 1  ;;  %v712_v12 = vld [vmem:[#allocation2 + $0x2c] sm:$0x1] }
  0x2e   : > { %5948 = vmatprep.subr.bf16.mxu0 %v6607_v39  ;;  %5484 = vmatprep.subr.bf16.mxu1 %v6195_v44  ;;  %v817_v44 = vld [vmem:[#allocation2] sm:$0xf]  ;;  %v1168_v63 = vrot.slane %v6183_v51, 1  ;;  %v572_v2 = vsel %vm6619_vm7, %v564_v49, %v571_v53  ;;  %v713_v21 = vsel %vm6584_vm3, %v573_v54, %v712_v12  ;;  %v438_v53 = vld [vmem:[#allocation2 + $0x38] sm:$0x1] }
  0x2f   : > { %v554_v32 = vor.u32 %v552_v13, %v551_v22  ;;  %v556_v33 = vrot.slane %v551_v22, 4  ;;  %v563_v48 = vor.u32 %v561_v31, %v560_v38  ;;  %v4939_v50 = vcombine.low %v817_v44, %v818_v36  ;;  %711 = vst [vmem:[#allocation2 + $0x28] sm:$0xf] %v572_v2  ;;  %v6198_v22 = vld [vmem:[%s8066_s2 + $0x130] sm:$0xff]   ;;  %714 = vst [vmem:[#allocation2 + $0x2c] sm:$0x1] %v713_v21 }
  0x30   : > { %v984_v5 = vrot.slane %v982_v60, 1  ;;  %v1169_v9 = vsel %vm1166_vm10, %v1167_v61, %v1168_v63  ;;  %v6199_v31 = vld [vmem:[%s8066_s2 + $0xf0] sm:$0xff]   ;;  %v6221_v2 = vld [vmem:[%s8066_s2 + $0x160] sm:$0xff]   ;;  %v530_v12 = vld [vmem:[%s6627_s15 + $0x18] sm:$0xf] }
  0x31   : > { %v555_v40 = vsel %vm6619_vm7, %v547_v29, %v554_v32  ;;  %v706_v47 = vsel %vm6584_vm3, %v556_v33, %v705_v42  ;;  %v708_v57 = vld [vmem:[#allocation2 + $0x24] sm:$0xf]  ;;  %v975_v58 = vshrl.u32 %v4939_v50, 16  ;;  %v977_v59 = vshll.u32 %v4939_v50, 16  ;;  %v819_v62 = vld [vmem:[#allocation2 + $0xc] sm:$0xf]  ;;  %5928 = vmatprep.mubr.bf16.mxu1 %v1169_v9 }
  0x32   : > { %704 = vst [vmem:[#allocation2 + $0x1c] sm:$0xf] %v555_v40  ;;  %707 = vst [vmem:[#allocation2 + $0x20] sm:$0x1] %v706_v47  ;;  %v854_v0 = vld [vmem:[#allocation2 + $0xc] sm:$0xe]  ;;  %v6666_v1 = vcombine.low %v819_v62, %v820_v56  ;;  %v709_v3 = vsel %vm6631_vm8, %v563_v48, %v708_v57 }
  0x33   : > { %v979_v4 = vrot.slane %v977_v59, 1  ;;  %v6186_v6 = vld [vmem:[#allocation2 + $0x14] ss:$0 sps:$4 sm:$0x11]   ;;  %v4964_v7 = vcombine.low %v854_v0, %v820_v56  ;;  %710 = vst [vmem:[#allocation2 + $0x24] sm:$0xf] %v709_v3 }
  0x34   : > { %v987_v10 = vshrl.u32 %v6666_v1, 16  ;;  %v989_v11 = vshll.u32 %v6666_v1, 16  ;;  %v1171_v15 = vrot.slane %v6186_v6, 1  ;;  %v994_v16 = vshll.u32 %v6186_v6, 16  ;;  %v821_v17 = vld [vmem:[#allocation2 + $0x18] sm:$0xf] }
  0x35   : > { %v980_v13 = vor.u32 %v979_v4, %v975_v58  ;;  %v1170_v14 = vrot.slane %v4964_v7, 1  ;;  %v855_v27 = vld [vmem:[#allocation2 + $0x18] sm:$0xe]  ;;  %v400_v47 = vld [vmem:[#allocation2 + $0x30] sm:$0x1]  ;;  %v6209_v48 = vld [vmem:[%s8066_s2 + $0x168] sm:$0xff]  }
  0x36   : > { %v991_v19 = vrot.slane %v989_v11, 1  ;;  %v996_v26 = vrot.slane %v994_v16, 1  ;;  %v824_v41 = vld [vmem:[#allocation2 + $0x28] sm:$0xf]  ;;  %v401_v52 = vsel %vm6584_vm3, 0, %v400_v47  ;;  %v6208_v56 = vld [vmem:[%s8066_s2 + $0x120] sm:$0xff]  }
  0x37   : > { %v985_v23 = vsel %vm973_vm9, %v980_v13, %v984_v5  ;;  %v6688_v25 = vsel %vm1166_vm10, %v1170_v14, %v1171_v15  ;;  %v528_v54 = vld [vmem:[%s6627_s15 + $0x10] sm:$0xf]  ;;  %402 = vst [vmem:[#allocation2 + $0x30] sm:$0x1] %v401_v52  ;;  %v439_v58 = vsel %vm6593_vm5, 0, %v438_v53  ;;  %v595_v21 = vshll.u32 %v530_v12, 16 }
  0x38   : > { %1439 = vmatprep.mubr.bf16.mxu0 %v985_v23  ;;  %5929 = vmatmul.mubr.bf16.vlgmr.msra.gmra.mxu1 %v6688_v25  ;;  %v992_v32 = vor.u32 %v991_v19, %v987_v10  ;;  %v529_v59 = vld [vmem:[%s6627_s15 + $0x14] sm:$0xf]  ;;  %v575_v60 = vshrl.u32 %v528_v54, 16  ;;  %v578_v61 = vshll.u32 %v528_v54, 16  ;;  %440 = vst [vmem:[#allocation2 + $0x38] sm:$0x1] %v439_v58 }
  0x39   : > { %v822_v20 = vld [vmem:[#allocation2 + $0x1c] sm:$0xf]  ;;  %v6190_v30 = vld [vmem:[#allocation2 + $0x20] ss:$0 sps:$4 sm:$0x11]   ;;  %1440 = vmatmul.mubr.bf16.vlgmr.msra.gmra.mxu0 %v4939_v50  ;;  %5485 = vmatpush3.bf16.msra.mxu1 %v6196_v8  ;;  %v583_v4 = vshrl.u32 %v529_v59, 16 }
  0x3a   : > { %v6690_v29 = vcombine.low %v821_v17, %v822_v20  ;;  %v4965_v33 = vcombine.low %v855_v27, %v822_v20  ;;  %v1174_v35 = vrot.slane %v6190_v30, 1  ;;  %5949 = vmatpush3.bf16.msra.mxu0 %v6607_v39  ;;  %v6702_v37 = vsel %vm973_vm9, %v992_v32, %v996_v26  ;;  %v823_v40 = vld [vmem:[#allocation2 + $0x24] sm:$0xf]  ;;  %5486 = vmatprep.subr.bf16.mxu1 %v6198_v22  ;;  %v6207_v39 = vld [vmem:[%s8066_s2 + $0xe8] sm:$0xff]   ;;  %v403_v6 = vld [vmem:[#allocation2 + $0x3c] sm:$0x1] }
  0x3b   : > { %1447 = vmatprep.mubr.bf16.mxu0 %v6702_v37  ;;  %v856_v43 = vld [vmem:[#allocation2 + $0x24] sm:$0xe]  ;;  %v6706_v44 = vcombine.low %v823_v40, %v824_v41  ;;  %5950 = vmatprep.subr.bf16.mxu0 %v6197_v18  ;;  %v1006_v46 = vshll.u32 %v6190_v30, 16  ;;  %v6727_v62 = vld [vmem:[#allocation2 + $0x2c] ss:$0 sps:$4 sm:$0x11]  }
  0x3c   : > { %v999_v36 = vshrl.u32 %v6690_v29, 16  ;;  %v1173_v38 = vrot.slane %v4965_v33, 1  ;;  %v1001_v42 = vshll.u32 %v6690_v29, 16  ;;  %v4966_v50 = vcombine.low %v856_v43, %v824_v41  ;;  %v441_v11 = vld [vmem:[#allocation2 + $0x44] sm:$0x1]  ;;  %v6217_v23 = vld [vmem:[%s8066_s2 + $0x118] sm:$0xff]  }
  0x3d   : > { %5487 = vmatpush3.bf16.msra.mxu1 %v6199_v31  ;;  %v1008_v57 = vrot.slane %v1006_v46, 1  ;;  %v577_v3 = vrot.slane %v575_v60, 7  ;;  %v586_v5 = vshll.u32 %v529_v59, 16  ;;  %v1011_v7 = vshrl.u32 %v6706_v44, 16  ;;  %v531_v17 = vld [vmem:[%s6627_s15 + $0x1c] sm:$0xf] }
  0x3e   : > { %v6715_v49 = vsel %vm1166_vm10, %v1173_v38, %v1174_v35  ;;  %v1003_v51 = vrot.slane %v1001_v42, 1  ;;  %v1176_v63 = vrot.slane %v4966_v50, 1  ;;  %5951 = vmatpush3.bf16.msra.mxu0 %v6197_v18  ;;  %5488 = vmatprep.subr.bf16.mxu1 %v6206_v34  ;;  %v1177_v8 = vrot.slane %v6727_v62, 1  ;;  %v6210_v18 = vld [vmem:[%s8066_s2 + $0xe0] sm:$0xff]   ;;  %v6218_v31 = vld [vmem:[%s8066_s2 + $0xd8] sm:$0xff]   ;;  %v6219_v46 = vld [vmem:[%s8066_s2 + $0x110] sm:$0xff]  }
  0x3f   : > { %5932 = vmatprep.mubr.bf16.mxu1 %v6715_v49  ;;  %5952 = vmatprep.subr.bf16.mxu0 %v6209_v48  ;;  %v404_v10 = vsel %vm6584_vm3, 0, %v403_v6  ;;  %v580_v13 = vor.u32 %v578_v61, %v577_v3  ;;  %v581_v14 = vrot.slane %v577_v3, 4  ;;  %v585_v15 = vrot.slane %v583_v4, 7  ;;  %v715_v32 = vld [vmem:[#allocation2 + $0x30] sm:$0xf]  ;;  %v6228_v54 = vld [vmem:[%s8066_s2 + $0x108] sm:$0xff]  }
  0x40   : > { %v1004_v0 = vor.u32 %v1003_v51, %v999_v36  ;;  %405 = vst [vmem:[#allocation2 + $0x3c] sm:$0x1] %v404_v10  ;;  %v442_v16 = vsel %vm6593_vm5, 0, %v441_v11  ;;  %v6748_v19 = vsel %vm1166_vm10, %v1176_v63, %v1177_v8  ;;  %v592_v20 = vshrl.u32 %v530_v12, 16  ;;  %v719_v38 = vld [vmem:[#allocation2 + $0x38] sm:$0x1] }
  0x41   : > { %1448 = vmatmul.mubr.bf16.gmra.mxu0 %v6666_v1  ;;  %5489 = vmatpush3.bf16.msra.mxu1 %v6207_v39  ;;  %443 = vst [vmem:[#allocation2 + $0x44] sm:$0x1] %v442_v16  ;;  %v600_v22 = vshrl.u32 %v531_v17, 16  ;;  %v588_v26 = vor.u32 %v586_v5, %v585_v15  ;;  %v590_v27 = vrot.slane %v585_v15, 4  ;;  %v603_v30 = vshll.u32 %v531_v17, 16  ;;  %v6229_v11 = vld [vmem:[%s8066_s2 + $0xc8] sm:$0xff]  }
  0x42   : > { %v6735_v9 = vsel %vm973_vm9, %v1004_v0, %v1008_v57  ;;  %5490 = vmatprep.subr.bf16.mxu1 %v6208_v56  ;;  %5933 = vmatmul.mubr.bf16.gmra.mxu1 %v6748_v19  ;;  %v594_v33 = vrot.slane %v592_v20, 7  ;;  %v716_v36 = vsel %vm6631_vm8, %v580_v13, %v715_v32  ;;  %v1013_v39 = vshll.u32 %v6706_v44, 16  ;;  %v406_v53 = vld [vmem:[#allocation2 + $0x48] sm:$0x1]  ;;  %v6232_v56 = vld [vmem:[%s8066_s2 + $0x158] sm:$0xff]   ;;  %v6233_v12 = vld [vmem:[%s8066_s2 + $0x150] sm:$0xff]  }
  0x43   : > { %1455 = vmatprep.mubr.bf16.mxu0 %v6735_v9  ;;  %5953 = vmatpush3.bf16.msra.mxu0 %v6209_v48  ;;  %v602_v34 = vrot.slane %v600_v22, 7  ;;  %v589_v35 = vsel %vm6619_vm7, %v581_v14, %v588_v26  ;;  %717 = vst [vmem:[#allocation2 + $0x30] sm:$0xf] %v716_v36  ;;  %v720_v40 = vsel %vm6584_vm3, %v590_v27, %v719_v38  ;;  %v6220_v48 = vld [vmem:[%s8066_s2 + $0xd0] sm:$0xff]   ;;  %v1018_v52 = vshll.u32 %v6727_v62, 16  ;;  %v6230_v16 = vld [vmem:[%s8066_s2 + $0x100] sm:$0xff]  }
  0x44   : > { %5954 = vmatprep.subr.bf16.mxu0 %v6221_v2  ;;  %718 = vst [vmem:[#allocation2 + $0x34] sm:$0xf] %v589_v35  ;;  %v597_v41 = vor.u32 %v595_v21, %v594_v33  ;;  %v598_v42 = vrot.slane %v594_v33, 4  ;;  %721 = vst [vmem:[#allocation2 + $0x38] sm:$0x1] %v720_v40  ;;  %v1015_v59 = vrot.slane %v1013_v39, 1 }
  0x45   : > { %5491 = vmatpush3.bf16.msra.mxu1 %v6210_v18  ;;  %v605_v43 = vor.u32 %v603_v30, %v602_v34  ;;  %v607_v47 = vrot.slane %v602_v34, 4  ;;  %v407_v60 = vsel %vm6584_vm3, 0, %v406_v53  ;;  %v444_v61 = vld [vmem:[#allocation2 + $0x50] sm:$0x1]  ;;  %v1020_v63 = vrot.slane %v1018_v52, 1  ;;  %v6231_v39 = vld [vmem:[%s8066_s2 + $0xc0] sm:$0xff]  }
  0x46   : > { %5492 = vmatprep.subr.bf16.mxu1 %v6217_v23  ;;  %408 = vst [vmem:[#allocation2 + $0x48] sm:$0x1] %v407_v60  ;;  %v445_v0 = vsel %vm6593_vm5, 0, %v444_v61  ;;  %v533_v3 = vld [vmem:[%s6627_s15 + $0x24] sm:$0xf]  ;;  %v1016_v4 = vor.u32 %v1015_v59, %v1011_v7 }
  0x47   : > { %5955 = vmatpush3.bf16.msra.mxu0 %v6221_v2  ;;  %v606_v50 = vsel %vm6619_vm7, %v598_v42, %v605_v43  ;;  %v722_v51 = vld [vmem:[#allocation2 + $0x3c] sm:$0xf]  ;;  %v532_v2 = vld [vmem:[%s6627_s15 + $0x20] sm:$0xf]  ;;  %446 = vst [vmem:[#allocation2 + $0x50] sm:$0x1] %v445_v0 }
  0x48   : > { %v723_v57 = vsel %vm6631_vm8, %v597_v41, %v722_v51  ;;  %725 = vst [vmem:[#allocation2 + $0x40] sm:$0xf] %v606_v50  ;;  %v726_v58 = vld [vmem:[#allocation2 + $0x44] sm:$0x1]  ;;  %5956 = vmatprep.subr.bf16.mxu0 %v6232_v56  ;;  %v609_v5 = vshrl.u32 %v532_v2, 16  ;;  %v612_v6 = vshll.u32 %v532_v2, 16  ;;  %v6806_v21 = vsel %vm973_vm9, %v1016_v4, %v1020_v63 }
  0x49   : > { %1456 = vmatmul.mubr.bf16.gmra.mxu0 %v6690_v29  ;;  %5493 = vmatpush3.bf16.msra.mxu1 %v6218_v31  ;;  %724 = vst [vmem:[#allocation2 + $0x3c] sm:$0xf] %v723_v57  ;;  %v727_v62 = vsel %vm6584_vm3, %v607_v47, %v726_v58  ;;  %v617_v8 = vshrl.u32 %v533_v3, 16  ;;  %v409_v10 = vld [vmem:[#allocation2 + $0x54] sm:$0x1]  ;;  %v620_v13 = vshll.u32 %v533_v3, 16 }
  0x4a   : > { %5494 = vmatprep.subr.bf16.mxu1 %v6219_v46  ;;  %728 = vst [vmem:[#allocation2 + $0x44] sm:$0x1] %v727_v62  ;;  %v410_v14 = vsel %vm6584_vm3, 0, %v409_v10  ;;  %v447_v15 = vld [vmem:[#allocation2 + $0x5c] sm:$0x1]  ;;  %1463 = vmatprep.mubr.bf16.mxu0 %v6806_v21  ;;  %v611_v26 = vrot.slane %v609_v5, 7 }
  0x4b   : > { %5957 = vmatpush3.bf16.msra.mxu0 %v6232_v56  ;;  %v534_v7 = vld [vmem:[%s6627_s15 + $0x28] sm:$0xf]  ;;  %v825_v17 = vld [vmem:[#allocation2 + $0x30] sm:$0xf]  ;;  %v826_v18 = vld [vmem:[#allocation2 + $0x34] sm:$0xf] }
  0x4c   : > { %v857_v20 = vld [vmem:[#allocation2 + $0x30] sm:$0xe]  ;;  %411 = vst [vmem:[#allocation2 + $0x54] sm:$0x1] %v410_v14  ;;  %5958 = vmatprep.subr.bf16.mxu0 %v6233_v12  ;;  %v619_v27 = vrot.slane %v617_v8, 7  ;;  %v448_v30 = vsel %vm6593_vm5, 0, %v447_v15  ;;  %v614_v38 = vor.u32 %v612_v6, %v611_v26 }
  0x4d   : > { %5495 = vmatpush3.bf16.msra.mxu1 %v6220_v48  ;;  %v6808_v22 = vld [vmem:[#allocation2 + $0x38] ss:$0 sps:$4 sm:$0x11]   ;;  %v4967_v23 = vcombine.low %v857_v20, %v826_v18  ;;  %v535_v31 = vld [vmem:[%s6627_s15 + $0x2c] sm:$0xf]  ;;  %v626_v32 = vshrl.u32 %v534_v7, 16  ;;  %v6824_v48 = vcombine.low %v825_v17, %v826_v18 }
  0x4e   : > { %5496 = vmatprep.subr.bf16.mxu1 %v6228_v54  ;;  %v629_v33 = vshll.u32 %v534_v7, 16  ;;  %v1180_v35 = vrot.slane %v6808_v22, 1  ;;  %v615_v40 = vrot.slane %v611_v26, 4  ;;  %449 = vst [vmem:[#allocation2 + $0x5c] sm:$0x1] %v448_v30  ;;  %v6234_v41 = vld [vmem:[%s8066_s2 + $0x148] sm:$0xff]   ;;  %v622_v43 = vor.u32 %v620_v13, %v619_v27 }
  0x4f   : > { %5959 = vmatpush3.bf16.msra.mxu0 %v6233_v12  ;;  %v1179_v34 = vrot.slane %v4967_v23, 1  ;;  %v6815_v36 = vld [vmem:[#allocation2 + $0x40] sm:$0xf]  ;;  %v624_v46 = vrot.slane %v619_v27, 4  ;;  %v628_v47 = vrot.slane %v626_v32, 7  ;;  %v634_v53 = vshrl.u32 %v535_v31, 16 }
  0x50   : > { %v858_v42 = vld [vmem:[#allocation2 + $0x3c] sm:$0xe]  ;;  %5960 = vmatprep.subr.bf16.mxu0 %v6234_v41  ;;  %v623_v54 = vsel %vm6619_vm7, %v615_v40, %v622_v43  ;;  %v729_v56 = vld [vmem:[#allocation2 + $0x48] sm:$0xf]  ;;  %v733_v57 = vld [vmem:[#allocation2 + $0x50] sm:$0x1] }
  0x51   : > { %1464 = vmatmul.mubr.bf16.gmra.mxu0 %v6706_v44  ;;  %5497 = vmatpush3.bf16.msra.mxu1 %v6229_v11  ;;  %v6827_v50 = vsel %vm1166_vm10, %v1179_v34, %v1180_v35  ;;  %v6829_v51 = vld [vmem:[#allocation2 + $0x44] ss:$0 sps:$4 sm:$0x11]   ;;  %v4968_v52 = vcombine.low %v858_v42, %v6815_v36  ;;  %v631_v58 = vor.u32 %v629_v33, %v628_v47  ;;  %v632_v59 = vrot.slane %v628_v47, 4  ;;  %v827_v13 = vld [vmem:[#allocation2 + $0x3c] sm:$0xf] }
  0x52   : > { %5498 = vmatprep.subr.bf16.mxu1 %v6230_v16  ;;  %5936 = vmatprep.mubr.bf16.mxu1 %v6827_v50  ;;  %v637_v60 = vshll.u32 %v535_v31, 16  ;;  %v1183_v62 = vrot.slane %v6829_v51, 1  ;;  %v730_v63 = vsel %vm6631_vm8, %v614_v38, %v729_v56  ;;  %732 = vst [vmem:[#allocation2 + $0x4c] sm:$0xf] %v623_v54  ;;  %v734_v0 = vsel %vm6584_vm3, %v624_v46, %v733_v57  ;;  %v412_v17 = vld [vmem:[#allocation2 + $0x60] sm:$0x1] }
  0x53   : > { %5961 = vmatpush3.bf16.msra.mxu0 %v6234_v41  ;;  %v1182_v61 = vrot.slane %v4968_v52, 1  ;;  %v736_v2 = vld [vmem:[#allocation2 + $0x54] sm:$0xf]  ;;  %731 = vst [vmem:[#allocation2 + $0x48] sm:$0xf] %v730_v63  ;;  %v636_v3 = vrot.slane %v634_v53, 7  ;;  %v6871_v43 = vcombine.low %v827_v13, %v6815_v36 }
  0x54   : > { %735 = vst [vmem:[#allocation2 + $0x50] sm:$0x1] %v734_v0  ;;  %v737_v4 = vsel %vm6631_vm8, %v631_v58, %v736_v2  ;;  %v1023_v5 = vshrl.u32 %v6824_v48, 16  ;;  %v1025_v12 = vshll.u32 %v6824_v48, 16  ;;  %v1030_v16 = vshll.u32 %v6808_v22, 16  ;;  %v6235_v34 = vld [vmem:[%s8066_s2 + $0x140] sm:$0xff]  }
  0x55   : > { %5499 = vmatpush3.bf16.msra.mxu1 %v6231_v39  ;;  %v6844_v6 = vsel %vm1166_vm10, %v1182_v61, %v1183_v62  ;;  %738 = vst [vmem:[#allocation2 + $0x54] sm:$0xf] %v737_v4  ;;  %v639_v8 = vor.u32 %v637_v60, %v636_v3  ;;  %v641_v10 = vrot.slane %v636_v3, 4  ;;  %v740_v11 = vld [vmem:[#allocation2 + $0x5c] sm:$0x1]  ;;  %v413_v20 = vsel %vm6584_vm3, 0, %v412_v17  ;;  %5962 = vmatprep.subr.bf16.mxu0 %v6235_v34 }
  0x56   : > { %5937 = vmatmul.mubr.bf16.gmra.mxu1 %v6844_v6  ;;  %v1027_v7 = vrot.slane %v1025_v12, 1  ;;  %v450_v18 = vld [vmem:[#allocation2 + $0x68] sm:$0x1]  ;;  %v536_v26 = vld [vmem:[%s6627_s15 + $0x30] sm:$0xf]  ;;  %v1032_v32 = vrot.slane %v1030_v16, 1 }
  0x57   : > { %v640_v14 = vsel %vm6619_vm7, %v632_v59, %v639_v8  ;;  %v741_v15 = vsel %vm6584_vm3, %v641_v10, %v740_v11  ;;  %v451_v23 = vsel %vm6593_vm5, 0, %v450_v18  ;;  %v537_v27 = vld [vmem:[%s6627_s15 + $0x34] sm:$0xf]  ;;  %414 = vst [vmem:[#allocation2 + $0x60] sm:$0x1] %v413_v20  ;;  %v643_v33 = vshrl.u32 %v536_v26, 16  ;;  %5963 = vmatpush3.bf16.msra.mxu0 %v6235_v34 }
  0x58   : > { %739 = vst [vmem:[#allocation2 + $0x58] sm:$0xf] %v640_v14  ;;  %742 = vst [vmem:[#allocation2 + $0x5c] sm:$0x1] %v741_v15  ;;  %v1028_v31 = vor.u32 %v1027_v7, %v1023_v5  ;;  %v646_v22 = vshll.u32 %v536_v26, 16  ;;  %v651_v47 = vshrl.u32 %v537_v27, 16 }
  0x59   : > { %v6859_v30 = vld [vmem:[#allocation2 + $0x4c] sm:$0xf]  ;;  %452 = vst [vmem:[#allocation2 + $0x68] sm:$0x1] %v451_v23  ;;  %v645_v42 = vrot.slane %v643_v33, 7  ;;  %v654_v39 = vshll.u32 %v537_v27, 16 }
  0x5a   : > { %v859_v35 = vld [vmem:[#allocation2 + $0x48] sm:$0xe]  ;;  %v6868_v41 = vsel %vm973_vm9, %v1028_v31, %v1032_v32  ;;  %v415_v52 = vld [vmem:[#allocation2 + $0x6c] sm:$0x1]  ;;  %v453_v58 = vld [vmem:[#allocation2 + $0x74] sm:$0x1] }
  0x5b   : > { %v6864_v38 = vld [vmem:[#allocation2 + $0x50] ss:$0 sps:$4 sm:$0x11]   ;;  %v4969_v40 = vcombine.low %v859_v35, %v6859_v30  ;;  %1471 = vmatprep.mubr.bf16.mxu0 %v6868_v41  ;;  %v648_v56 = vor.u32 %v646_v22, %v645_v42  ;;  %v649_v57 = vrot.slane %v645_v42, 4  ;;  %v6236_v36 = vld [vmem:[%s8066_s2 + $0x1f8] sm:$0xff]   ;;  %v653_v59 = vrot.slane %v651_v47, 7 }
  0x5c   : > { %v860_v46 = vld [vmem:[#allocation2 + $0x54] sm:$0xe]  ;;  %v1186_v54 = vrot.slane %v6864_v38, 1  ;;  %1472 = vmatmul.mubr.bf16.gmra.mxu0 %v6824_v48  ;;  %v416_v60 = vsel %vm6584_vm3, 0, %v415_v52  ;;  %v454_v61 = vsel %vm6593_vm5, 0, %v453_v58  ;;  %v1035_v63 = vshrl.u32 %v6871_v43, 16  ;;  %5578 = vmatprep.subr.bf16.mxu0 %v6236_v36 }
  0x5d   : > { %v1185_v53 = vrot.slane %v4969_v40, 1  ;;  %v538_v62 = vld [vmem:[%s6627_s15 + $0x38] sm:$0xf]  ;;  %v829_v0 = vld [vmem:[#allocation2 + $0x48] sm:$0xf]  ;;  %v656_v10 = vor.u32 %v654_v39, %v653_v59  ;;  %v658_v11 = vrot.slane %v653_v59, 4 }
  0x5e   : > { %417 = vst [vmem:[#allocation2 + $0x6c] sm:$0x1] %v416_v60  ;;  %455 = vst [vmem:[#allocation2 + $0x74] sm:$0x1] %v454_v61  ;;  %v539_v4 = vld [vmem:[%s6627_s15 + $0x3c] sm:$0xf]  ;;  %v6901_v22 = vcombine.low %v829_v0, %v6859_v30 }
  0x5f   : > { %v6886_v2 = vsel %vm1166_vm10, %v1185_v53, %v1186_v54  ;;  %v832_v3 = vld [vmem:[#allocation2 + $0x58] sm:$0xf]  ;;  %v6890_v5 = vld [vmem:[#allocation2 + $0x5c] ss:$0 sps:$4 sm:$0x11]   ;;  %v660_v7 = vshrl.u32 %v538_v62, 16  ;;  %v657_v23 = vsel %vm6619_vm7, %v649_v57, %v656_v10 }
  0x60   : > { %5940 = vmatprep.mubr.bf16.mxu1 %v6886_v2  ;;  %v4970_v8 = vcombine.low %v860_v46, %v832_v3  ;;  %v743_v12 = vld [vmem:[#allocation2 + $0x60] sm:$0xf]  ;;  %v831_v13 = vld [vmem:[#allocation2 + $0x54] sm:$0xf]  ;;  %v747_v15 = vld [vmem:[#allocation2 + $0x68] sm:$0x1] }
  0x61   : > { %v744_v14 = vsel %vm6631_vm8, %v648_v56, %v743_v12  ;;  %v663_v16 = vshll.u32 %v538_v62, 16  ;;  %v668_v17 = vshrl.u32 %v539_v4, 16  ;;  %v1189_v20 = vrot.slane %v6890_v5, 1  ;;  %746 = vst [vmem:[#allocation2 + $0x64] sm:$0xf] %v657_v23  ;;  %v6920_v36 = vld [vmem:[%s8066_s2 + $0x238] sm:$0xff]  }
  0x62   : > { %v1188_v18 = vrot.slane %v4970_v8, 1  ;;  %745 = vst [vmem:[#allocation2 + $0x60] sm:$0xf] %v744_v14  ;;  %v748_v26 = vsel %vm6584_vm3, %v658_v11, %v747_v15  ;;  %v662_v27 = vrot.slane %v660_v7, 7  ;;  %v671_v32 = vshll.u32 %v539_v4, 16  ;;  %5984 = vmatprep.subr.bf16.mxu1 %v6920_v36 }
  0x63   : > { %749 = vst [vmem:[#allocation2 + $0x68] sm:$0x1] %v748_v26  ;;  %v670_v31 = vrot.slane %v668_v17, 7  ;;  %v1037_v33 = vshll.u32 %v6871_v43, 16  ;;  %v6907_v47 = vcombine.low %v831_v13, %v832_v3  ;;  %v1042_v54 = vshll.u32 %v6829_v51, 16 }
  0x64   : > { %v6904_v34 = vsel %vm1166_vm10, %v1188_v18, %v1189_v20  ;;  %v665_v35 = vor.u32 %v663_v16, %v662_v27  ;;  %v666_v40 = vrot.slane %v662_v27, 4  ;;  %v1047_v58 = vshrl.u32 %v6901_v22, 16 }
  0x65   : > { %5941 = vmatmul.mubr.bf16.gmra.mxu1 %v6904_v34  ;;  %v673_v42 = vor.u32 %v671_v32, %v670_v31  ;;  %v675_v46 = vrot.slane %v670_v31, 4  ;;  %v750_v39 = vld [vmem:[#allocation2 + $0x6c] sm:$0xf]  ;;  %v754_v52 = vld [vmem:[#allocation2 + $0x74] sm:$0x1]  ;;  %v1039_v53 = vrot.slane %v1037_v33, 1 }
  0x66   : > { %v751_v56 = vsel %vm6631_vm8, %v665_v35, %v750_v39  ;;  %v1044_v59 = vrot.slane %v1042_v54, 1  ;;  %v1049_v60 = vshll.u32 %v6901_v22, 16  ;;  %v1054_v61 = vshll.u32 %v6864_v38, 16 }
  0x67   : > { %v674_v30 = vsel %vm6619_vm7, %v666_v40, %v673_v42  ;;  %v755_v57 = vsel %vm6584_vm3, %v675_v46, %v754_v52  ;;  %752 = vst [vmem:[#allocation2 + $0x6c] sm:$0xf] %v751_v56  ;;  %v1040_v51 = vor.u32 %v1039_v53, %v1035_v63  ;;  %v1059_v63 = vshrl.u32 %v6907_v47, 16 }
  0x68   : > { %753 = vst [vmem:[#allocation2 + $0x70] sm:$0xf] %v674_v30  ;;  %756 = vst [vmem:[#allocation2 + $0x74] sm:$0x1] %v755_v57  ;;  %v834_v3 = vld [vmem:[#allocation2 + $0x64] sm:$0xf] }
  0x69   : > { %v833_v62 = vld [vmem:[#allocation2 + $0x60] sm:$0xf]  ;;  %v6926_v4 = vsel %vm973_vm9, %v1040_v51, %v1044_v59  ;;  %v1051_v8 = vrot.slane %v1049_v60, 1  ;;  %v1056_v10 = vrot.slane %v1054_v61, 1  ;;  %v1061_v38 = vshll.u32 %v6907_v47, 16 }
  0x6a   : > { %v861_v0 = vld [vmem:[#allocation2 + $0x60] sm:$0xe]  ;;  %v6928_v11 = vcombine.low %v833_v62, %v834_v3  ;;  %v6223_v12 = vld [vmem:[#allocation2 + $0x68] ss:$0 sps:$4 sm:$0x11]   ;;  %1479 = vmatprep.mubr.bf16.mxu0 %v6926_v4  ;;  %v1066_v15 = vshll.u32 %v6890_v5, 16 }
  0x6b   : > { %v4971_v13 = vcombine.low %v861_v0, %v834_v3  ;;  %1480 = vmatmul.mubr.bf16.gmra.mxu0 %v6871_v43  ;;  %v1052_v14 = vor.u32 %v1051_v8, %v1047_v58  ;;  %v1192_v16 = vrot.slane %v6223_v12, 1  ;;  %v1063_v17 = vrot.slane %v1061_v38, 1  ;;  %v6243_v62 = vld [vmem:[%s8066_s2 + $0x230] sm:$0xff]  }
  0x6c   : > { %v1068_v20 = vrot.slane %v1066_v15, 1  ;;  %v1073_v23 = vshll.u32 %v6928_v11, 16  ;;  %v1078_v40 = vshll.u32 %v6223_v12, 16  ;;  %v1071_v46 = vshrl.u32 %v6928_v11, 16  ;;  %v418_v12 = vld [vmem:[#allocation2 + $0x78] sm:$0x1] }
  0x6d   : > { %v1191_v7 = vrot.slane %v4971_v13, 1  ;;  %v6936_v18 = vsel %vm973_vm9, %v1052_v14, %v1056_v10  ;;  %v1064_v32 = vor.u32 %v1063_v17, %v1059_v63  ;;  %v6249_v10 = vld [vmem:[%s8066_s2 + $0x220] sm:$0xff]   ;;  %v419_v13 = vsel %vm6584_vm3, 0, %v418_v12  ;;  %v4935_v63 = vld [vmem:[%s6574_s21 + $0x10] sm:$0xf] }
  0x6e   : > { %v835_v27 = vld [vmem:[#allocation2 + $0x6c] sm:$0xf]  ;;  %1487 = vmatprep.mubr.bf16.mxu0 %v6936_v18  ;;  %v1075_v53 = vrot.slane %v1073_v23, 1  ;;  %v1080_v56 = vrot.slane %v1078_v40, 1  ;;  %v4936_v38 = vld [vmem:[%s6574_s21 + $0x14] sm:$0xf] }
  0x6f   : > { %v6940_v26 = vsel %vm1166_vm10, %v1191_v7, %v1192_v16  ;;  %v836_v31 = vld [vmem:[#allocation2 + $0x70] sm:$0xf]  ;;  %v862_v5 = vld [vmem:[#allocation2 + $0x6c] sm:$0xe]  ;;  %v6948_v52 = vsel %vm973_vm9, %v1064_v32, %v1068_v20  ;;  %420 = vst [vmem:[#allocation2 + $0x78] sm:$0x1] %v419_v13 }
  0x70   : > { %5944 = vmatprep.mubr.bf16.mxu1 %v6940_v26  ;;  %v6944_v33 = vcombine.low %v835_v27, %v836_v31  ;;  %v6226_v35 = vld [vmem:[#allocation2 + $0x74] ss:$0 sps:$4 sm:$0x11]   ;;  %v4972_v42 = vcombine.low %v862_v5, %v836_v31  ;;  %v1076_v60 = vor.u32 %v1075_v53, %v1071_v46  ;;  %v763_v14 = vshrl.u32 %v4935_v63, 16  ;;  %v6252_v23 = vld [vmem:[%s8066_s2 + $0x218] sm:$0xff]   ;;  %v6259_v13 = vld [vmem:[%s8066_s2 + $0x208] sm:$0xff]  }
  0x71   : > { %v1195_v39 = vrot.slane %v6226_v35, 1  ;;  %v1090_v59 = vshll.u32 %v6226_v35, 16  ;;  %v766_v15 = vshll.u32 %v4935_v63, 16  ;;  %v771_v7 = vshrl.u32 %v4936_v38, 16  ;;  %v421_v35 = vld [vmem:[#allocation2 + $0x84] sm:$0x1] }
  0x72   : > { %v1085_v54 = vshll.u32 %v6944_v33, 16  ;;  %v1194_v30 = vrot.slane %v4972_v42, 1  ;;  %v1083_v57 = vshrl.u32 %v6944_v33, 16  ;;  %v6960_v61 = vsel %vm973_vm9, %v1076_v60, %v1080_v56  ;;  %v459_v46 = vld [vmem:[#allocation2 + $0x8c] sm:$0x1] }
  0x73   : > { %1488 = vmatmul.mubr.bf16.gmra.mxu0 %v6901_v22  ;;  %v1092_v3 = vrot.slane %v1090_v59, 1  ;;  %v774_v16 = vshll.u32 %v4936_v38, 16  ;;  %v765_v17 = vrot.slane %v763_v14, 7  ;;  %v773_v20 = vrot.slane %v771_v7, 7  ;;  %v4938_v60 = vld [vmem:[%s6574_s21 + $0x1c] sm:$0xf] }
  0x74   : > { %v6954_v58 = vsel %vm1166_vm10, %v1194_v30, %v1195_v39  ;;  %1495 = vmatprep.mubr.bf16.mxu0 %v6948_v52  ;;  %v1087_v51 = vrot.slane %v1085_v54, 1  ;;  %v422_v42 = vsel %vm6584_vm3, 0, %v421_v35  ;;  %v4937_v39 = vld [vmem:[%s6574_s21 + $0x18] sm:$0xf]  ;;  %v460_v30 = vsel %vm6593_vm5, 0, %v459_v46  ;;  %v6239_v38 = vld [vmem:[%s8066_s2 + $0x1f0] sm:$0xff]  }
  0x75   : > { %5945 = vmatmul.mubr.bf16.gmra.mxu1 %v6954_v58  ;;  %v768_v27 = vor.u32 %v766_v15, %v765_v17  ;;  %v769_v31 = vrot.slane %v765_v17, 4  ;;  %v776_v32 = vor.u32 %v774_v16, %v773_v20  ;;  %v778_v5 = vrot.slane %v773_v20, 4  ;;  %423 = vst [vmem:[#allocation2 + $0x84] sm:$0x1] %v422_v42  ;;  %461 = vst [vmem:[#allocation2 + $0x8c] sm:$0x1] %v460_v30 }
  0x76   : > { %1878 = vmatprep.mubr.bf16.mxu1 %v6702_v37  ;;  %v1088_v0 = vor.u32 %v1087_v51, %v1083_v57  ;;  %v6246_v37 = vld [vmem:[%s8066_s2 + $0x228] sm:$0xff]   ;;  %v803_v53 = vld [vmem:[#allocation2 + $0x78] sm:$0xf]  ;;  %v780_v56 = vshrl.u32 %v4937_v39, 16  ;;  %v6254_v57 = vld [vmem:[%s8066_s2 + $0x210] sm:$0xff]  }
  0x77   : > { %v777_v40 = vsel %vm6619_vm7, %v769_v31, %v776_v32  ;;  %v804_v51 = vsel %vm6631_vm8, %v768_v27, %v803_v53  ;;  %v6262_v17 = vld [vmem:[%s8066_s2 + $0x200] sm:$0xff]   ;;  %v6241_v27 = vld [vmem:[%s8066_s2 + $0x1e8] sm:$0xff]   ;;  %v6247_v35 = vld [vmem:[%s8066_s2 + $0x1d8] sm:$0xff]  }
  0x78   : > { %v6974_v8 = vsel %vm973_vm9, %v1088_v0, %v1092_v3  ;;  %806 = vst [vmem:[#allocation2 + $0x7c] sm:$0xf] %v777_v40  ;;  %805 = vst [vmem:[#allocation2 + $0x78] sm:$0xf] %v804_v51  ;;  %v782_v0 = vrot.slane %v780_v56, 7  ;;  %v788_v3 = vshrl.u32 %v4938_v60, 16 }
  0x79   : > { %v6242_v31 = vld [vmem:[%s8066_s2 + $0x1a8] sm:$0xff]   ;;  %v6244_v32 = vld [vmem:[%s8066_s2 + $0x1e0] sm:$0xff]   ;;  %v6248_v40 = vld [vmem:[%s8066_s2 + $0x198] sm:$0xff]  }
  0x7a   : > { %v786_v12 = vrot.slane %v782_v0, 4  ;;  %v6250_v42 = vld [vmem:[%s8066_s2 + $0x1d0] sm:$0xff]   ;;  %v6257_v56 = vld [vmem:[%s8066_s2 + $0x188] sm:$0xff]   ;;  %v6260_v51 = vld [vmem:[%s8066_s2 + $0x1c0] sm:$0xff]  }
  0x7b   : > { %1496 = vmatmul.mubr.bf16.gmra.mxu0 %v6907_v47  ;;  %v6251_v46 = vld [vmem:[%s8066_s2 + $0x190] sm:$0xff]  }
  0x7c   : > { %1503 = vmatprep.mubr.bf16.mxu0 %v6960_v61  ;;  %v810_v14 = vld [vmem:[#allocation2 + $0x84] sm:$0xf]  ;;  %v814_v16 = vld [vmem:[#allocation2 + $0x8c] sm:$0x1] }
  0x7d   : > { %1879 = vmatmul.mubr.bf16.vlgmr.msra.gmra.mxu1 %v6666_v1  ;;  %v456_v1 = vld [vmem:[#allocation2 + $0x80] sm:$0x1] }
  0x7e   : > { %1886 = vmatprep.mubr.bf16.mxu1 %v6735_v9  ;;  %5985 = vmatpush3.bf16.msra.mxu1 %v6920_v36  ;;  %v457_v36 = vsel %vm6593_vm5, 0, %v456_v1  ;;  %v790_v1 = vrot.slane %v788_v3, 7  ;;  %v6261_v3 = vld [vmem:[%s8066_s2 + $0x180] sm:$0xff]  }
  0x7f   : > { %5986 = vmatprep.subr.bf16.mxu1 %v6243_v62  ;;  %458 = vst [vmem:[#allocation2 + $0x80] sm:$0x1] %v457_v36  ;;  %v863_v53 = vld [vmem:[#allocation2 + $0x78] sm:$0xe] }
  0x80   : > { %v795_v63 = vrot.slane %v790_v1, 4  ;;  %v837_v30 = vld [vmem:[#allocation2 + $0x78] sm:$0xf] }
  0x82   : > { %5987 = vmatpush3.bf16.msra.mxu1 %v6243_v62  ;;  %v783_v62 = vshll.u32 %v4937_v39, 16  ;;  %v815_v20 = vsel %vm6584_vm3, %v795_v63, %v814_v16  ;;  %v6253_v39 = vld [vmem:[%s8066_s2 + $0x1c8] sm:$0xff]  }
  0x83   : > { %1504 = vmatmul.mubr.bf16.gmra.mxu0 %v6928_v11  ;;  %5988 = vmatprep.subr.bf16.mxu1 %v6246_v37  ;;  %816 = vst [vmem:[#allocation2 + $0x8c] sm:$0x1] %v815_v20 }
  0x84   : > { %1511 = vmatprep.mubr.bf16.mxu0 %v6974_v8 }
  0x85   : > { %1887 = vmatmul.mubr.bf16.gmra.mxu1 %v6690_v29 }
  0x86   : > { %1894 = vmatprep.mubr.bf16.mxu1 %v6806_v21  ;;  %5989 = vmatpush3.bf16.msra.mxu1 %v6246_v37  ;;  %v807_v54 = vld [vmem:[#allocation2 + $0x80] sm:$0x1]  ;;  %v791_v37 = vshll.u32 %v4938_v60, 16 }
  0x87   : > { %5990 = vmatprep.subr.bf16.mxu1 %v6249_v10  ;;  %v808_v59 = vsel %vm6584_vm3, %v778_v5, %v807_v54  ;;  %v6245_v5 = vld [vmem:[%s8066_s2 + $0x1a0] sm:$0xff]   ;;  %v838_v54 = vld [vmem:[#allocation2 + $0x7c] sm:$0xf] }
  0x88   : > { %809 = vst [vmem:[#allocation2 + $0x80] sm:$0x1] %v808_v59  ;;  %v793_v36 = vor.u32 %v791_v37, %v790_v1  ;;  %v7078_v60 = vcombine.low %v837_v30, %v838_v54 }
  0x8a   : > { %5991 = vmatpush3.bf16.msra.mxu1 %v6249_v10  ;;  %v785_v10 = vor.u32 %v783_v62, %v782_v0  ;;  %v794_v15 = vsel %vm6619_vm7, %v786_v12, %v793_v36  ;;  %v1097_v37 = vshll.u32 %v7078_v60, 16  ;;  %v1095_v12 = vshrl.u32 %v7078_v60, 16 }
  0x8b   : > { %1512 = vmatmul.mubr.bf16.gmra.mxu0 %v6944_v33  ;;  %5992 = vmatprep.subr.bf16.mxu1 %v6252_v23  ;;  %813 = vst [vmem:[#allocation2 + $0x88] sm:$0xf] %v794_v15 }
  0x8c   : > { %5964 = vmatprep.mubr.bf16.mxu0 %v6688_v25  ;;  %v6237_v25 = vld [vmem:[%s8066_s2 + $0x1b8] sm:$0xff]   ;;  %v811_v7 = vsel %vm6631_vm8, %v785_v10, %v810_v14  ;;  %v1099_v1 = vrot.slane %v1097_v37, 1 }
  0x8d   : > { %1895 = vmatmul.mubr.bf16.gmra.mxu1 %v6706_v44  ;;  %812 = vst [vmem:[#allocation2 + $0x84] sm:$0xf] %v811_v7 }
  0x8e   : > { %1902 = vmatprep.mubr.bf16.mxu1 %v6868_v41  ;;  %5993 = vmatpush3.bf16.msra.mxu1 %v6252_v23  ;;  %v6240_v23 = vld [vmem:[%s8066_s2 + $0x1b0] sm:$0xff]  }
  0x8f   : > { %5994 = vmatprep.subr.bf16.mxu1 %v6254_v57  ;;  %v6256_v59 = vld [vmem:[#allocation2 + $0x80] ss:$0 sps:$4 sm:$0x11]  }
  0x90   : > { %v1198_v0 = vrot.slane %v6256_v59, 1 }
  0x92   : > { %5995 = vmatpush3.bf16.msra.mxu1 %v6254_v57  ;;  %v4973_v57 = vcombine.low %v863_v53, %v838_v54 }
  0x93   : > { %5965 = vmatmul.mubr.bf16.vlgmr.msra.gmra.mxu0 %v6715_v49  ;;  %5996 = vmatprep.subr.bf16.mxu1 %v6259_v13 }
  0x94   : > { %5579 = vmatpush3.bf16.msra.mxu0 %v6237_v25  ;;  %5968 = vmatprep.mubr.bf16.mxu0 %v6748_v19  ;;  %v1197_v62 = vrot.slane %v4973_v57, 1  ;;  %v1100_v25 = vor.u32 %v1099_v1, %v1095_v12 }
  0x95   : > { %1903 = vmatmul.mubr.bf16.gmra.mxu1 %v6824_v48  ;;  %5580 = vmatprep.subr.bf16.mxu0 %v6239_v38 }
  0x96   : > { %1910 = vmatprep.mubr.bf16.mxu1 %v6926_v4  ;;  %5997 = vmatpush3.bf16.msra.mxu1 %v6259_v13  ;;  %v1199_v10 = vsel %vm1166_vm10, %v1197_v62, %v1198_v0  ;;  %v1102_v13 = vshll.u32 %v6256_v59, 16 }
  0x97   : > { %5998 = vmatprep.subr.bf16.mxu1 %v6262_v17 }
  0x98   : > { %5581 = vmatpush3.bf16.msra.mxu0 %v6240_v23  ;;  %v1104_v36 = vrot.slane %v1102_v13, 1 }
  0x99   : > { %5582 = vmatprep.subr.bf16.mxu0 %v6241_v27 }
  0x9a   : > { %5999 = vmatpush3.bf16.msra.mxu1 %v6262_v17  ;;  %v1105_v63 = vsel %vm973_vm9, %v1100_v25, %v1104_v36  ;;  %v2705_v25 = vld [vmem:[#allocation3] sm:$0x1] }
  0x9b   : > { %5969 = vmatmul.mubr.bf16.gmra.mxu0 %v6827_v50 }
  0x9c   : > { %5583 = vmatpush3.bf16.msra.mxu0 %v6242_v31  ;;  %5972 = vmatprep.mubr.bf16.mxu0 %v6844_v6 }
  0x9d   : > { %1911 = vmatmul.mubr.bf16.gmra.mxu1 %v6871_v43  ;;  %5584 = vmatprep.subr.bf16.mxu0 %v6244_v32 }
  0x9e   : > { %1918 = vmatprep.mubr.bf16.mxu1 %v6936_v18 }
  0xa0   : > { %5585 = vmatpush3.bf16.msra.mxu0 %v6245_v5 }
  0xa1   : > { %5586 = vmatprep.subr.bf16.mxu0 %v6247_v35 }
  0xa3   : > { %5973 = vmatmul.mubr.bf16.gmra.mxu0 %v6886_v2 }
  0xa4   : > { %5587 = vmatpush3.bf16.msra.mxu0 %v6248_v40  ;;  %5976 = vmatprep.mubr.bf16.mxu0 %v6904_v34 }
  0xa5   : > { %1919 = vmatmul.mubr.bf16.gmra.mxu1 %v6901_v22  ;;  %5588 = vmatprep.subr.bf16.mxu0 %v6250_v42 }
  0xa6   : > { %1926 = vmatprep.mubr.bf16.mxu1 %v6948_v52 }
  0xa8   : > { %5589 = vmatpush3.bf16.msra.mxu0 %v6251_v46 }
  0xa9   : > { %5590 = vmatprep.subr.bf16.mxu0 %v6253_v39 }
  0xab   : > { %5977 = vmatmul.mubr.bf16.gmra.mxu0 %v6940_v26 }
  0xac   : > { %5980 = vmatprep.mubr.bf16.mxu0 %v6954_v58  ;;  %5591 = vmatpush3.bf16.msra.mxu0 %v6257_v56 }
  0xad   : > { %1927 = vmatmul.mubr.bf16.gmra.mxu1 %v6907_v47  ;;  %5592 = vmatprep.subr.bf16.mxu0 %v6260_v51 }
  0xae   : > { %1934 = vmatprep.mubr.bf16.mxu1 %v6960_v61 }
  0xb0   : > { %5593 = vmatpush3.bf16.msra.mxu0 %v6261_v3 }
  0xb3   : > { %5981 = vmatmul.mubr.bf16.gmra.mxu0 %v1199_v10 }
  0xb4   : > { %2357 = vmatprep.mubr.bf16.mxu0 %v6735_v9 }
  0xb5   : > { %1935 = vmatmul.mubr.bf16.gmra.mxu1 %v6928_v11 }
  0xb6   : > { %1942 = vmatprep.mubr.bf16.mxu1 %v6974_v8 }
  0xbb   : > { %2358 = vmatmul.mubr.bf16.vlgmr.msra.gmra.mxu0 %v6690_v29  ;;  %v840_v29 = vld [vmem:[#allocation2 + $0x88] sm:$0xf] }
  0xbc   : > { %2365 = vmatprep.mubr.bf16.mxu0 %v6806_v21 }
  0xbd   : > { %1943 = vmatmul.mubr.bf16.gmra.mxu1 %v6944_v33 }
  0xbe   : > { %1950 = vmatprep.mubr.bf16.mxu1 %v1105_v63 }
  0xc3   : > { %2366 = vmatmul.mubr.bf16.gmra.mxu0 %v6706_v44  ;;  %v864_v44 = vld [vmem:[#allocation2 + $0x84] sm:$0xe] }
  0xc4   : > { %2373 = vmatprep.mubr.bf16.mxu0 %v6868_v41  ;;  %v4974_v9 = vcombine.low %v864_v44, %v840_v29 }
  0xc5   : > { %1951 = vmatmul.mubr.bf16.gmra.mxu1 %v7078_v60 }
  0xc6   : > { %6000 = vmatprep.mubr.bf16.mxu1 %v6715_v49  ;;  %v6264_v49 = vld [vmem:[#allocation2 + $0x8c] ss:$0 sps:$4 sm:$0x11]   ;;  %v1200_v21 = vrot.slane %v4974_v9, 1  ;;  %v2735_v9 = vld [vmem:[#allocation3 + $0x8] sm:$0x1] }
  0xcb   : > { %2374 = vmatmul.mubr.bf16.gmra.mxu0 %v6824_v48  ;;  %v1201_v48 = vrot.slane %v6264_v49, 1 }
  0xcc   : > { %2381 = vmatprep.mubr.bf16.mxu0 %v6926_v4 }
  0xcd   : > { %6001 = vmatmul.mubr.bf16.vlgmr.msra.gmra.mxu1 %v6748_v19  ;;  %v839_v19 = vld [vmem:[#allocation2 + $0x84] sm:$0xf] }
  0xce   : > { %6004 = vmatprep.mubr.bf16.mxu1 %v6827_v50  ;;  %v4950_v50 = vcombine.low %v839_v19, %v840_v29 }
  0xd0   : > { %v1109_v41 = vshll.u32 %v4950_v50, 16 }
  0xd3   : > { %2382 = vmatmul.mubr.bf16.gmra.mxu0 %v6871_v43  ;;  %v1107_v43 = vshrl.u32 %v4950_v50, 16 }
  0xd4   : > { %2389 = vmatprep.mubr.bf16.mxu0 %v6936_v18 }
  0xd5   : > { %6005 = vmatmul.mubr.bf16.gmra.mxu1 %v6844_v6  ;;  %v1202_v6 = vsel %vm1166_vm10, %v1200_v21, %v1201_v48  ;;  %v2736_v21 = vsel %vm6593_vm5, 0, %v2735_v9  ;;  %v2720_v9 = vld [vmem:[#allocation3 + $0x3c] sm:$0x1] }
  0xd6   : > { %6008 = vmatprep.mubr.bf16.mxu1 %v6886_v2  ;;  %v1111_v2 = vrot.slane %v1109_v41, 1  ;;  %2737 = vst [vmem:[#allocation3 + $0x8] sm:$0x1] %v2736_v21  ;;  %v2721_v21 = vsel %vm6584_vm3, 0, %v2720_v9 }
  0xd7   : > { %2722 = vst [vmem:[#allocation3 + $0x3c] sm:$0x1] %v2721_v21 }
  0xdb   : > { %2390 = vmatmul.mubr.bf16.gmra.mxu0 %v6901_v22  ;;  %v1114_v22 = vshll.u32 %v6264_v49, 16 }
  0xdc   : > { %2397 = vmatprep.mubr.bf16.mxu0 %v6948_v52 }
  0xdd   : > { %6009 = vmatmul.mubr.bf16.gmra.mxu1 %v6904_v34  ;;  %v1112_v34 = vor.u32 %v1111_v2, %v1107_v43  ;;  %v2708_v43 = vld [vmem:[#allocation3 + $0xc] sm:$0x1] }
  0xde   : > { %6012 = vmatprep.mubr.bf16.mxu1 %v6940_v26 }
  0xe3   : > { %2398 = vmatmul.mubr.bf16.gmra.mxu0 %v6907_v47  ;;  %v1116_v47 = vrot.slane %v1114_v22, 1  ;;  %v2709_v22 = vsel %vm6584_vm3, 0, %v2708_v43 }
  0xe4   : > { %2405 = vmatprep.mubr.bf16.mxu0 %v6960_v61  ;;  %2710 = vst [vmem:[#allocation3 + $0xc] sm:$0x1] %v2709_v22 }
  0xe5   : > { %6013 = vmatmul.mubr.bf16.gmra.mxu1 %v6954_v58  ;;  %v1117_v58 = vsel %vm973_vm9, %v1112_v34, %v1116_v47 }
  0xe6   : > { %6016 = vmatprep.mubr.bf16.mxu1 %v1199_v10 }
  0xeb   : > { %2406 = vmatmul.mubr.bf16.gmra.mxu0 %v6928_v11 }
  0xec   : > { %2413 = vmatprep.mubr.bf16.mxu0 %v6974_v8 }
  0xed   : > { %6017 = vmatmul.mubr.bf16.gmra.mxu1 %v1202_v6 }
  0xf3   : > { %2414 = vmatmul.mubr.bf16.gmra.mxu0 %v6944_v33 }
  0xf4   : > { %2421 = vmatprep.mubr.bf16.mxu0 %v1105_v63  ;;  %v2706_v63 = vsel %vm6584_vm3, 0, %v2705_v25 }
  0xf5   : > { %2707 = vst [vmem:[#allocation3] sm:$0x1] %v2706_v63  ;;  %v2747_v63 = vld [vmem:[#allocation3 + $0x38] sm:$0x1] }
  0xf8   : > { %v5930_v4 = vpop.f32.mrf.mxu1 }
  0xf9   : > { %v5406_v18 = vpop.f32.mrf.mxu0 }
  0xfa   : > { %v1554_v26 = vpop.f32.mrf.mxu1 }
  0xfb   : > { %v5407_v52 = vpop.f32.mrf.mxu0  ;;  %2422 = vmatmul.mubr.bf16.gmra.mxu0 %v7078_v60 }
  0xfc   : > { %v5408_v61 = vadd.f32 %v5407_v52, %v5406_v18  ;;  %v5931_v38 = vpop.f32.mrf.mxu1  ;;  %2429 = vmatprep.mubr.bf16.mxu0 %v1117_v58 }
  0xfd   : > { %v5409_v11 = vpop.f32.mrf.mxu0 }
  0xfe   : > { %v7121_v8 = vadd.f32 %v5408_v61, %v1554_v26  ;;  %v1557_v33 = vpop.f32.mrf.mxu1  ;;  %v2711_v26 = vld [vmem:[#allocation3 + $0x18] sm:$0x1] }
  0xff   : > { %v5410_v14 = vpop.f32.mrf.mxu0  ;;  %v2712_v52 = vsel %vm6584_vm3, 0, %v2711_v26 }
 0x100   : > { %v5411_v15 = vadd.f32 %v5410_v14, %v5409_v11  ;;  %2713 = vst [vmem:[#allocation3 + $0x18] sm:$0x1] %v2712_v52  ;;  %v2741_v11 = vld [vmem:[#allocation3 + $0x20] sm:$0x1] }
 0x101   : > { %v5412_v7 = vpop.f32.mrf.mxu0 }
 0x102   : > { %v7123_v16 = vadd.f32 %v5411_v15, %v1557_v33  ;;  %v5934_v23 = vpop.f32.mrf.mxu1  ;;  %v2742_v15 = vsel %vm6593_vm5, 0, %v2741_v11 }
 0x103   : > { %v5413_v17 = vpop.f32.mrf.mxu0  ;;  %2430 = vmatmul.mubr.bf16.gmra.mxu0 %v4950_v50  ;;  %2743 = vst [vmem:[#allocation3 + $0x20] sm:$0x1] %v2742_v15 }
 0x104   : > { %v5414_v20 = vadd.f32 %v5413_v17, %v5412_v7  ;;  %v1570_v35 = vpop.f32.mrf.mxu1 }
 0x105   : > { %v5415_v27 = vpop.f32.mrf.mxu0 }
 0x106   : > { %v7125_v31 = vadd.f32 %v5930_v4, %v5414_v20  ;;  %v5935_v53 = vpop.f32.mrf.mxu1  ;;  %v2738_v4 = vld [vmem:[#allocation3 + $0x14] sm:$0x1] }
 0x107   : > { %v5416_v32 = vpop.f32.mrf.mxu0  ;;  %v2739_v18 = vsel %vm6593_vm5, 0, %v2738_v4 }
 0x108   : > { %v5417_v5 = vadd.f32 %v5416_v32, %v5415_v27  ;;  %v1573_v51 = vpop.f32.mrf.mxu1  ;;  %2740 = vst [vmem:[#allocation3 + $0x14] sm:$0x1] %v2739_v18  ;;  %v2714_v27 = vld [vmem:[#allocation3 + $0x24] sm:$0x1]  ;;  %v2744_v32 = vld [vmem:[#allocation3 + $0x2c] sm:$0x1] }
 0x109   : > { %v5418_v40 = vpop.f32.mrf.mxu0 }
 0x10a   : > { %v7127_v42 = vadd.f32 %v5931_v38, %v5417_v5 }
 0x10b   : > { %v5419_v46 = vpop.f32.mrf.mxu0 }
 0x10c   : > { %v5420_v39 = vadd.f32 %v5419_v46, %v5418_v40  ;;  %v2745_v40 = vsel %vm6593_vm5, 0, %v2744_v32 }
 0x10d   : > { %v5421_v54 = vpop.f32.mrf.mxu0  ;;  %2746 = vst [vmem:[#allocation3 + $0x2c] sm:$0x1] %v2745_v40 }
 0x10e   : > { %v7129_v30 = vadd.f32 %v5420_v39, %v1570_v35  ;;  %v2715_v35 = vsel %vm6584_vm3, 0, %v2714_v27 }
 0x10f   : > { %v5422_v56 = vpop.f32.mrf.mxu0  ;;  %2716 = vst [vmem:[#allocation3 + $0x24] sm:$0x1] %v2715_v35 }
 0x110   : > { %v5423_v57 = vadd.f32 %v5422_v56, %v5421_v54 }
 0x111   : > { %v5424_v59 = vpop.f32.mrf.mxu0 }
 0x112   : > { %v7131_v60 = vadd.f32 %v5423_v57, %v1573_v51  ;;  %v2717_v57 = vld [vmem:[#allocation3 + $0x30] sm:$0x1] }
 0x113   : > { %v5425_v62 = vpop.f32.mrf.mxu0 }
 0x114   : > { %v5426_v0 = vadd.f32 %v5425_v62, %v5424_v59  ;;  %v2718_v62 = vsel %vm6584_vm3, 0, %v2717_v57 }
 0x115   : > { %v5427_v3 = vpop.f32.mrf.mxu0  ;;  %2719 = vst [vmem:[#allocation3 + $0x30] sm:$0x1] %v2718_v62 }
 0x116   : > { %v7133_v37 = vadd.f32 %v5934_v23, %v5426_v0  ;;  %v5938_v12 = vpop.f32.mrf.mxu1 }
 0x117   : > { %v5428_v10 = vpop.f32.mrf.mxu0 }
 0x118   : > { %v5429_v1 = vadd.f32 %v5428_v10, %v5427_v3  ;;  %v1586_v36 = vpop.f32.mrf.mxu1 }
 0x11a   : > { %v7135_v13 = vadd.f32 %v5935_v53, %v5429_v1  ;;  %v5939_v44 = vpop.f32.mrf.mxu1 }
 0x11c   : > { %v5430_v29 = vpop.f32.mrf.mxu0  ;;  %v1589_v50 = vpop.f32.mrf.mxu1 }
 0x11e   : > { %v5431_v49 = vpop.f32.mrf.mxu0 }
 0x11f   : > { %v5432_v19 = vadd.f32 %v5431_v49, %v5430_v29  ;;  %v2748_v49 = vsel %vm6593_vm5, 0, %v2747_v63 }
 0x120   : > { %v5433_v48 = vpop.f32.mrf.mxu0  ;;  %2749 = vst [vmem:[#allocation3 + $0x38] sm:$0x1] %v2748_v49 }
 0x121   : > { %v7141_v6 = vadd.f32 %v5432_v19, %v1586_v36 }
 0x122   : > { %v5434_v41 = vpop.f32.mrf.mxu0 }
 0x123   : > { %v5435_v2 = vadd.f32 %v5434_v41, %v5433_v48  ;;  %v2750_v41 = vld [vmem:[#allocation3 + $0x44] sm:$0x1] }
 0x124   : > { %v2751_v22 = vsel %vm6593_vm5, 0, %v2750_v41 }
 0x125   : > { %v5942_v34 = vpop.f32.mrf.mxu1  ;;  %v7145_v47 = vadd.f32 %v5435_v2, %v1589_v50  ;;  %2752 = vst [vmem:[#allocation3 + $0x44] sm:$0x1] %v2751_v22 }
 0x127   : > { %v1602_v58 = vpop.f32.mrf.mxu1 }
 0x129   : > { %v5943_v38 = vpop.f32.mrf.mxu1 }
 0x12b   : > { %v5436_v61 = vpop.f32.mrf.mxu0  ;;  %v1605_v20 = vpop.f32.mrf.mxu1 }
 0x12d   : > { %v5437_v14 = vpop.f32.mrf.mxu0 }
 0x12e   : > { %v5438_v33 = vadd.f32 %v5437_v14, %v5436_v61  ;;  %v2723_v14 = vld [vmem:[#allocation3 + $0x48] sm:$0x1] }
 0x12f   : > { %v5439_v7 = vpop.f32.mrf.mxu0 }
 0x130   : > { %v7153_v17 = vadd.f32 %v5938_v12, %v5438_v33 }
 0x131   : > { %v5440_v23 = vpop.f32.mrf.mxu0 }
 0x132   : > { %v5441_v5 = vadd.f32 %v5440_v23, %v5439_v7  ;;  %v2724_v7 = vsel %vm6584_vm3, 0, %v2723_v14 }
 0x133   : > { %v5442_v46 = vpop.f32.mrf.mxu0  ;;  %2725 = vst [vmem:[#allocation3 + $0x48] sm:$0x1] %v2724_v7 }
 0x134   : > { %v7159_v39 = vadd.f32 %v5939_v44, %v5441_v5  ;;  %v2753_v5 = vld [vmem:[#allocation3 + $0x50] sm:$0x1] }
 0x135   : > { %v7161_v53 = vpop.f32.mrf.mxu1  ;;  %v5443_v54 = vpop.f32.mrf.mxu0 }
 0x136   : > { %v5444_v56 = vadd.f32 %v5443_v54, %v5442_v46  ;;  %v2726_v46 = vld [vmem:[#allocation3 + $0x54] sm:$0x1] }
 0x137   : > { %v1618_v51 = vpop.f32.mrf.mxu1  ;;  %v5445_v59 = vpop.f32.mrf.mxu0 }
 0x138   : > { %v7165_v0 = vadd.f32 %v5444_v56, %v1602_v58  ;;  %v2727_v56 = vsel %vm6584_vm3, 0, %v2726_v46 }
 0x139   : > { %v7167_v3 = vpop.f32.mrf.mxu1  ;;  %v5446_v10 = vpop.f32.mrf.mxu0  ;;  %2728 = vst [vmem:[#allocation3 + $0x54] sm:$0x1] %v2727_v56 }
 0x13a   : > { %v5447_v12 = vadd.f32 %v5446_v10, %v5445_v59 }
 0x13b   : > { %v1621_v1 = vpop.f32.mrf.mxu1  ;;  %v5448_v25 = vpop.f32.mrf.mxu0 }
 0x13c   : > { %v7169_v36 = vadd.f32 %v5447_v12, %v1605_v20 }
 0x13d   : > { %v5500_v29 = vpop.f32.mrf.mxu1  ;;  %v5449_v44 = vpop.f32.mrf.mxu0 }
 0x13e   : > { %v5450_v19 = vadd.f32 %v5449_v44, %v5448_v25  ;;  %v2756_v44 = vld [vmem:[#allocation3 + $0x5c] sm:$0x1] }
 0x13f   : > { %v5501_v48 = vpop.f32.mrf.mxu1  ;;  %v5451_v50 = vpop.f32.mrf.mxu0 }
 0x140   : > { %v5502_v43 = vadd.f32 %v5501_v48, %v5500_v29  ;;  %v7175_v2 = vadd.f32 %v5942_v34, %v5450_v19  ;;  %v2757_v19 = vsel %vm6593_vm5, 0, %v2756_v44 }
 0x141   : > { %v5503_v4 = vpop.f32.mrf.mxu1  ;;  %v5452_v18 = vpop.f32.mrf.mxu0  ;;  %2758 = vst [vmem:[#allocation3 + $0x5c] sm:$0x1] %v2757_v19 }
 0x142   : > { %v5453_v26 = vadd.f32 %v5452_v18, %v5451_v50 }
 0x143   : > { %v5504_v52 = vpop.f32.mrf.mxu1  ;;  %v5454_v58 = vpop.f32.mrf.mxu0 }
 0x144   : > { %v5505_v61 = vadd.f32 %v5504_v52, %v5503_v4  ;;  %v7179_v11 = vadd.f32 %v5943_v38, %v5453_v26  ;;  %v2754_v38 = vsel %vm6593_vm5, 0, %v2753_v5  ;;  %v2729_v26 = vld [vmem:[#allocation3 + $0x60] sm:$0x1]  ;;  %v2759_v52 = vld [vmem:[#allocation3 + $0x68] sm:$0x1] }
 0x145   : > { %v5506_v15 = vpop.f32.mrf.mxu1  ;;  %v5455_v33 = vpop.f32.mrf.mxu0  ;;  %2755 = vst [vmem:[#allocation3 + $0x50] sm:$0x1] %v2754_v38 }
 0x146   : > { %v5456_v34 = vadd.f32 %v5455_v33, %v5454_v58 }
 0x147   : > { %v5507_v20 = vpop.f32.mrf.mxu1  ;;  %v5457_v23 = vpop.f32.mrf.mxu0 }
 0x148   : > { %v5508_v27 = vadd.f32 %v5507_v20, %v5506_v15  ;;  %v7183_v32 = vadd.f32 %v5456_v34, %v1618_v51  ;;  %v2760_v15 = vsel %vm6593_vm5, 0, %v2759_v52 }
 0x149   : > { %v5509_v35 = vpop.f32.mrf.mxu1  ;;  %v5458_v40 = vpop.f32.mrf.mxu0  ;;  %2761 = vst [vmem:[#allocation3 + $0x68] sm:$0x1] %v2760_v15 }
 0x14a   : > { %v5459_v54 = vadd.f32 %v5458_v40, %v5457_v23 }
 0x14b   : > { %v5510_v57 = vpop.f32.mrf.mxu1  ;;  %v5460_v59 = vpop.f32.mrf.mxu0 }
 0x14c   : > { %v5511_v62 = vadd.f32 %v5510_v57, %v5509_v35  ;;  %v7189_v10 = vadd.f32 %v5459_v54, %v1621_v1 }
 0x14d   : > { %v5512_v51 = vpop.f32.mrf.mxu1  ;;  %v5461_v12 = vpop.f32.mrf.mxu0 }
 0x14e   : > { %v5462_v25 = vadd.f32 %v5461_v12, %v5460_v59 }
 0x14f   : > { %v5513_v63 = vpop.f32.mrf.mxu1  ;;  %v5463_v29 = vpop.f32.mrf.mxu0 }
 0x150   : > { %v5514_v49 = vadd.f32 %v5513_v63, %v5512_v51  ;;  %v7192_v9 = vadd.f32 %v7161_v53, %v5462_v25  ;;  %v2730_v53 = vsel %vm6584_vm3, 0, %v2729_v26 }
 0x151   : > { %v5515_v21 = vpop.f32.mrf.mxu1  ;;  %v5464_v48 = vpop.f32.mrf.mxu0  ;;  %2731 = vst [vmem:[#allocation3 + $0x60] sm:$0x1] %v2730_v53 }
 0x152   : > { %v5465_v50 = vadd.f32 %v5464_v48, %v5463_v29 }
 0x153   : > { %v5516_v41 = vpop.f32.mrf.mxu1  ;;  %v5966_v1 = vpop.f32.mrf.mxu0 }
 0x154   : > { %v5517_v22 = vadd.f32 %v5516_v41, %v5515_v21  ;;  %v7197_v4 = vadd.f32 %v7167_v3, %v5465_v50  ;;  %v2002_v18 = vadd.f32 %v5966_v1, %v5508_v27 }
 0x155   : > { %v5518_v58 = vpop.f32.mrf.mxu1  ;;  %v1993_v14 = vpop.f32.mrf.mxu0 }
 0x156   : > { %v7204_v33 = vadd.f32 %v2002_v18, %v7125_v31  ;;  %v1994_v7 = vadd.f32 %v5502_v43, %v1993_v14  ;;  %v2732_v31 = vld [vmem:[#allocation3 + $0x6c] sm:$0x1] }
 0x157   : > { %v5519_v34 = vpop.f32.mrf.mxu1  ;;  %v5967_v3 = vpop.f32.mrf.mxu0  ;;  %v2733_v59 = vsel %vm6584_vm3, 0, %v2732_v31 }
 0x158   : > { %v5520_v20 = vadd.f32 %v5519_v34, %v5518_v58  ;;  %v7207_v23 = vadd.f32 %v1994_v7, %v7121_v8  ;;  %v2005_v27 = vadd.f32 %v5967_v3, %v5511_v62  ;;  %2734 = vst [vmem:[#allocation3 + $0x6c] sm:$0x1] %v2733_v59  ;;  %v2762_v62 = vld [vmem:[#allocation3 + $0x74] sm:$0x1] }
 0x159   : > { %v5521_v5 = vpop.f32.mrf.mxu1  ;;  %v1996_v35 = vpop.f32.mrf.mxu0 }
 0x15a   : > { %v7210_v40 = vadd.f32 %v2005_v27, %v7127_v42  ;;  %v1997_v38 = vadd.f32 %v5505_v61, %v1996_v35  ;;  %v2763_v61 = vsel %vm6593_vm5, 0, %v2762_v62 }
 0x15b   : > { %v5522_v46 = vpop.f32.mrf.mxu1  ;;  %v5970_v54 = vpop.f32.mrf.mxu0  ;;  %2764 = vst [vmem:[#allocation3 + $0x74] sm:$0x1] %v2763_v61 }
 0x15c   : > { %v5523_v56 = vadd.f32 %v5522_v46, %v5521_v5  ;;  %v7213_v43 = vadd.f32 %v1997_v38, %v7123_v16  ;;  %v2018_v57 = vadd.f32 %v5970_v54, %v5520_v20 }
 0x15d   : > { %v5524_v8 = vpop.f32.mrf.mxu1  ;;  %v2009_v51 = vpop.f32.mrf.mxu0 }
 0x15e   : > { %v7218_v12 = vadd.f32 %v2018_v57, %v7133_v37  ;;  %v2010_v42 = vadd.f32 %v5514_v49, %v2009_v51 }
 0x15f   : > { %v5525_v25 = vpop.f32.mrf.mxu1  ;;  %v5971_v63 = vpop.f32.mrf.mxu0 }
 0x160   : > { %v5526_v16 = vadd.f32 %v5525_v25, %v5524_v8  ;;  %v7223_v29 = vadd.f32 %v2010_v42, %v7129_v30  ;;  %v2021_v44 = vadd.f32 %v5971_v63, %v5523_v56 }
 0x161   : > { %v5527_v19 = vpop.f32.mrf.mxu1  ;;  %v2012_v21 = vpop.f32.mrf.mxu0 }
 0x162   : > { %v7226_v48 = vadd.f32 %v2021_v44, %v7135_v13  ;;  %v2013_v50 = vadd.f32 %v5517_v22, %v2012_v21 }
 0x163   : > { %v5528_v37 = vpop.f32.mrf.mxu1  ;;  %v5974_v41 = vpop.f32.mrf.mxu0 }
 0x164   : > { %v5529_v49 = vadd.f32 %v5528_v37, %v5527_v19  ;;  %v7229_v28 = vadd.f32 %v2013_v50, %v7131_v60 }
 0x165   : > { %v5530_v1 = vpop.f32.mrf.mxu1  ;;  %v2025_v18 = vpop.f32.mrf.mxu0 }
 0x166   : > { %v2026_v26 = vadd.f32 %v5526_v16, %v2025_v18 }
 0x167   : > { %v5531_v52 = vpop.f32.mrf.mxu1  ;;  %v5975_v58 = vpop.f32.mrf.mxu0 }
 0x168   : > { %v5532_v30 = vadd.f32 %v5531_v52, %v5530_v1  ;;  %v7232_v14 = vadd.f32 %v2026_v26, %v7141_v6 }
 0x169   : > { %v5533_v53 = vpop.f32.mrf.mxu1  ;;  %v2028_v15 = vpop.f32.mrf.mxu0 }
 0x16a   : > { %v2034_v13 = vadd.f32 %v5974_v41, %v5532_v30  ;;  %v2029_v7 = vadd.f32 %v5529_v49, %v2028_v15 }
 0x16b   : > { %v5534_v22 = vpop.f32.mrf.mxu1  ;;  %v5978_v34 = vpop.f32.mrf.mxu0 }
 0x16c   : > { %v5535_v3 = vadd.f32 %v5534_v22, %v5533_v53  ;;  %v7235_v20 = vadd.f32 %v2034_v13, %v7153_v17  ;;  %v7238_v60 = vadd.f32 %v2029_v7, %v7145_v47 }
 0x16d   : > { %v5536_v27 = vpop.f32.mrf.mxu1  ;;  %v2041_v5 = vpop.f32.mrf.mxu0 }
 0x16e   : > { %v2037_v35 = vadd.f32 %v5975_v58, %v5535_v3 }
 0x16f   : > { %v5537_v38 = vpop.f32.mrf.mxu1  ;;  %v5979_v46 = vpop.f32.mrf.mxu0 }
 0x170   : > { %v5538_v6 = vadd.f32 %v5537_v38, %v5536_v27  ;;  %v7241_v54 = vadd.f32 %v2037_v35, %v7159_v39 }
 0x171   : > { %v5539_v31 = vpop.f32.mrf.mxu1  ;;  %v2044_v56 = vpop.f32.mrf.mxu0 }
 0x172   : > { %v2042_v57 = vadd.f32 %v5538_v6, %v2041_v5 }
 0x173   : > { %v5540_v59 = vpop.f32.mrf.mxu1  ;;  %v5982_v8 = vpop.f32.mrf.mxu0 }
 0x174   : > { %v5541_v51 = vadd.f32 %v5540_v59, %v5539_v31  ;;  %v7244_v17 = vadd.f32 %v2042_v57, %v7165_v0 }
 0x175   : > { %v5542_v47 = vpop.f32.mrf.mxu1  ;;  %v2057_v62 = vpop.f32.mrf.mxu0 }
 0x176   : > { %v2045_v42 = vadd.f32 %v5541_v51, %v2044_v56 }
 0x177   : > { %v5543_v61 = vpop.f32.mrf.mxu1  ;;  %v5983_v25 = vpop.f32.mrf.mxu0 }
 0x178   : > { %v5544_v63 = vadd.f32 %v5543_v61, %v5542_v47  ;;  %v7247_v16 = vadd.f32 %v2045_v42, %v7169_v36 }
 0x179   : > { %v5545_v39 = vpop.f32.mrf.mxu1  ;;  %v2060_v44 = vpop.f32.mrf.mxu0 }
 0x17a   : > { %v2050_v19 = vadd.f32 %v5978_v34, %v5544_v63 }
 0x17b   : > { %v5546_v21 = vpop.f32.mrf.mxu1  ;;  %v5594_v50 = vpop.f32.mrf.mxu0 }
 0x17c   : > { %v5547_v37 = vadd.f32 %v5546_v21, %v5545_v39  ;;  %v7250_v41 = vadd.f32 %v2050_v19, %v7175_v2 }
 0x17d   : > { %v5548_v0 = vpop.f32.mrf.mxu1  ;;  %v5595_v49 = vpop.f32.mrf.mxu0 }
 0x17e   : > { %v2053_v1 = vadd.f32 %v5979_v46, %v5547_v37  ;;  %v5596_v51 = vadd.f32 %v5595_v49, %v5594_v50 }
 0x17f   : > { %v5549_v18 = vpop.f32.mrf.mxu1  ;;  %v5597_v26 = vpop.f32.mrf.mxu0 }
 0x180   : > { %v5550_v52 = vadd.f32 %v5549_v18, %v5548_v0  ;;  %v7253_v58 = vadd.f32 %v2053_v1, %v7179_v11 }
 0x181   : > { %v5551_v36 = vpop.f32.mrf.mxu1  ;;  %v5598_v30 = vpop.f32.mrf.mxu0 }
 0x182   : > { %v2058_v53 = vadd.f32 %v5550_v52, %v2057_v62 }
 0x183   : > { %v5552_v15 = vpop.f32.mrf.mxu1  ;;  %v5600_v13 = vpop.f32.mrf.mxu0 }
 0x184   : > { %v5553_v7 = vadd.f32 %v5552_v15, %v5551_v36  ;;  %v7256_v22 = vadd.f32 %v2058_v53, %v7183_v32 }
 0x185   : > { %v5554_v2 = vpop.f32.mrf.mxu1  ;;  %v5601_v34 = vpop.f32.mrf.mxu0 }
 0x186   : > { %v2061_v3 = vadd.f32 %v5553_v7, %v2060_v44  ;;  %v5602_v31 = vadd.f32 %v5601_v34, %v5600_v13 }
 0x187   : > { %v5555_v27 = vpop.f32.mrf.mxu1  ;;  %v5603_v5 = vpop.f32.mrf.mxu0 }
 0x188   : > { %v5556_v35 = vadd.f32 %v5555_v27, %v5554_v2  ;;  %v7259_v38 = vadd.f32 %v2061_v3, %v7189_v10 }
 0x189   : > { %v5557_v11 = vpop.f32.mrf.mxu1  ;;  %v5604_v46 = vpop.f32.mrf.mxu0 }
 0x18a   : > { %v2066_v6 = vadd.f32 %v5982_v8, %v5556_v35  ;;  %v5605_v63 = vadd.f32 %v5604_v46, %v5603_v5  ;;  %v5599_v8 = vadd.f32 %v5598_v30, %v5597_v26 }
 0x18b   : > { %v5558_v56 = vpop.f32.mrf.mxu1  ;;  %v5606_v57 = vpop.f32.mrf.mxu0 }
 0x18c   : > { %v7262_v59 = vadd.f32 %v2066_v6, %v7192_v9  ;;  %v5559_v32 = vadd.f32 %v5558_v56, %v5557_v11  ;;  %v7271_v9 = vld [vmem:[%s8067_s3] ss:$0 sm:$0xff] }
 0x18d   : > { %v6002_v47 = vpop.f32.mrf.mxu1  ;;  %v5607_v62 = vpop.f32.mrf.mxu0 }
 0x18e   : > { %v2069_v42 = vadd.f32 %v5983_v25, %v5559_v32  ;;  %v2481_v61 = vadd.f32 %v6002_v47, %v5602_v31  ;;  %v5608_v30 = vadd.f32 %v5607_v62, %v5606_v57 }
 0x18f   : > { %v2472_v39 = vpop.f32.mrf.mxu1  ;;  %v5609_v44 = vpop.f32.mrf.mxu0 }
 0x190   : > { %v7265_v10 = vadd.f32 %v2069_v42, %v7197_v4  ;;  %v2473_v19 = vadd.f32 %v5596_v51, %v2472_v39  ;;  %v2573_v21 = vadd.f32 %v2481_v61, %v7204_v33  ;;  %v7278_v4 = vld [vmem:[%s8068_s4] ss:$0 sm:$0xff] }
 0x191   : > { %v6003_v50 = vpop.f32.mrf.mxu1  ;;  %v5610_v37 = vpop.f32.mrf.mxu0 }
 0x192   : > { %v2571_v25 = vadd.f32 %v2473_v19, %v7207_v23  ;;  %v2640_v0 = vmul.f32 %v7271_v9, %v2573_v21  ;;  %v2484_v49 = vadd.f32 %v6003_v50, %v5605_v63  ;;  %v5611_v6 = vadd.f32 %v5610_v37, %v5609_v44 }
 0x193   : > { %v2475_v1 = vpop.f32.mrf.mxu1  ;;  %v5612_v18 = vpop.f32.mrf.mxu0 }
 0x194   : > { %v2638_v33 = vmul.f32 %v7271_v9, %v2571_v25  ;;  %v2476_v26 = vadd.f32 %v5599_v8, %v2475_v1  ;;  %v2667_v52 = vadd.f32 %v7278_v4, %v2640_v0  ;;  %v2574_v36 = vadd.f32 %v2484_v49, %v7210_v40 }
 0x195   : > { %v6006_v53 = vpop.f32.mrf.mxu1  ;;  %v5613_v23 = vpop.f32.mrf.mxu0 }
 0x196   : > { %v2665_v15 = vadd.f32 %v7278_v4, %v2638_v33  ;;  %v2572_v13 = vadd.f32 %v2476_v26, %v7213_v43  ;;  %v2687_v7 = vmax.f32 %v2667_v52, 0.0  ;;  %v2641_v2 = vmul.f32 %v7271_v9, %v2574_v36  ;;  %v3032_v52 = vld [vmem:[#allocation3 + $0xc] sm:$0xf]  ;;  %v3025_v36 = vld [vmem:[#allocation3] sm:$0xf] }
 0x197   : > { %v2488_v34 = vpop.f32.mrf.mxu1  ;;  %v5614_v3 = vadd.f32 %v5613_v23, %v5612_v18  ;;  %v5615_v27 = vpop.f32.mrf.mxu0 }
 0x198   : > { %v2685_v5 = vmax.f32 %v2665_v15, 0.0  ;;  %v2639_v35 = vmul.f32 %v7271_v9, %v2572_v13  ;;  %v5372_v11 = vpack.c.bf16 %v2687_v7, %v2687_v7  ;;  %v2668_v46 = vadd.f32 %v7278_v4, %v2641_v2 }
 0x199   : > { %v2489_v40 = vadd.f32 %v5608_v30, %v2488_v34  ;;  %v6007_v31 = vpop.f32.mrf.mxu1  ;;  %v2497_v56 = vadd.f32 %v6006_v53, %v5614_v3  ;;  %v5616_v57 = vpop.f32.mrf.mxu0 }
 0x19a   : > { %v5370_v32 = vpack.c.bf16 %v2685_v5, %v2685_v5  ;;  %v2666_v43 = vadd.f32 %v7278_v4, %v2639_v35  ;;  %v2843_v51 = vshrl.u32 %v5372_v11, 16  ;;  %v2846_v47 = vshll.u32 %v5372_v11, 16 }
 0x19b   : > { %v2688_v62 = vmax.f32 %v2668_v46, 0.0  ;;  %v2575_v42 = vadd.f32 %v2489_v40, %v7223_v29  ;;  %v2491_v61 = vpop.f32.mrf.mxu1  ;;  %v2577_v63 = vadd.f32 %v2497_v56, %v7218_v12  ;;  %v5617_v39 = vadd.f32 %v5616_v57, %v5615_v27  ;;  %v7291_v19 = vpop.f32.mrf.mxu0  ;;  %v3036_v57 = vld [vmem:[#allocation3 + $0x14] sm:$0x1] }
 0x19c   : > { %v2826_v8 = vshrl.u32 %v5370_v32, 16  ;;  %v2829_v21 = vshll.u32 %v5370_v32, 16  ;;  %v2686_v44 = vmax.f32 %v2666_v43, 0.0  ;;  %v2845_v50 = vrot.slane %v2843_v51, 7  ;;  %v3029_v51 = vld [vmem:[#allocation3 + $0x8] sm:$0x1] }
 0x19d   : > { %v5373_v37 = vpack.c.bf16 %v2688_v62, %v2688_v62  ;;  %v2642_v25 = vmul.f32 %v7271_v9, %v2575_v42  ;;  %v2492_v0 = vadd.f32 %v5611_v6, %v2491_v61  ;;  %v2644_v49 = vmul.f32 %v7271_v9, %v2577_v63  ;;  %v5619_v1 = vpop.f32.mrf.mxu0  ;;  %v7295_v18 = vpop.f32.mrf.mxu1 }
 0x19e   : > { %v2828_v29 = vrot.slane %v2826_v8, 7  ;;  %v5371_v33 = vpack.c.bf16 %v2686_v44, %v2686_v44  ;;  %v2848_v26 = vor.u32 %v2846_v47, %v2845_v50  ;;  %v2849_v12 = vrot.slane %v2845_v50, 4 }
 0x19f   : > { %v2851_v30 = vshrl.u32 %v5373_v37, 16  ;;  %v2854_v53 = vshll.u32 %v5373_v37, 16  ;;  %v2669_v23 = vadd.f32 %v7278_v4, %v2642_v25  ;;  %v2576_v15 = vadd.f32 %v2492_v0, %v7229_v28  ;;  %v5621_v13 = vpop.f32.mrf.mxu0  ;;  %v2504_v7 = vpop.f32.mrf.mxu1 }
 0x1a0   : > { %v2831_v2 = vor.u32 %v2829_v21, %v2828_v29  ;;  %v2832_v34 = vrot.slane %v2828_v29, 4  ;;  %v2834_v3 = vshrl.u32 %v5371_v33, 16  ;;  %v2837_v27 = vshll.u32 %v5371_v33, 16 }
 0x1a1   : > { %v3033_v5 = vsel %vm6631_vm8, %v2848_v26, %v3032_v52  ;;  %v2853_v35 = vrot.slane %v2851_v30, 7  ;;  %v2689_v11 = vmax.f32 %v2669_v23, 0.0  ;;  %v2643_v46 = vmul.f32 %v7271_v9, %v2576_v15  ;;  %v5622_v40 = vpop.f32.mrf.mxu0  ;;  %v7302_v6 = vpop.f32.mrf.mxu1  ;;  %v3039_v15 = vld [vmem:[#allocation3 + $0x18] sm:$0xf] }
 0x1a2   : > { %v3026_v56 = vsel %vm6631_vm8, %v2831_v2, %v3025_v36  ;;  %v2836_v28 = vrot.slane %v2834_v3, 7  ;;  %3034 = vst [vmem:[#allocation3 + $0xc] sm:$0xf] %v3033_v5  ;;  %v2671_v32 = vadd.f32 %v7278_v4, %v2644_v49  ;;  %v2500_v43 = vadd.f32 %v6007_v31, %v5617_v39 }
 0x1a3   : > { %3027 = vst [vmem:[#allocation3] sm:$0xf] %v3026_v56  ;;  %v2856_v47 = vor.u32 %v2854_v53, %v2853_v35  ;;  %v2858_v62 = vrot.slane %v2853_v35, 4  ;;  %v5374_v42 = vpack.c.bf16 %v2689_v11, %v2689_v11  ;;  %v2670_v61 = vadd.f32 %v7278_v4, %v2643_v46  ;;  %v5624_v63 = vpop.f32.mrf.mxu0  ;;  %v2507_v8 = vpop.f32.mrf.mxu1 }
 0x1a4   : > { %v2839_v21 = vor.u32 %v2837_v27, %v2836_v28  ;;  %v2841_v44 = vrot.slane %v2836_v28, 4  ;;  %v2691_v50 = vmax.f32 %v2671_v32, 0.0  ;;  %v2578_v37 = vadd.f32 %v2500_v43, %v7226_v48 }
 0x1a5   : > { %v2857_v25 = vsel %vm6619_vm7, %v2849_v12, %v2856_v47  ;;  %v3037_v31 = vsel %vm6584_vm3, %v2858_v62, %v3036_v57  ;;  %v2860_v39 = vshrl.u32 %v5374_v42, 16  ;;  %v2863_v0 = vshll.u32 %v5374_v42, 16  ;;  %v5625_v49 = vpop.f32.mrf.mxu0  ;;  %v7313_v29 = vpop.f32.mrf.mxu1 }
 0x1a6   : > { %v2840_v33 = vsel %vm6619_vm7, %v2832_v34, %v2839_v21  ;;  %v3030_v26 = vsel %vm6584_vm3, %v2841_v44, %v3029_v51  ;;  %3035 = vst [vmem:[#allocation3 + $0x10] sm:$0xf] %v2857_v25  ;;  %3038 = vst [vmem:[#allocation3 + $0x14] sm:$0x1] %v3037_v31  ;;  %v2690_v48 = vmax.f32 %v2670_v61, 0.0  ;;  %v5376_v52 = vpack.c.bf16 %v2691_v50, %v2691_v50 }
 0x1a7   : > { %3028 = vst [vmem:[#allocation3 + $0x4] sm:$0xf] %v2840_v33  ;;  %3031 = vst [vmem:[#allocation3 + $0x8] sm:$0x1] %v3030_v26  ;;  %v2862_v12 = vrot.slane %v2860_v39, 7  ;;  %v2645_v36 = vmul.f32 %v7271_v9, %v2578_v37  ;;  %v5620_v30 = vadd.f32 %v5619_v1, %v7291_v19  ;;  %v5623_v53 = vadd.f32 %v5622_v40, %v5621_v13  ;;  %v5627_v23 = vpop.f32.mrf.mxu0  ;;  %v2520_v56 = vpop.f32.mrf.mxu1 }
 0x1a8   : > { %v5375_v2 = vpack.c.bf16 %v2690_v48, %v2690_v48  ;;  %v2877_v3 = vshrl.u32 %v5376_v52, 16  ;;  %v5626_v34 = vadd.f32 %v5625_v49, %v5624_v63  ;;  %v2880_v5 = vshll.u32 %v5376_v52, 16  ;;  %v3046_v1 = vld [vmem:[#allocation3 + $0x24] sm:$0xf]  ;;  %v3043_v63 = vld [vmem:[#allocation3 + $0x20] sm:$0x1] }
 0x1a9   : > { %v2865_v27 = vor.u32 %v2863_v0, %v2862_v12  ;;  %v2672_v35 = vadd.f32 %v7278_v4, %v2645_v36  ;;  %v2505_v11 = vadd.f32 %v5620_v30, %v2504_v7  ;;  %v5628_v46 = vpop.f32.mrf.mxu0  ;;  %v2866_v28 = vrot.slane %v2862_v12, 4  ;;  %v7329_v25 = vpop.f32.mrf.mxu1 }
 0x1aa   : > { %v2868_v57 = vshrl.u32 %v5375_v2, 16  ;;  %v2879_v32 = vrot.slane %v2877_v3, 7  ;;  %v2508_v43 = vadd.f32 %v5623_v53, %v2507_v8  ;;  %v2513_v51 = vadd.f32 %v7295_v18, %v5626_v34  ;;  %v3050_v34 = vld [vmem:[#allocation3 + $0x2c] sm:$0x1] }
 0x1ab   : > { %v3040_v19 = vsel %vm6631_vm8, %v2865_v27, %v3039_v15  ;;  %v2692_v13 = vmax.f32 %v2672_v35, 0.0  ;;  %v2579_v40 = vadd.f32 %v2505_v11, %v7232_v14  ;;  %v5630_v47 = vpop.f32.mrf.mxu0  ;;  %v2871_v42 = vshll.u32 %v5375_v2, 16  ;;  %v2523_v2 = vpop.f32.mrf.mxu1 }
 0x1ac   : > { %3041 = vst [vmem:[#allocation3 + $0x18] sm:$0xf] %v3040_v19  ;;  %v2870_v62 = vrot.slane %v2868_v57, 7  ;;  %v2882_v7 = vor.u32 %v2880_v5, %v2879_v32  ;;  %v2580_v61 = vadd.f32 %v2508_v43, %v7238_v60  ;;  %v2581_v44 = vadd.f32 %v2513_v51, %v7235_v20 }
 0x1ad   : > { %v5377_v21 = vpack.c.bf16 %v2692_v13, %v2692_v13  ;;  %v2646_v8 = vmul.f32 %v7271_v9, %v2579_v40  ;;  %v5629_v50 = vadd.f32 %v5628_v46, %v5627_v23  ;;  %v5631_v37 = vpop.f32.mrf.mxu0  ;;  %v2883_v3 = vrot.slane %v2879_v32, 4 }
 0x1ae   : > { %v2873_v14 = vor.u32 %v2871_v42, %v2870_v62  ;;  %v2875_v31 = vrot.slane %v2870_v62, 4  ;;  %v3047_v18 = vsel %vm6631_vm8, %v2882_v7, %v3046_v1  ;;  %v2647_v39 = vmul.f32 %v7271_v9, %v2580_v61 }
 0x1af   : > { %3048 = vst [vmem:[#allocation3 + $0x24] sm:$0xf] %v3047_v18  ;;  %v2885_v0 = vshrl.u32 %v5377_v21, 16  ;;  %v2888_v60 = vshll.u32 %v5377_v21, 16  ;;  %v2673_v49 = vadd.f32 %v7278_v4, %v2646_v8  ;;  %v2648_v33 = vmul.f32 %v7271_v9, %v2581_v44  ;;  %v5633_v26 = vpop.f32.mrf.mxu0 }
 0x1b0   : > { %v2874_v20 = vsel %vm6619_vm7, %v2866_v28, %v2873_v14  ;;  %v3044_v48 = vsel %vm6584_vm3, %v2875_v31, %v3043_v63  ;;  %v2674_v52 = vadd.f32 %v7278_v4, %v2647_v39  ;;  %v2516_v12 = vadd.f32 %v7302_v6, %v5629_v50  ;;  %v3053_v50 = vld [vmem:[#allocation3 + $0x30] sm:$0xf]  ;;  %v7352_v39 = vpop.f32.mrf.mxu1 }
 0x1b1   : > { %3042 = vst [vmem:[#allocation3 + $0x1c] sm:$0xf] %v2874_v20  ;;  %3045 = vst [vmem:[#allocation3 + $0x20] sm:$0x1] %v3044_v48  ;;  %v2887_v36 = vrot.slane %v2885_v0, 7  ;;  %v2693_v30 = vmax.f32 %v2673_v49, 0.0  ;;  %v2675_v53 = vadd.f32 %v7278_v4, %v2648_v33  ;;  %v5632_v23 = vadd.f32 %v5631_v37, %v5630_v47  ;;  %v5634_v15 = vpop.f32.mrf.mxu0 }
 0x1b2   : > { %v2694_v27 = vmax.f32 %v2674_v52, 0.0  ;;  %v2582_v5 = vadd.f32 %v2516_v12, %v7241_v54  ;;  %v5635_v35 = vadd.f32 %v5634_v15, %v5633_v26  ;;  %v3057_v49 = vld [vmem:[#allocation3 + $0x38] sm:$0x1] }
 0x1b3   : > { %v2890_v11 = vor.u32 %v2888_v60, %v2887_v36  ;;  %v2892_v46 = vrot.slane %v2887_v36, 4  ;;  %v5378_v28 = vpack.c.bf16 %v2693_v30, %v2693_v30  ;;  %v2695_v57 = vmax.f32 %v2675_v53, 0.0  ;;  %v5636_v6 = vpop.f32.mrf.mxu0  ;;  %v3060_v36 = vld [vmem:[#allocation3 + $0x3c] sm:$0xf] }
 0x1b4   : > { %v5379_v43 = vpack.c.bf16 %v2694_v27, %v2694_v27  ;;  %v2649_v19 = vmul.f32 %v7271_v9, %v2582_v5  ;;  %v2521_v1 = vadd.f32 %v5632_v23, %v2520_v56  ;;  %v2524_v13 = vadd.f32 %v5635_v35, %v2523_v2  ;;  %v2536_v27 = vpop.f32.mrf.mxu1 }
 0x1b5   : > { %v2891_v40 = vsel %vm6619_vm7, %v2883_v3, %v2890_v11  ;;  %v3051_v32 = vsel %vm6584_vm3, %v2892_v46, %v3050_v34  ;;  %v2894_v51 = vshrl.u32 %v5378_v28, 16  ;;  %v2897_v47 = vshll.u32 %v5378_v28, 16  ;;  %v5637_v54 = vpop.f32.mrf.mxu0 }
 0x1b6   : > { %3049 = vst [vmem:[#allocation3 + $0x28] sm:$0xf] %v2891_v40  ;;  %3052 = vst [vmem:[#allocation3 + $0x2c] sm:$0x1] %v3051_v32  ;;  %v2902_v62 = vshrl.u32 %v5379_v43, 16  ;;  %v2905_v42 = vshll.u32 %v5379_v43, 16  ;;  %v5380_v7 = vpack.c.bf16 %v2695_v57, %v2695_v57  ;;  %v2676_v61 = vadd.f32 %v7278_v4, %v2649_v19 }
 0x1b7   : > { %v2896_v63 = vrot.slane %v2894_v51, 7  ;;  %v2583_v56 = vadd.f32 %v2521_v1, %v7244_v17  ;;  %v2584_v21 = vadd.f32 %v2524_v13, %v7247_v16  ;;  %v5638_v8 = vadd.f32 %v5637_v54, %v5636_v6  ;;  %v5639_v44 = vpop.f32.mrf.mxu0  ;;  %v3064_v51 = vld [vmem:[#allocation3 + $0x44] sm:$0x1] }
 0x1b8   : > { %v2904_v37 = vrot.slane %v2902_v62, 7  ;;  %v2911_v14 = vshrl.u32 %v5380_v7, 16  ;;  %v2914_v31 = vshll.u32 %v5380_v7, 16  ;;  %v2696_v18 = vmax.f32 %v2676_v61, 0.0 }
 0x1b9   : > { %v2899_v0 = vor.u32 %v2897_v47, %v2896_v63  ;;  %v2900_v60 = vrot.slane %v2896_v63, 4  ;;  %v2650_v33 = vmul.f32 %v7271_v9, %v2583_v56  ;;  %v2651_v26 = vmul.f32 %v7271_v9, %v2584_v21  ;;  %v5640_v20 = vpop.f32.mrf.mxu0 }
 0x1ba   : > { %v2907_v17 = vor.u32 %v2905_v42, %v2904_v37  ;;  %v2909_v48 = vrot.slane %v2904_v37, 4  ;;  %v2913_v16 = vrot.slane %v2911_v14, 7  ;;  %v5381_v52 = vpack.c.bf16 %v2696_v18, %v2696_v18  ;;  %v6019_v42 = vpop.f32.mrf.mxu1 }
 0x1bb   : > { %v3054_v12 = vsel %vm6631_vm8, %v2899_v0, %v3053_v50  ;;  %v2677_v30 = vadd.f32 %v7278_v4, %v2650_v33  ;;  %v2678_v53 = vadd.f32 %v7278_v4, %v2651_v26  ;;  %v2529_v23 = vadd.f32 %v7313_v29, %v5638_v8  ;;  %v5642_v15 = vpop.f32.mrf.mxu0  ;;  %v3067_v0 = vld [vmem:[#allocation3 + $0x48] sm:$0xf] }
 0x1bc   : > { %3055 = vst [vmem:[#allocation3 + $0x30] sm:$0xf] %v3054_v12  ;;  %v2908_v2 = vsel %vm6619_vm7, %v2900_v60, %v2907_v17  ;;  %v3058_v3 = vsel %vm6584_vm3, %v2909_v48, %v3057_v49  ;;  %v2916_v34 = vor.u32 %v2914_v31, %v2913_v16  ;;  %v2919_v5 = vshrl.u32 %v5381_v52, 16  ;;  %v3071_v48 = vld [vmem:[#allocation3 + $0x50] sm:$0x1] }
 0x1bd   : > { %3056 = vst [vmem:[#allocation3 + $0x34] sm:$0xf] %v2908_v2  ;;  %3059 = vst [vmem:[#allocation3 + $0x38] sm:$0x1] %v3058_v3  ;;  %v2697_v35 = vmax.f32 %v2677_v30, 0.0  ;;  %v2698_v11 = vmax.f32 %v2678_v53, 0.0  ;;  %v5643_v46 = vpop.f32.mrf.mxu0  ;;  %v2585_v29 = vadd.f32 %v2529_v23, %v7250_v41  ;;  %v5641_v57 = vadd.f32 %v5640_v20, %v5639_v44  ;;  %v2539_v20 = vpop.f32.mrf.mxu1 }
 0x1be   : > { %v3061_v28 = vsel %vm6631_vm8, %v2916_v34, %v3060_v36  ;;  %v5644_v6 = vadd.f32 %v5643_v46, %v5642_v15  ;;  %v2921_v43 = vrot.slane %v2919_v5, 7  ;;  %v2922_v19 = vshll.u32 %v5381_v52, 16 }
 0x1bf   : > { %3062 = vst [vmem:[#allocation3 + $0x3c] sm:$0xf] %v3061_v28  ;;  %v5382_v1 = vpack.c.bf16 %v2697_v35, %v2697_v35  ;;  %v5383_v13 = vpack.c.bf16 %v2698_v11, %v2698_v11  ;;  %v5645_v40 = vpop.f32.mrf.mxu0  ;;  %v2917_v32 = vrot.slane %v2913_v16, 4  ;;  %v2652_v47 = vmul.f32 %v7271_v9, %v2585_v29 }
 0x1c0   : > { %v2532_v54 = vadd.f32 %v7329_v25, %v5641_v57  ;;  %v2537_v62 = vadd.f32 %v5644_v6, %v2536_v27  ;;  %v2924_v7 = vor.u32 %v2922_v19, %v2921_v43  ;;  %v2926_v61 = vrot.slane %v2921_v43, 4  ;;  %v3074_v19 = vld [vmem:[#allocation3 + $0x54] sm:$0xf] }
 0x1c1   : > { %v2928_v63 = vshrl.u32 %v5382_v1, 16  ;;  %v2931_v41 = vshll.u32 %v5382_v1, 16  ;;  %v5646_v56 = vpop.f32.mrf.mxu0  ;;  %v2936_v21 = vshrl.u32 %v5383_v13, 16  ;;  %v2939_v8 = vshll.u32 %v5383_v13, 16 }
 0x1c2   : > { %v2679_v44 = vadd.f32 %v7278_v4, %v2652_v47  ;;  %v2586_v50 = vadd.f32 %v2532_v54, %v7253_v58  ;;  %v2925_v37 = vsel %vm6619_vm7, %v2917_v32, %v2924_v7  ;;  %v3065_v14 = vsel %vm6584_vm3, %v2926_v61, %v3064_v51 }
 0x1c3   : > { %v2930_v25 = vrot.slane %v2928_v63, 7  ;;  %v2587_v31 = vadd.f32 %v2537_v62, %v7256_v22  ;;  %v5648_v18 = vpop.f32.mrf.mxu0  ;;  %3063 = vst [vmem:[#allocation3 + $0x40] sm:$0xf] %v2925_v37  ;;  %3066 = vst [vmem:[#allocation3 + $0x44] sm:$0x1] %v3065_v14  ;;  %v2938_v60 = vrot.slane %v2936_v21, 7  ;;  %v5647_v26 = vadd.f32 %v5646_v56, %v5645_v40 }
 0x1c4   : > { %v2699_v49 = vmax.f32 %v2679_v44, 0.0  ;;  %v2653_v33 = vmul.f32 %v7271_v9, %v2586_v50 }
 0x1c5   : > { %v2933_v58 = vor.u32 %v2931_v41, %v2930_v25  ;;  %v2934_v17 = vrot.slane %v2930_v25, 4  ;;  %v2654_v16 = vmul.f32 %v7271_v9, %v2587_v31  ;;  %v5649_v52 = vpop.f32.mrf.mxu0  ;;  %v2941_v12 = vor.u32 %v2939_v8, %v2938_v60  ;;  %v3078_v8 = vld [vmem:[#allocation3 + $0x5c] sm:$0x1] }
 0x1c6   : > { %v2943_v36 = vrot.slane %v2938_v60, 4  ;;  %v5384_v30 = vpack.c.bf16 %v2699_v49, %v2699_v49  ;;  %v2680_v22 = vadd.f32 %v7278_v4, %v2653_v33  ;;  %v2540_v15 = vadd.f32 %v5647_v26, %v2539_v20 }
 0x1c7   : > { %v3068_v53 = vsel %vm6631_vm8, %v2933_v58, %v3067_v0  ;;  %v2681_v23 = vadd.f32 %v7278_v4, %v2654_v16  ;;  %v5650_v2 = vadd.f32 %v5649_v52, %v5648_v18  ;;  %v5651_v3 = vpop.f32.mrf.mxu0  ;;  %v2942_v34 = vsel %vm6619_vm7, %v2934_v17, %v2941_v12  ;;  %v3085_v52 = vld [vmem:[#allocation3 + $0x68] sm:$0x1] }
 0x1c8   : > { %3069 = vst [vmem:[#allocation3 + $0x48] sm:$0xf] %v3068_v53  ;;  %v3072_v27 = vsel %vm6584_vm3, %v2943_v36, %v3071_v48  ;;  %v2945_v5 = vshrl.u32 %v5384_v30, 16  ;;  %3070 = vst [vmem:[#allocation3 + $0x4c] sm:$0xf] %v2942_v34  ;;  %v2700_v35 = vmax.f32 %v2680_v22, 0.0  ;;  %v2588_v46 = vadd.f32 %v2540_v15, %v7259_v38 }
 0x1c9   : > { %3073 = vst [vmem:[#allocation3 + $0x50] sm:$0x1] %v3072_v27  ;;  %v2701_v11 = vmax.f32 %v2681_v23, 0.0  ;;  %v2545_v28 = vadd.f32 %v7352_v39, %v5650_v2  ;;  %v5652_v29 = vpop.f32.mrf.mxu0  ;;  %v2948_v6 = vshll.u32 %v5384_v30, 16  ;;  %v3088_v23 = vld [vmem:[#allocation3 + $0x6c] sm:$0xf] }
 0x1ca   : > { %v2947_v57 = vrot.slane %v2945_v5, 7  ;;  %v5653_v43 = vadd.f32 %v5652_v29, %v5651_v3  ;;  %v5385_v1 = vpack.c.bf16 %v2700_v35, %v2700_v35  ;;  %v2655_v40 = vmul.f32 %v7271_v9, %v2588_v46  ;;  %v3092_v35 = vld [vmem:[#allocation3 + $0x74] sm:$0x1] }
 0x1cb   : > { %v5386_v13 = vpack.c.bf16 %v2701_v11, %v2701_v11  ;;  %v2589_v32 = vadd.f32 %v2545_v28, %v7262_v59  ;;  %v3081_v59 = vld [vmem:[#allocation3 + $0x60] sm:$0xf] }
 0x1cc   : > { %v2950_v51 = vor.u32 %v2948_v6, %v2947_v57  ;;  %v2548_v47 = vadd.f32 %v6019_v42, %v5653_v43  ;;  %v2953_v54 = vshrl.u32 %v5385_v1, 16  ;;  %v2682_v39 = vadd.f32 %v7278_v4, %v2655_v40 }
 0x1cd   : > { %v2962_v62 = vshrl.u32 %v5386_v13, 16  ;;  %v2656_v7 = vmul.f32 %v7271_v9, %v2589_v32  ;;  %v2956_v41 = vshll.u32 %v5385_v1, 16  ;;  %v2965_v21 = vshll.u32 %v5386_v13, 16 }
 0x1ce   : > { %v3075_v38 = vsel %vm6631_vm8, %v2950_v51, %v3074_v19  ;;  %v2590_v61 = vadd.f32 %v2548_v47, %v7265_v10  ;;  %v2955_v63 = vrot.slane %v2953_v54, 7  ;;  %v2702_v44 = vmax.f32 %v2682_v39, 0.0 }
 0x1cf   : > { %3076 = vst [vmem:[#allocation3 + $0x54] sm:$0xf] %v3075_v38  ;;  %v2964_v56 = vrot.slane %v2962_v62, 7  ;;  %v2683_v42 = vadd.f32 %v7278_v4, %v2656_v7  ;;  %v2951_v37 = vrot.slane %v2947_v57, 4 }
 0x1d0   : > { %v2657_v50 = vmul.f32 %v7271_v9, %v2590_v61  ;;  %v2958_v14 = vor.u32 %v2956_v41, %v2955_v63  ;;  %v2960_v25 = vrot.slane %v2955_v63, 4  ;;  %v5387_v18 = vpack.c.bf16 %v2702_v44, %v2702_v44 }
 0x1d1   : > { %v2967_v31 = vor.u32 %v2965_v21, %v2964_v56  ;;  %v2703_v0 = vmax.f32 %v2683_v42, 0.0 }
 0x1d2   : > { %v2684_v10 = vadd.f32 %v7278_v4, %v2657_v50  ;;  %v2959_v60 = vsel %vm6619_vm7, %v2951_v37, %v2958_v14  ;;  %v3079_v49 = vsel %vm6584_vm3, %v2960_v25, %v3078_v8  ;;  %v2970_v9 = vshrl.u32 %v5387_v18, 16 }
 0x1d3   : > { %v3082_v33 = vsel %vm6631_vm8, %v2967_v31, %v3081_v59  ;;  %3077 = vst [vmem:[#allocation3 + $0x58] sm:$0xf] %v2959_v60  ;;  %3080 = vst [vmem:[#allocation3 + $0x5c] sm:$0x1] %v3079_v49  ;;  %v5388_v26 = vpack.c.bf16 %v2703_v0, %v2703_v0  ;;  %v2973_v17 = vshll.u32 %v5387_v18, 16  ;;  %v2968_v4 = vrot.slane %v2964_v56, 4 }
 0x1d4   : > { %3083 = vst [vmem:[#allocation3 + $0x60] sm:$0xf] %v3082_v33  ;;  %v2704_v20 = vmax.f32 %v2684_v10, 0.0  ;;  %v2972_v58 = vrot.slane %v2970_v9, 7 }
 0x1d5   : > { %v2979_v48 = vshrl.u32 %v5388_v26, 16  ;;  %v2982_v12 = vshll.u32 %v5388_v26, 16 }
 0x1d6   : > { %v5389_v16 = vpack.c.bf16 %v2704_v20, %v2704_v20  ;;  %v2975_v36 = vor.u32 %v2973_v17, %v2972_v58  ;;  %v2977_v30 = vrot.slane %v2972_v58, 4 }
 0x1d7   : > { %v2981_v22 = vrot.slane %v2979_v48, 7 }
 0x1d8   : > { %v2987_v53 = vshrl.u32 %v5389_v16, 16  ;;  %v2976_v15 = vsel %vm6619_vm7, %v2968_v4, %v2975_v36  ;;  %v3086_v2 = vsel %vm6584_vm3, %v2977_v30, %v3085_v52  ;;  %v2990_v27 = vshll.u32 %v5389_v16, 16 }
 0x1d9   : > { %v2984_v3 = vor.u32 %v2982_v12, %v2981_v22  ;;  %3084 = vst [vmem:[#allocation3 + $0x64] sm:$0xf] %v2976_v15  ;;  %3087 = vst [vmem:[#allocation3 + $0x68] sm:$0x1] %v3086_v2  ;;  %v2985_v11 = vrot.slane %v2981_v22, 4 }
 0x1da   : > { %v2989_v34 = vrot.slane %v2987_v53, 7 }
 0x1db   : > { %v3089_v5 = vsel %vm6631_vm8, %v2984_v3, %v3088_v23  ;;  %3098 = sbr.rel (%p5165_p8) target bundleno = 483 (0x1e3), region = 56 }
 0x1dc   : > { %3090 = vst [vmem:[#allocation3 + $0x6c] sm:$0xf] %v3089_v5  ;;  %v2992_v46 = vor.u32 %v2990_v27, %v2989_v34  ;;  %v2994_v28 = vrot.slane %v2989_v34, 4 }
 0x1de   : > { %v2993_v29 = vsel %vm6619_vm7, %v2985_v11, %v2992_v46  ;;  %v3093_v57 = vsel %vm6584_vm3, %v2994_v28, %v3092_v35 }
 0x1df   : > { %3091 = vst [vmem:[#allocation3 + $0x70] sm:$0xf] %v2993_v29  ;;  %3094 = vst [vmem:[#allocation3 + $0x74] sm:$0x1] %v3093_v57 }
 0x1e0   : > { %v6408_v6 = vmov 0  }
 0x1e1   : > { %3099 = vst [vmem:[#allocation3] sm:$0xf] %v6408_v6  ;;  %3100 = vst [vmem:[#allocation3 + $0x4] sm:$0xf] %v6408_v6 }
 0x1e2   : > { %3101 = vst [vmem:[#allocation3 + $0x8] sm:$0x1] %v6408_v6 }
 0x1e3 PF: > { %p5166_p9 = scmp.ne.s32.totalorder %s6390_s27, 1 }
 0x1e5   : > { %3105 = sbr.rel (%p5166_p9) target bundleno = 493 (0x1ed), region = 60 }
 0x1ea   : > { %v6409_v55 = vmov 0  }
 0x1eb   : > { %3107 = vst [vmem:[#allocation3 + $0x6c] sm:$0xf] %v6409_v55  ;;  %3108 = vst [vmem:[#allocation3 + $0x70] sm:$0xf] %v6409_v55 }
 0x1ec   : > { %3109 = vst [vmem:[#allocation3 + $0x74] sm:$0x1] %v6409_v55 }
 0x1ed PF: > { %v6266_v24 = vld [vmem:[%s8069_s5 + $0x78] sm:$0xff]   ;;  %v6269_v19 = vld [vmem:[%s8069_s5 + $0x70] sm:$0xff]   ;;  %v6272_v40 = vld [vmem:[%s8069_s5 + $0x68] sm:$0xff]  }
 0x1ee   : > { %v6267_v45 = vld [vmem:[%s8069_s5 + $0x38] sm:$0xff]   ;;  %5672 = vmatprep.subr.bf16.mxu1 %v6266_v24  ;;  %v6270_v1 = vld [vmem:[%s8069_s5 + $0x30] sm:$0xff]   ;;  %v6273_v32 = vld [vmem:[%s8069_s5 + $0x28] sm:$0xff]  }
 0x1ef   : > { %v6268_v43 = vld [vmem:[%s8069_s5 + $0xb8] sm:$0xff]   ;;  %5673 = vmatpush3.bf16.msra.mxu1 %v6267_v45  ;;  %v6271_v13 = vld [vmem:[%s8069_s5 + $0xb0] sm:$0xff]   ;;  %v6274_v51 = vld [vmem:[%s8069_s5 + $0xa8] sm:$0xff]  }
 0x1f0   : > { %6020 = vmatprep.subr.bf16.mxu0 %v6268_v43  ;;  %5674 = vmatprep.subr.bf16.mxu1 %v6269_v19  ;;  %v6275_v47 = vld [vmem:[%s8069_s5 + $0x60] sm:$0xff]   ;;  %v6278_v38 = vld [vmem:[%s8069_s5 + $0x58] sm:$0xff]   ;;  %v6281_v61 = vld [vmem:[%s8069_s5 + $0x50] sm:$0xff]  }
 0x1f1   : > { %6021 = vmatpush3.bf16.msra.mxu0 %v6268_v43  ;;  %v6276_v54 = vld [vmem:[%s8069_s5 + $0x20] sm:$0xff]   ;;  %v6280_v39 = vld [vmem:[%s8069_s5 + $0x98] sm:$0xff]   ;;  %v6283_v63 = vld [vmem:[%s8069_s5 + $0x90] sm:$0xff]  }
 0x1f2   : > { %6022 = vmatprep.subr.bf16.mxu0 %v6271_v13  ;;  %v6277_v62 = vld [vmem:[%s8069_s5 + $0xa0] sm:$0xff]   ;;  %v6279_v7 = vld [vmem:[%s8069_s5 + $0x18] sm:$0xff]   ;;  %v6282_v41 = vld [vmem:[%s8069_s5 + $0x10] sm:$0xff]  }
 0x1f3   : > { %5675 = vmatpush3.bf16.msra.mxu1 %v6270_v1  ;;  %v6284_v56 = vld [vmem:[%s8069_s5 + $0x48] sm:$0xff]   ;;  %v6287_v59 = vld [vmem:[%s8069_s5 + $0x40] sm:$0xff]   ;;  %v3110_v44 = vld [vmem:[#allocation3] sm:$0xf] }
 0x1f4   : > { %5676 = vmatprep.subr.bf16.mxu1 %v6272_v40  ;;  %v6285_v21 = vld [vmem:[%s8069_s5 + $0x8] sm:$0xff]   ;;  %v3111_v42 = vld [vmem:[#allocation3 + $0x4] sm:$0xf]  ;;  %v6289_v50 = vld [vmem:[%s8069_s5 + $0x80] sm:$0xff]  }
 0x1f5   : > { %6023 = vmatpush3.bf16.msra.mxu0 %v6271_v13  ;;  %v6286_v8 = vld [vmem:[%s8069_s5 + $0x88] sm:$0xff]   ;;  %v5167_v37 = vcombine.low %v3110_v44, %v3111_v42  ;;  %v6291_v14 = vld [vmem:[#allocation3 + $0x8] ss:$0 sps:$4 sm:$0x11]   ;;  %v3140_v25 = vld [vmem:[#allocation3] sm:$0xe] }
 0x1f6   : > { %6024 = vmatprep.subr.bf16.mxu0 %v6274_v51  ;;  %v6288_v31 = vld [vmem:[%s8069_s5] sm:$0xff]   ;;  %v3248_v10 = vshll.u32 %v6291_v14, 16  ;;  %v5187_v60 = vcombine.low %v3140_v25, %v3111_v42  ;;  %v6292_v49 = vld [vmem:[%s8069_s5 + $0x138] sm:$0xff]   ;;  %v3401_v33 = vrot.slane %v6291_v14, 1  ;;  %v6298_v34 = vld [vmem:[%s8069_s5 + $0x130] sm:$0xff]  }
 0x1f7   : > { %5677 = vmatpush3.bf16.msra.mxu1 %v6273_v32  ;;  %v3241_v18 = vshrl.u32 %v5167_v37, 16  ;;  %v3243_v0 = vshll.u32 %v5167_v37, 16  ;;  %v3112_v9 = vld [vmem:[#allocation3 + $0xc] sm:$0xf]  ;;  %v3113_v26 = vld [vmem:[#allocation3 + $0x10] sm:$0xf] }
 0x1f8   : > { %5678 = vmatprep.subr.bf16.mxu1 %v6275_v47  ;;  %v3250_v58 = vrot.slane %v3248_v10, 1  ;;  %v3400_v17 = vrot.slane %v5187_v60, 1  ;;  %v7492_v48 = vcombine.low %v3112_v9, %v3113_v26  ;;  %v3141_v16 = vld [vmem:[#allocation3 + $0xc] sm:$0xe]  ;;  %v3114_v27 = vld [vmem:[#allocation3 + $0x18] sm:$0xf] }
 0x1f9   : > { %6025 = vmatpush3.bf16.msra.mxu0 %v6274_v51  ;;  %v3245_v20 = vrot.slane %v3243_v0, 1  ;;  %v6296_v4 = vld [vmem:[#allocation3 + $0x14] ss:$0 sps:$4 sm:$0x11]   ;;  %v6294_v36 = vld [vmem:[%s8069_s5 + $0xf8] sm:$0xff]   ;;  %v5188_v30 = vcombine.low %v3141_v16, %v3113_v26  ;;  %v6299_v11 = vld [vmem:[%s8069_s5 + $0xf0] sm:$0xff]  }
 0x1fa   : > { %6026 = vmatprep.subr.bf16.mxu0 %v6277_v62  ;;  %v3402_v12 = vsel %vm1166_vm10, %v3400_v17, %v3401_v33  ;;  %v3404_v22 = vrot.slane %v6296_v4, 1  ;;  %v3253_v53 = vshrl.u32 %v7492_v48, 16  ;;  %v3255_v23 = vshll.u32 %v7492_v48, 16  ;;  %v3115_v46 = vld [vmem:[#allocation3 + $0x1c] sm:$0xf]  ;;  %v6310_v55 = vld [vmem:[%s8069_s5 + $0x178] sm:$0xff]  }
 0x1fb   : > { %5679 = vmatpush3.bf16.msra.mxu1 %v6276_v54  ;;  %v3246_v52 = vor.u32 %v3245_v20, %v3241_v18  ;;  %6036 = vmatprep.mubr.bf16.mxu0 %v3402_v12  ;;  %v3260_v15 = vshll.u32 %v6296_v4, 16  ;;  %v3403_v3 = vrot.slane %v5188_v30, 1  ;;  %v7510_v29 = vcombine.low %v3114_v27, %v3115_v46  ;;  %v6301_v57 = vld [vmem:[#allocation3 + $0x20] ss:$0 sps:$4 sm:$0x11]   ;;  %v6302_v6 = vld [vmem:[%s8069_s5 + $0x128] sm:$0xff]  }
 0x1fc   : > { %5680 = vmatprep.subr.bf16.mxu1 %v6278_v38  ;;  %v3257_v5 = vrot.slane %v3255_v23, 1  ;;  %v3142_v45 = vld [vmem:[#allocation3 + $0x18] sm:$0xe]  ;;  %v3272_v1 = vshll.u32 %v6301_v57, 16  ;;  %v6311_v40 = vld [vmem:[%s8069_s5 + $0x170] sm:$0xff]   ;;  %v3407_v51 = vrot.slane %v6301_v57, 1 }
 0x1fd   : > { %6027 = vmatpush3.bf16.msra.mxu0 %v6277_v62  ;;  %v3251_v2 = vsel %vm973_vm9, %v3246_v52, %v3250_v58  ;;  %v3262_v35 = vrot.slane %v3260_v15, 1  ;;  %v7508_v28 = vsel %vm1166_vm10, %v3403_v3, %v3404_v22  ;;  %v3265_v43 = vshrl.u32 %v7510_v29, 16  ;;  %v3116_v47 = vld [vmem:[#allocation3 + $0x24] sm:$0xf]  ;;  %v3117_v54 = vld [vmem:[#allocation3 + $0x28] sm:$0xf] }
 0x1fe   : > { %6028 = vmatprep.subr.bf16.mxu0 %v6280_v39  ;;  %3664 = vmatprep.mubr.bf16.mxu1 %v3251_v2  ;;  %v3258_v24 = vor.u32 %v3257_v5, %v3253_v53  ;;  %v3267_v19 = vshll.u32 %v7510_v29, 16  ;;  %v5189_v13 = vcombine.low %v3142_v45, %v3115_v46  ;;  %v3274_v38 = vrot.slane %v3272_v1, 1  ;;  %v6308_v44 = vld [vmem:[%s8069_s5 + $0x120] sm:$0xff]   ;;  %v6314_v0 = vld [vmem:[%s8069_s5 + $0x118] sm:$0xff]   ;;  %v3120_v3 = vld [vmem:[#allocation3 + $0x3c] sm:$0xf] }
 0x1ff   : > { %5681 = vmatpush3.bf16.msra.mxu1 %v6279_v7  ;;  %v6304_v7 = vld [vmem:[%s8069_s5 + $0xe8] sm:$0xff]   ;;  %v6309_v25 = vld [vmem:[%s8069_s5 + $0xe0] sm:$0xff]   ;;  %v6316_v16 = vld [vmem:[%s8069_s5 + $0xd8] sm:$0xff]  }
 0x200   : > { %5682 = vmatprep.subr.bf16.mxu1 %v6281_v61  ;;  %v7525_v32 = vsel %vm973_vm9, %v3258_v24, %v3262_v35  ;;  %v3269_v62 = vrot.slane %v3267_v19, 1  ;;  %v7531_v61 = vcombine.low %v3116_v47, %v3117_v54  ;;  %v6321_v10 = vld [vmem:[%s8069_s5 + $0x160] sm:$0xff]   ;;  %v6313_v17 = vld [vmem:[#allocation3 + $0x38] ss:$0 sps:$4 sm:$0x11]   ;;  %v6324_v30 = vld [vmem:[%s8069_s5 + $0x158] sm:$0xff]  }
 0x201   : > { %6029 = vmatpush3.bf16.msra.mxu0 %v6280_v39  ;;  %v3406_v39 = vrot.slane %v5189_v13, 1  ;;  %v3118_v9 = vld [vmem:[#allocation3 + $0x30] sm:$0xf]  ;;  %v3119_v26 = vld [vmem:[#allocation3 + $0x34] sm:$0xf]  ;;  %v3296_v12 = vshll.u32 %v6313_v17, 16 }
 0x202   : > { %6030 = vmatprep.subr.bf16.mxu0 %v6283_v63  ;;  %v7563_v58 = vcombine.low %v3118_v9, %v3119_v26  ;;  %v3144_v4 = vld [vmem:[#allocation3 + $0x30] sm:$0xe]  ;;  %v3413_v15 = vrot.slane %v6313_v17, 1  ;;  %v6325_v27 = vld [vmem:[%s8069_s5 + $0x150] sm:$0xff]   ;;  %v3145_v57 = vld [vmem:[#allocation3 + $0x3c] sm:$0xe] }
 0x203   : > { %5683 = vmatpush3.bf16.msra.mxu1 %v6282_v41  ;;  %v6306_v41 = vld [vmem:[#allocation3 + $0x2c] ss:$0 sps:$4 sm:$0x11]   ;;  %v5191_v23 = vcombine.low %v3144_v4, %v3119_v26  ;;  %v3121_v35 = vld [vmem:[#allocation3 + $0x40] sm:$0xf]  ;;  %v3298_v46 = vrot.slane %v3296_v12, 1 }
 0x204   : > { %5684 = vmatprep.subr.bf16.mxu1 %v6284_v56  ;;  %v6317_v56 = vld [vmem:[%s8069_s5 + $0x168] sm:$0xff]   ;;  %v3410_v42 = vrot.slane %v6306_v41, 1  ;;  %v3284_v14 = vshll.u32 %v6306_v41, 16  ;;  %v3291_v52 = vshll.u32 %v7563_v58, 16  ;;  %v3289_v53 = vshrl.u32 %v7563_v58, 16  ;;  %v6338_v4 = vld [vmem:[%s8069_s5 + $0x1f8] sm:$0xff]  }
 0x205   : > { %6031 = vmatpush3.bf16.msra.mxu0 %v6283_v63  ;;  %v3143_v63 = vld [vmem:[#allocation3 + $0x24] sm:$0xe]  ;;  %v3412_v5 = vrot.slane %v5191_v23, 1  ;;  %v6333_v13 = vld [vmem:[%s8069_s5 + $0xc8] sm:$0xff]   ;;  %v3123_v41 = vld [vmem:[#allocation3 + $0x4c] sm:$0xf] }
 0x206   : > { %6032 = vmatprep.subr.bf16.mxu0 %v6286_v8  ;;  %v3293_v2 = vrot.slane %v3291_v52, 1  ;;  %v6331_v17 = vld [vmem:[#allocation3 + $0x5c] ss:$0 sps:$4 sm:$0x11]  }
 0x207   : > { %5685 = vmatpush3.bf16.msra.mxu1 %v6285_v21  ;;  %v3270_v21 = vor.u32 %v3269_v62, %v3265_v43  ;;  %v7593_v45 = vsel %vm1166_vm10, %v3412_v5, %v3413_v15  ;;  %v5192_v43 = vcombine.low %v3145_v57, %v3121_v35  ;;  %v6342_v5 = vld [vmem:[%s8069_s5 + $0x238] sm:$0xff]  }
 0x208   : > { %5686 = vmatprep.subr.bf16.mxu1 %v6287_v59  ;;  %v5190_v59 = vcombine.low %v3143_v63, %v3117_v54  ;;  %v3294_v24 = vor.u32 %v3293_v2, %v3289_v53  ;;  %v3122_v63 = vld [vmem:[#allocation3 + $0x48] sm:$0xf]  ;;  %v3422_v53 = vrot.slane %v6331_v17, 1 }
 0x209   : > { %6033 = vmatpush3.bf16.msra.mxu0 %v6286_v8  ;;  %v7537_v8 = vsel %vm1166_vm10, %v3406_v39, %v3407_v51  ;;  %v6334_v51 = vld [vmem:[%s8069_s5 + $0x148] sm:$0xff]  }
 0x20a   : > { %6034 = vmatprep.subr.bf16.mxu0 %v6289_v50  ;;  %v3409_v18 = vrot.slane %v5190_v59, 1  ;;  %v7605_v62 = vsel %vm973_vm9, %v3294_v24, %v3298_v46  ;;  %v3146_v59 = vld [vmem:[#allocation3 + $0x48] sm:$0xe]  ;;  %v3332_v46 = vshll.u32 %v6331_v17, 16  ;;  %v6341_v24 = vld [vmem:[%s8069_s5 + $0x1b0] sm:$0xff]  }
 0x20b   : > { %5687 = vmatpush3.bf16.msra.mxu1 %v6288_v31  ;;  %v7550_v31 = vsel %vm973_vm9, %v3270_v21, %v3274_v38  ;;  %v6327_v21 = vld [vmem:[#allocation3 + $0x50] ss:$0 sps:$4 sm:$0x11]  }
 0x20c   : > { %5752 = vmatprep.subr.bf16.mxu1 %v6292_v49  ;;  %v3286_v49 = vrot.slane %v3284_v14, 1  ;;  %v7560_v33 = vsel %vm1166_vm10, %v3409_v18, %v3410_v42  ;;  %v3419_v18 = vrot.slane %v6327_v21, 1 }
 0x20d   : > { %6035 = vmatpush3.bf16.msra.mxu0 %v6289_v50  ;;  %v3277_v50 = vshrl.u32 %v7531_v61, 16 }
 0x20e   : > { %3665 = vmatmul.mubr.bf16.vlgmr.msra.gmra.mxu1 %v5167_v37  ;;  %6052 = vmatprep.subr.bf16.mxu0 %v6310_v55  ;;  %v3279_v37 = vshll.u32 %v7531_v61, 16 }
 0x20f   : > { %5753 = vmatpush3.bf16.msra.mxu1 %v6294_v36  ;;  %3672 = vmatprep.mubr.bf16.mxu1 %v7525_v32  ;;  %v6322_v36 = vld [vmem:[%s8069_s5 + $0x110] sm:$0xff]  }
 0x210   : > { %6037 = vmatmul.mubr.bf16.vlgmr.msra.gmra.mxu0 %v7508_v28  ;;  %5754 = vmatprep.subr.bf16.mxu1 %v6298_v34  ;;  %v3281_v60 = vrot.slane %v3279_v37, 1  ;;  %v6323_v34 = vld [vmem:[%s8069_s5 + $0xd0] sm:$0xff]   ;;  %v6337_v37 = vld [vmem:[%s8069_s5 + $0xc0] sm:$0xff]  }
 0x211   : > { %6053 = vmatpush3.bf16.msra.mxu0 %v6310_v55  ;;  %6040 = vmatprep.mubr.bf16.mxu0 %v7537_v8  ;;  %v6319_v55 = vld [vmem:[#allocation3 + $0x44] ss:$0 sps:$4 sm:$0x11]  }
 0x212   : > { %6054 = vmatprep.subr.bf16.mxu0 %v6311_v40  ;;  %v3282_v20 = vor.u32 %v3281_v60, %v3277_v50  ;;  %v3416_v19 = vrot.slane %v6319_v55, 1  ;;  %v3308_v54 = vshll.u32 %v6319_v55, 16  ;;  %v5193_v50 = vcombine.low %v3146_v59, %v3123_v41 }
 0x213   : > { %5755 = vmatpush3.bf16.msra.mxu1 %v6299_v11  ;;  %v6329_v11 = vld [vmem:[%s8069_s5 + $0x108] sm:$0xff]   ;;  %v3334_v55 = vrot.slane %v3332_v46, 1 }
 0x214   : > { %5756 = vmatprep.subr.bf16.mxu1 %v6302_v6  ;;  %v7576_v22 = vsel %vm973_vm9, %v3282_v20, %v3286_v49  ;;  %v7590_v6 = vcombine.low %v3120_v3, %v3121_v35  ;;  %v3310_v42 = vrot.slane %v3308_v54, 1  ;;  %v3418_v60 = vrot.slane %v5193_v50, 1  ;;  %v3147_v49 = vld [vmem:[#allocation3 + $0x54] sm:$0xe]  ;;  %v3148_v54 = vld [vmem:[#allocation3 + $0x60] sm:$0xe] }
 0x215   : > { %6055 = vmatpush3.bf16.msra.mxu0 %v6311_v40  ;;  %v3415_v40 = vrot.slane %v5192_v43, 1  ;;  %v3320_v20 = vshll.u32 %v6327_v21, 16  ;;  %v6343_v43 = vld [vmem:[%s8069_s5 + $0x1e8] sm:$0xff]   ;;  %v6351_v21 = vld [vmem:[%s8069_s5 + $0x190] sm:$0xff]  }
 0x216   : > { %3673 = vmatmul.mubr.bf16.gmra.mxu1 %v7492_v48  ;;  %6056 = vmatprep.subr.bf16.mxu0 %v6317_v56  ;;  %v3303_v1 = vshll.u32 %v7590_v6, 16  ;;  %v3301_v47 = vshrl.u32 %v7590_v6, 16  ;;  %v7630_v52 = vsel %vm1166_vm10, %v3418_v60, %v3419_v18  ;;  %v6359_v18 = vld [vmem:[%s8069_s5 + $0x180] sm:$0xff]   ;;  %v3128_v60 = vld [vmem:[#allocation3 + $0x6c] sm:$0xf] }
 0x217   : > { %3680 = vmatprep.mubr.bf16.mxu1 %v7550_v31  ;;  %5757 = vmatpush3.bf16.msra.mxu1 %v6304_v7  ;;  %v7608_v38 = vsel %vm1166_vm10, %v3415_v40, %v3416_v19  ;;  %v6336_v7 = vld [vmem:[%s8069_s5 + $0x100] sm:$0xff]   ;;  %v3322_v15 = vrot.slane %v3320_v20, 1 }
 0x218   : > { %5758 = vmatprep.subr.bf16.mxu1 %v6308_v44  ;;  %6041 = vmatmul.mubr.bf16.gmra.mxu0 %v7560_v33  ;;  %v3305_v39 = vrot.slane %v3303_v1, 1  ;;  %v6335_v44 = vld [vmem:[%s8069_s5 + $0x140] sm:$0xff]   ;;  %v6344_v1 = vld [vmem:[%s8069_s5 + $0x1a8] sm:$0xff]  }
 0x219   : > { %6057 = vmatpush3.bf16.msra.mxu0 %v6317_v56  ;;  %6044 = vmatprep.mubr.bf16.mxu0 %v7593_v45  ;;  %v7615_v56 = vcombine.low %v3122_v63, %v3123_v41  ;;  %v6346_v40 = vld [vmem:[%s8069_s5 + $0x1a0] sm:$0xff]   ;;  %v6350_v63 = vld [vmem:[%s8069_s5 + $0x1d0] sm:$0xff]  }
 0x21a   : > { %6058 = vmatprep.subr.bf16.mxu0 %v6321_v10  ;;  %v3306_v14 = vor.u32 %v3305_v39, %v3301_v47  ;;  %v7688_v47 = vld [vmem:[#allocation3 + $0x64] sm:$0xf]  ;;  %v7690_v39 = vld [vmem:[#allocation3 + $0x68] ss:$0 sps:$4 sm:$0x11]  }
 0x21b   : > { %5759 = vmatpush3.bf16.msra.mxu1 %v6309_v25  ;;  %v3315_v25 = vshll.u32 %v7615_v56, 16  ;;  %v3313_v9 = vshrl.u32 %v7615_v56, 16  ;;  %v5195_v41 = vcombine.low %v3148_v54, %v7688_v47 }
 0x21c   : > { %5760 = vmatprep.subr.bf16.mxu1 %v6314_v0  ;;  %v3124_v0 = vld [vmem:[#allocation3 + $0x54] sm:$0xf] }
 0x21d   : > { %6059 = vmatpush3.bf16.msra.mxu0 %v6321_v10  ;;  %v3125_v10 = vld [vmem:[#allocation3 + $0x58] sm:$0xf]  ;;  %v3317_v26 = vrot.slane %v3315_v25, 1  ;;  %v3424_v59 = vrot.slane %v5195_v41, 1 }
 0x21e   : > { %3681 = vmatmul.mubr.bf16.gmra.mxu1 %v7510_v29  ;;  %6060 = vmatprep.subr.bf16.mxu0 %v6324_v30  ;;  %v7632_v12 = vcombine.low %v3124_v0, %v3125_v10  ;;  %v6352_v25 = vld [vmem:[%s8069_s5 + $0x228] sm:$0xff]   ;;  %v6362_v0 = vld [vmem:[%s8069_s5 + $0x210] sm:$0xff]  }
 0x21f   : > { %3688 = vmatprep.mubr.bf16.mxu1 %v7576_v22  ;;  %5761 = vmatpush3.bf16.msra.mxu1 %v6316_v16  ;;  %v5194_v16 = vcombine.low %v3147_v49, %v3125_v10  ;;  %v3318_v3 = vor.u32 %v3317_v26, %v3313_v9  ;;  %v3129_v49 = vld [vmem:[#allocation3 + $0x70] sm:$0xf]  ;;  %v3344_v26 = vshll.u32 %v7690_v39, 16 }
 0x220   : > { %5762 = vmatprep.subr.bf16.mxu1 %v6322_v36  ;;  %6045 = vmatmul.mubr.bf16.gmra.mxu0 %v7608_v38  ;;  %v7635_v36 = vsel %vm973_vm9, %v3306_v14, %v3310_v42  ;;  %v3327_v2 = vshll.u32 %v7632_v12, 16  ;;  %v6356_v42 = vld [vmem:[%s8069_s5 + $0x1c8] sm:$0xff]   ;;  %v6358_v14 = vld [vmem:[%s8069_s5 + $0x1c0] sm:$0xff]   ;;  %v5176_v20 = vcombine.low %v3128_v60, %v3129_v49 }
 0x221   : > { %6061 = vmatpush3.bf16.msra.mxu0 %v6324_v30  ;;  %6048 = vmatprep.mubr.bf16.mxu0 %v7630_v52  ;;  %v3421_v30 = vrot.slane %v5194_v16, 1  ;;  %v7654_v35 = vsel %vm973_vm9, %v3318_v3, %v3322_v15  ;;  %v3346_v16 = vrot.slane %v3344_v26, 1 }
 0x222   : > { %6062 = vmatprep.subr.bf16.mxu0 %v6325_v27 }
 0x223   : > { %5763 = vmatpush3.bf16.msra.mxu1 %v6323_v34  ;;  %v7640_v23 = vsel %vm1166_vm10, %v3421_v30, %v3422_v53  ;;  %v6339_v34 = vld [vmem:[%s8069_s5 + $0x1b8] sm:$0xff]   ;;  %v3349_v30 = vshrl.u32 %v5176_v20, 16 }
 0x224   : > { %5764 = vmatprep.subr.bf16.mxu1 %v6329_v11  ;;  %v3329_v11 = vrot.slane %v3327_v2, 1 }
 0x225   : > { %6063 = vmatpush3.bf16.msra.mxu0 %v6325_v27  ;;  %v3325_v27 = vshrl.u32 %v7632_v12, 16 }
 0x226   : > { %3689 = vmatmul.mubr.bf16.gmra.mxu1 %v7531_v61  ;;  %6064 = vmatprep.subr.bf16.mxu0 %v6334_v51 }
 0x227   : > { %3696 = vmatprep.mubr.bf16.mxu1 %v7605_v62  ;;  %5765 = vmatpush3.bf16.msra.mxu1 %v6333_v13  ;;  %v3330_v57 = vor.u32 %v3329_v11, %v3325_v27  ;;  %v6345_v13 = vld [vmem:[%s8069_s5 + $0x1e0] sm:$0xff]  }
 0x228   : > { %5766 = vmatprep.subr.bf16.mxu1 %v6336_v7  ;;  %6049 = vmatmul.mubr.bf16.gmra.mxu0 %v7640_v23  ;;  %v6349_v7 = vld [vmem:[%s8069_s5 + $0x198] sm:$0xff]  }
 0x229   : > { %6065 = vmatpush3.bf16.msra.mxu0 %v6334_v51  ;;  %6068 = vmatprep.mubr.bf16.mxu0 %v7508_v28  ;;  %v6340_v28 = vld [vmem:[%s8069_s5 + $0x1f0] sm:$0xff]   ;;  %v7670_v19 = vsel %vm973_vm9, %v3330_v57, %v3334_v55  ;;  %v6348_v51 = vld [vmem:[%s8069_s5 + $0x1d8] sm:$0xff]  }
 0x22a   : > { %6066 = vmatprep.subr.bf16.mxu0 %v6335_v44 }
 0x22b   : > { %5767 = vmatpush3.bf16.msra.mxu1 %v6337_v37  ;;  %v6357_v37 = vld [vmem:[%s8069_s5 + $0x188] sm:$0xff]  }
 0x22c   : > { %6084 = vmatprep.subr.bf16.mxu1 %v6342_v5 }
 0x22d   : > { %6067 = vmatpush3.bf16.msra.mxu0 %v6335_v44  ;;  %v3425_v44 = vrot.slane %v7690_v39, 1 }
 0x22e   : > { %3697 = vmatmul.mubr.bf16.gmra.mxu1 %v7563_v58  ;;  %5832 = vmatprep.subr.bf16.mxu0 %v6338_v4  ;;  %v3351_v4 = vshll.u32 %v5176_v20, 16 }
 0x22f   : > { %3704 = vmatprep.mubr.bf16.mxu1 %v7635_v36  ;;  %v7714_v50 = vsel %vm1166_vm10, %v3424_v59, %v3425_v44 }
 0x230   : > { %6069 = vmatmul.mubr.bf16.vlgmr.msra.gmra.mxu0 %v7537_v8  ;;  %v3353_v53 = vrot.slane %v3351_v4, 1 }
 0x231   : > { %5833 = vmatpush3.bf16.msra.mxu0 %v6339_v34  ;;  %6072 = vmatprep.mubr.bf16.mxu0 %v7560_v33 }
 0x232   : > { %5834 = vmatprep.subr.bf16.mxu0 %v6340_v28  ;;  %v3354_v2 = vor.u32 %v3353_v53, %v3349_v30 }
 0x235   : > { %5835 = vmatpush3.bf16.msra.mxu0 %v6341_v24 }
 0x236   : > { %3705 = vmatmul.mubr.bf16.gmra.mxu1 %v7590_v6  ;;  %5836 = vmatprep.subr.bf16.mxu0 %v6343_v43 }
 0x237   : > { %3712 = vmatprep.mubr.bf16.mxu1 %v7654_v35 }
 0x238   : > { %6073 = vmatmul.mubr.bf16.gmra.mxu0 %v7593_v45 }
 0x239   : > { %5837 = vmatpush3.bf16.msra.mxu0 %v6344_v1  ;;  %6076 = vmatprep.mubr.bf16.mxu0 %v7608_v38 }
 0x23a   : > { %5838 = vmatprep.subr.bf16.mxu0 %v6345_v13 }
 0x23d   : > { %5839 = vmatpush3.bf16.msra.mxu0 %v6346_v40 }
 0x23e   : > { %3713 = vmatmul.mubr.bf16.gmra.mxu1 %v7615_v56  ;;  %5840 = vmatprep.subr.bf16.mxu0 %v6348_v51 }
 0x23f   : > { %3720 = vmatprep.mubr.bf16.mxu1 %v7670_v19 }
 0x240   : > { %6077 = vmatmul.mubr.bf16.gmra.mxu0 %v7630_v52 }
 0x241   : > { %5841 = vmatpush3.bf16.msra.mxu0 %v6349_v7  ;;  %6080 = vmatprep.mubr.bf16.mxu0 %v7640_v23 }
 0x242   : > { %5842 = vmatprep.subr.bf16.mxu0 %v6350_v63 }
 0x245   : > { %5843 = vmatpush3.bf16.msra.mxu0 %v6351_v21 }
 0x246   : > { %3721 = vmatmul.mubr.bf16.gmra.mxu1 %v7632_v12  ;;  %5844 = vmatprep.subr.bf16.mxu0 %v6356_v42 }
 0x247   : > { %4067 = vmatprep.mubr.bf16.mxu1 %v7525_v32  ;;  %v6347_v32 = vld [vmem:[%s8069_s5 + $0x230] sm:$0xff]  }
 0x248   : > { %6081 = vmatmul.mubr.bf16.gmra.mxu0 %v7714_v50 }
 0x249   : > { %5845 = vmatpush3.bf16.msra.mxu0 %v6357_v37  ;;  %4502 = vmatprep.mubr.bf16.mxu0 %v7550_v31 }
 0x24a   : > { %5846 = vmatprep.subr.bf16.mxu0 %v6358_v14 }
 0x24d   : > { %5847 = vmatpush3.bf16.msra.mxu0 %v6359_v18 }
 0x24e   : > { %4068 = vmatmul.mubr.bf16.vlgmr.msra.gmra.mxu1 %v7492_v48  ;;  %v6360_v48 = vld [vmem:[%s8069_s5 + $0x220] sm:$0xff]  }
 0x24f   : > { %6085 = vmatpush3.bf16.msra.mxu1 %v6342_v5  ;;  %4075 = vmatprep.mubr.bf16.mxu1 %v7550_v31  ;;  %v6361_v31 = vld [vmem:[%s8069_s5 + $0x218] sm:$0xff]  }
 0x250   : > { %6086 = vmatprep.subr.bf16.mxu1 %v6347_v32  ;;  %4503 = vmatmul.mubr.bf16.vlgmr.msra.gmra.mxu0 %v7510_v29 }
 0x251   : > { %4510 = vmatprep.mubr.bf16.mxu0 %v7576_v22 }
 0x253   : > { %6087 = vmatpush3.bf16.msra.mxu1 %v6347_v32 }
 0x254   : > { %6088 = vmatprep.subr.bf16.mxu1 %v6352_v25 }
 0x256   : > { %4076 = vmatmul.mubr.bf16.gmra.mxu1 %v7510_v29  ;;  %v6363_v29 = vld [vmem:[%s8069_s5 + $0x208] sm:$0xff]  }
 0x257   : > { %4083 = vmatprep.mubr.bf16.mxu1 %v7576_v22  ;;  %6089 = vmatpush3.bf16.msra.mxu1 %v6352_v25  ;;  %v6364_v22 = vld [vmem:[%s8069_s5 + $0x200] sm:$0xff]  }
 0x258   : > { %6090 = vmatprep.subr.bf16.mxu1 %v6360_v48  ;;  %4511 = vmatmul.mubr.bf16.gmra.mxu0 %v7531_v61 }
 0x259   : > { %4518 = vmatprep.mubr.bf16.mxu0 %v7605_v62 }
 0x25b   : > { %6091 = vmatpush3.bf16.msra.mxu1 %v6360_v48 }
 0x25c   : > { %6092 = vmatprep.subr.bf16.mxu1 %v6361_v31 }
 0x25e   : > { %4084 = vmatmul.mubr.bf16.gmra.mxu1 %v7531_v61  ;;  %v3126_v61 = vld [vmem:[#allocation3 + $0x60] sm:$0xf] }
 0x25f   : > { %4091 = vmatprep.mubr.bf16.mxu1 %v7605_v62  ;;  %6093 = vmatpush3.bf16.msra.mxu1 %v6361_v31  ;;  %v5175_v62 = vcombine.low %v3126_v61, %v7688_v47 }
 0x260   : > { %6094 = vmatprep.subr.bf16.mxu1 %v6362_v0  ;;  %4519 = vmatmul.mubr.bf16.gmra.mxu0 %v7563_v58 }
 0x261   : > { %4526 = vmatprep.mubr.bf16.mxu0 %v7635_v36  ;;  %v3339_v10 = vshll.u32 %v5175_v62, 16  ;;  %v3337_v9 = vshrl.u32 %v5175_v62, 16 }
 0x263   : > { %6095 = vmatpush3.bf16.msra.mxu1 %v6362_v0 }
 0x264   : > { %6096 = vmatprep.subr.bf16.mxu1 %v6363_v29 }
 0x266   : > { %4092 = vmatmul.mubr.bf16.gmra.mxu1 %v7563_v58  ;;  %v3341_v58 = vrot.slane %v3339_v10, 1 }
 0x267   : > { %4099 = vmatprep.mubr.bf16.mxu1 %v7635_v36  ;;  %6097 = vmatpush3.bf16.msra.mxu1 %v6363_v29 }
 0x268   : > { %6098 = vmatprep.subr.bf16.mxu1 %v6364_v22  ;;  %4527 = vmatmul.mubr.bf16.gmra.mxu0 %v7590_v6  ;;  %v3342_v17 = vor.u32 %v3341_v58, %v3337_v9 }
 0x269   : > { %4534 = vmatprep.mubr.bf16.mxu0 %v7654_v35 }
 0x26a   : > { %v3347_v36 = vsel %vm973_vm9, %v3342_v17, %v3346_v16 }
 0x26b   : > { %6099 = vmatpush3.bf16.msra.mxu1 %v6364_v22 }
 0x26e   : > { %4100 = vmatmul.mubr.bf16.gmra.mxu1 %v7590_v6  ;;  %v6366_v6 = vld [vmem:[#allocation3 + $0x74] ss:$0 sps:$4 sm:$0x11]  }
 0x26f   : > { %4107 = vmatprep.mubr.bf16.mxu1 %v7654_v35  ;;  %v3356_v15 = vshll.u32 %v6366_v6, 16  ;;  %v3428_v5 = vrot.slane %v6366_v6, 1 }
 0x270   : > { %4535 = vmatmul.mubr.bf16.gmra.mxu0 %v7615_v56 }
 0x271   : > { %4542 = vmatprep.mubr.bf16.mxu0 %v7670_v19  ;;  %v3358_v3 = vrot.slane %v3356_v15, 1 }
 0x276   : > { %4108 = vmatmul.mubr.bf16.gmra.mxu1 %v7615_v56  ;;  %v3359_v56 = vsel %vm973_vm9, %v3354_v2, %v3358_v3 }
 0x277   : > { %4115 = vmatprep.mubr.bf16.mxu1 %v7670_v19 }
 0x278   : > { %4543 = vmatmul.mubr.bf16.gmra.mxu0 %v7632_v12 }
 0x279   : > { %4550 = vmatprep.mubr.bf16.mxu0 %v3347_v36 }
 0x27e   : > { %4116 = vmatmul.mubr.bf16.gmra.mxu1 %v7632_v12  ;;  %v3149_v12 = vld [vmem:[#allocation3 + $0x6c] sm:$0xe] }
 0x27f   : > { %4123 = vmatprep.mubr.bf16.mxu1 %v3347_v36  ;;  %v5196_v34 = vcombine.low %v3149_v12, %v3129_v49 }
 0x280   : > { %4551 = vmatmul.mubr.bf16.gmra.mxu0 %v5175_v62 }
 0x281   : > { %4558 = vmatprep.mubr.bf16.mxu0 %v3359_v56  ;;  %v3427_v27 = vrot.slane %v5196_v34, 1 }
 0x286   : > { %4124 = vmatmul.mubr.bf16.gmra.mxu1 %v5175_v62 }
 0x287   : > { %6100 = vmatprep.mubr.bf16.mxu1 %v7537_v8  ;;  %v3429_v8 = vsel %vm1166_vm10, %v3427_v27, %v3428_v5 }
 0x288   : > { %4559 = vmatmul.mubr.bf16.gmra.mxu0 %v5176_v20 }
 0x28e   : > { %6101 = vmatmul.mubr.bf16.vlgmr.msra.gmra.mxu1 %v7560_v33 }
 0x28f   : > { %6104 = vmatprep.mubr.bf16.mxu1 %v7593_v45 }
 0x296   : > { %6105 = vmatmul.mubr.bf16.gmra.mxu1 %v7608_v38 }
 0x297   : > { %6108 = vmatprep.mubr.bf16.mxu1 %v7630_v52 }
 0x29e   : > { %6109 = vmatmul.mubr.bf16.gmra.mxu1 %v7640_v23 }
 0x29f   : > { %6112 = vmatprep.mubr.bf16.mxu1 %v7714_v50 }
 0x2a6   : > { %6113 = vmatmul.mubr.bf16.gmra.mxu1 %v3429_v8 }
 0x2ce   : > { %v5688_v35 = vpop.f32.mrf.mxu1 }
 0x2d0   : > { %v6038_v33 = vpop.f32.mrf.mxu0  ;;  %v5689_v11 = vpop.f32.mrf.mxu1 }
 0x2d1   : > { %v5690_v45 = vadd.f32 %v5689_v11, %v5688_v35 }
 0x2d2   : > { %v3763_v46 = vpop.f32.mrf.mxu0  ;;  %v5691_v28 = vpop.f32.mrf.mxu1 }
 0x2d3   : > { %v7781_v38 = vadd.f32 %v5690_v45, %v3763_v46 }
 0x2d4   : > { %v6039_v52 = vpop.f32.mrf.mxu0  ;;  %v5692_v57 = vpop.f32.mrf.mxu1 }
 0x2d5   : > { %v5693_v55 = vadd.f32 %v5692_v57, %v5691_v28 }
 0x2d6   : > { %v3766_v24 = vpop.f32.mrf.mxu0  ;;  %v5694_v23 = vpop.f32.mrf.mxu1 }
 0x2d7   : > { %v7783_v43 = vadd.f32 %v5693_v55, %v3766_v24 }
 0x2d8   : > { %v5695_v19 = vpop.f32.mrf.mxu1  ;;  %v6042_v13 = vpop.f32.mrf.mxu0 }
 0x2d9   : > { %v5696_v1 = vadd.f32 %v5695_v19, %v5694_v23 }
 0x2da   : > { %v5697_v40 = vpop.f32.mrf.mxu1  ;;  %v3779_v47 = vpop.f32.mrf.mxu0 }
 0x2db   : > { %v7785_v51 = vadd.f32 %v6038_v33, %v5696_v1 }
 0x2dc   : > { %v5698_v54 = vpop.f32.mrf.mxu1  ;;  %v6043_v41 = vpop.f32.mrf.mxu0 }
 0x2dd   : > { %v5699_v39 = vadd.f32 %v5698_v54, %v5697_v40 }
 0x2de   : > { %v5700_v7 = vpop.f32.mrf.mxu1  ;;  %v3782_v32 = vpop.f32.mrf.mxu0 }
 0x2df   : > { %v7787_v63 = vadd.f32 %v6039_v52, %v5699_v39 }
 0x2e0   : > { %v5701_v21 = vpop.f32.mrf.mxu1  ;;  %v6046_v14 = vpop.f32.mrf.mxu0 }
 0x2e1   : > { %v5702_v59 = vadd.f32 %v5701_v21, %v5700_v7 }
 0x2e2   : > { %v5703_v44 = vpop.f32.mrf.mxu1  ;;  %v3795_v48 = vpop.f32.mrf.mxu0 }
 0x2e3   : > { %v7789_v42 = vadd.f32 %v5702_v59, %v3779_v47 }
 0x2e4   : > { %v5704_v50 = vpop.f32.mrf.mxu1  ;;  %v6047_v29 = vpop.f32.mrf.mxu0 }
 0x2e5   : > { %v5705_v37 = vadd.f32 %v5704_v50, %v5703_v44 }
 0x2e6   : > { %v5706_v25 = vpop.f32.mrf.mxu1  ;;  %v3798_v60 = vpop.f32.mrf.mxu0 }
 0x2e7   : > { %v7791_v18 = vadd.f32 %v5705_v37, %v3782_v32 }
 0x2e8   : > { %v5707_v31 = vpop.f32.mrf.mxu1  ;;  %v6050_v58 = vpop.f32.mrf.mxu0 }
 0x2e9   : > { %v5708_v0 = vadd.f32 %v5707_v31, %v5706_v25 }
 0x2ea   : > { %v5709_v22 = vpop.f32.mrf.mxu1  ;;  %v3811_v17 = vpop.f32.mrf.mxu0 }
 0x2eb   : > { %v7793_v61 = vadd.f32 %v6042_v13, %v5708_v0 }
 0x2ec   : > { %v5710_v62 = vpop.f32.mrf.mxu1  ;;  %v6051_v4 = vpop.f32.mrf.mxu0 }
 0x2ed   : > { %v5711_v10 = vadd.f32 %v5710_v62, %v5709_v22 }
 0x2ee   : > { %v5712_v49 = vpop.f32.mrf.mxu1  ;;  %v3814_v53 = vpop.f32.mrf.mxu0 }
 0x2ef   : > { %v7795_v9 = vadd.f32 %v6043_v41, %v5711_v10 }
 0x2f0   : > { %v5713_v26 = vpop.f32.mrf.mxu1  ;;  %v6070_v3 = vpop.f32.mrf.mxu0 }
 0x2f1   : > { %v5714_v20 = vadd.f32 %v5713_v26, %v5712_v49 }
 0x2f2   : > { %v5715_v16 = vpop.f32.mrf.mxu1  ;;  %v4166_v34 = vpop.f32.mrf.mxu0 }
 0x2f3   : > { %v7797_v6 = vadd.f32 %v5714_v20, %v3795_v48 }
 0x2f4   : > { %v5716_v36 = vpop.f32.mrf.mxu1  ;;  %v6071_v8 = vpop.f32.mrf.mxu0 }
 0x2f5   : > { %v5717_v30 = vadd.f32 %v5716_v36, %v5715_v16 }
 0x2f6   : > { %v5718_v15 = vpop.f32.mrf.mxu1  ;;  %v4169_v11 = vpop.f32.mrf.mxu0 }
 0x2f7   : > { %v7799_v2 = vadd.f32 %v5717_v30, %v3798_v60 }
 0x2f8   : > { %v5719_v56 = vpop.f32.mrf.mxu1  ;;  %v7805_v28 = vpop.f32.mrf.mxu0 }
 0x2f9   : > { %v5720_v12 = vadd.f32 %v5719_v56, %v5718_v15 }
 0x2fa   : > { %v5721_v27 = vpop.f32.mrf.mxu1  ;;  %v4182_v55 = vpop.f32.mrf.mxu0 }
 0x2fb   : > { %v7801_v5 = vadd.f32 %v6046_v14, %v5720_v12 }
 0x2fc   : > { %v5722_v35 = vpop.f32.mrf.mxu1  ;;  %v7809_v19 = vpop.f32.mrf.mxu0 }
 0x2fd   : > { %v5723_v33 = vadd.f32 %v5722_v35, %v5721_v27 }
 0x2fe   : > { %v5724_v45 = vpop.f32.mrf.mxu1  ;;  %v4185_v40 = vpop.f32.mrf.mxu0 }
 0x2ff   : > { %v7803_v46 = vadd.f32 %v6047_v29, %v5723_v33 }
 0x300   : > { %v5725_v52 = vpop.f32.mrf.mxu1  ;;  %v7813_v39 = vpop.f32.mrf.mxu0 }
 0x301   : > { %v5726_v57 = vadd.f32 %v5725_v52, %v5724_v45 }
 0x302   : > { %v5727_v24 = vpop.f32.mrf.mxu1  ;;  %v7815_v21 = vpop.f32.mrf.mxu0 }
 0x303   : > { %v7807_v23 = vadd.f32 %v5726_v57, %v3811_v17 }
 0x304   : > { %v5728_v1 = vpop.f32.mrf.mxu1  ;;  %v7819_v32 = vpop.f32.mrf.mxu0 }
 0x305   : > { %v5729_v13 = vadd.f32 %v5728_v1, %v5727_v24 }
 0x306   : > { %v5730_v47 = vpop.f32.mrf.mxu1  ;;  %v7821_v14 = vpop.f32.mrf.mxu0 }
 0x307   : > { %v7811_v54 = vadd.f32 %v5729_v13, %v3814_v53 }
 0x308   : > { %v5731_v7 = vpop.f32.mrf.mxu1  ;;  %v7825_v0 = vpop.f32.mrf.mxu0 }
 0x309   : > { %v5732_v41 = vadd.f32 %v5731_v7, %v5730_v47 }
 0x30a   : > { %v5733_v59 = vpop.f32.mrf.mxu1  ;;  %v7827_v62 = vpop.f32.mrf.mxu0 }
 0x30b   : > { %v7817_v44 = vadd.f32 %v6050_v58, %v5732_v41 }
 0x30c   : > { %v5734_v50 = vpop.f32.mrf.mxu1  ;;  %v7829_v49 = vpop.f32.mrf.mxu0 }
 0x30d   : > { %v5735_v37 = vadd.f32 %v5734_v50, %v5733_v59 }
 0x30e   : > { %v5768_v25 = vpop.f32.mrf.mxu1  ;;  %v7834_v17 = vpop.f32.mrf.mxu0 }
 0x30f   : > { %v7823_v48 = vadd.f32 %v6051_v4, %v5735_v37 }
 0x310   : > { %v5769_v31 = vpop.f32.mrf.mxu1  ;;  %v7836_v36 = vpop.f32.mrf.mxu0 }
 0x311   : > { %v5770_v29 = vadd.f32 %v5769_v31, %v5768_v25 }
 0x312   : > { %v5771_v22 = vpop.f32.mrf.mxu1  ;;  %v7841_v56 = vpop.f32.mrf.mxu0 }
 0x313   : > { %v4167_v10 = vadd.f32 %v5770_v29, %v4166_v34 }
 0x314   : > { %v5772_v60 = vpop.f32.mrf.mxu1  ;;  %v7843_v27 = vpop.f32.mrf.mxu0 }
 0x315   : > { %v5773_v58 = vadd.f32 %v5772_v60, %v5771_v22  ;;  %v7832_v26 = vadd.f32 %v4167_v10, %v7781_v38 }
 0x316   : > { %v5774_v20 = vpop.f32.mrf.mxu1 }
 0x317   : > { %v4170_v16 = vadd.f32 %v5773_v58, %v4169_v11  ;;  %v7848_v11 = vpop.f32.mrf.mxu0 }
 0x318   : > { %v5775_v4 = vpop.f32.mrf.mxu1 }
 0x319   : > { %v5776_v30 = vadd.f32 %v5775_v4, %v5774_v20  ;;  %v7839_v53 = vadd.f32 %v4170_v16, %v7783_v43  ;;  %v7850_v57 = vpop.f32.mrf.mxu0 }
 0x31a   : > { %v5777_v15 = vpop.f32.mrf.mxu1 }
 0x31b   : > { %v4175_v12 = vadd.f32 %v6070_v3, %v5776_v30  ;;  %v7855_v3 = vpop.f32.mrf.mxu0 }
 0x31c   : > { %v5778_v34 = vpop.f32.mrf.mxu1 }
 0x31d   : > { %v5779_v38 = vadd.f32 %v5778_v34, %v5777_v15  ;;  %v7846_v35 = vadd.f32 %v4175_v12, %v7785_v51  ;;  %v7857_v7 = vpop.f32.mrf.mxu0 }
 0x31e   : > { %v5780_v33 = vpop.f32.mrf.mxu1 }
 0x31f   : > { %v4178_v45 = vadd.f32 %v6071_v8, %v5779_v38  ;;  %v7862_v8 = vpop.f32.mrf.mxu0 }
 0x320   : > { %v5781_v52 = vpop.f32.mrf.mxu1 }
 0x321   : > { %v5782_v43 = vadd.f32 %v5781_v52, %v5780_v33  ;;  %v7853_v24 = vadd.f32 %v4178_v45, %v7787_v63  ;;  %v7864_v25 = vpop.f32.mrf.mxu0 }
 0x322   : > { %v5783_v1 = vpop.f32.mrf.mxu1 }
 0x323   : > { %v4183_v13 = vadd.f32 %v5782_v43, %v4182_v55  ;;  %v7869_v55 = vpop.f32.mrf.mxu0 }
 0x324   : > { %v5784_v47 = vpop.f32.mrf.mxu1 }
 0x325   : > { %v5785_v51 = vadd.f32 %v5784_v47, %v5783_v1  ;;  %v7860_v41 = vadd.f32 %v4183_v13, %v7789_v42  ;;  %v7872_v60 = vpop.f32.mrf.mxu0 }
 0x326   : > { %v5786_v59 = vpop.f32.mrf.mxu1 }
 0x327   : > { %v4186_v50 = vadd.f32 %v5785_v51, %v4185_v40  ;;  %v7877_v20 = vpop.f32.mrf.mxu0 }
 0x328   : > { %v5787_v37 = vpop.f32.mrf.mxu1 }
 0x329   : > { %v5788_v63 = vadd.f32 %v5787_v37, %v5786_v59  ;;  %v7867_v31 = vadd.f32 %v4186_v50, %v7791_v18  ;;  %v7880_v18 = vpop.f32.mrf.mxu0 }
 0x32a   : > { %v5789_v29 = vpop.f32.mrf.mxu1 }
 0x32b   : > { %v4191_v22 = vadd.f32 %v7805_v28, %v5788_v63  ;;  %v7885_v12 = vpop.f32.mrf.mxu0 }
 0x32c   : > { %v5790_v10 = vpop.f32.mrf.mxu1 }
 0x32d   : > { %v5791_v42 = vadd.f32 %v5790_v10, %v5789_v29  ;;  %v7875_v58 = vadd.f32 %v4191_v22, %v7793_v61  ;;  %v7888_v61 = vpop.f32.mrf.mxu0 }
 0x32e   : > { %v5792_v40 = vpop.f32.mrf.mxu1 }
 0x32f   : > { %v4194_v16 = vadd.f32 %v7809_v19, %v5791_v42  ;;  %v7893_v52 = vpop.f32.mrf.mxu0 }
 0x330   : > { %v5793_v4 = vpop.f32.mrf.mxu1 }
 0x331   : > { %v5794_v30 = vadd.f32 %v5793_v4, %v5792_v40  ;;  %v7883_v15 = vadd.f32 %v4194_v16, %v7795_v9  ;;  %v7896_v9 = vpop.f32.mrf.mxu0 }
 0x332   : > { %v5795_v28 = vpop.f32.mrf.mxu1 }
 0x333   : > { %v4199_v34 = vadd.f32 %v5794_v30, %v7815_v21  ;;  %v7901_v51 = vpop.f32.mrf.mxu0 }
 0x334   : > { %v5796_v38 = vpop.f32.mrf.mxu1 }
 0x335   : > { %v5797_v33 = vadd.f32 %v5796_v38, %v5795_v28  ;;  %v7891_v45 = vadd.f32 %v4199_v34, %v7797_v6  ;;  %v7904_v6 = vpop.f32.mrf.mxu0 }
 0x336   : > { %v5798_v19 = vpop.f32.mrf.mxu1 }
 0x337   : > { %v4202_v43 = vadd.f32 %v5797_v33, %v7821_v14  ;;  %v7909_v29 = vpop.f32.mrf.mxu0 }
 0x338   : > { %v5799_v1 = vpop.f32.mrf.mxu1 }
 0x339   : > { %v5800_v13 = vadd.f32 %v5799_v1, %v5798_v19  ;;  %v7899_v47 = vadd.f32 %v4202_v43, %v7799_v2  ;;  %v7912_v2 = vpop.f32.mrf.mxu0 }
 0x33a   : > { %v5801_v21 = vpop.f32.mrf.mxu1 }
 0x33b   : > { %v4207_v59 = vadd.f32 %v7813_v39, %v5800_v13  ;;  %v7917_v16 = vpop.f32.mrf.mxu0 }
 0x33c   : > { %v5802_v50 = vpop.f32.mrf.mxu1 }
 0x33d   : > { %v5803_v37 = vadd.f32 %v5802_v50, %v5801_v21  ;;  %v7907_v63 = vadd.f32 %v4207_v59, %v7801_v5  ;;  %v7920_v5 = vpop.f32.mrf.mxu0 }
 0x33e   : > { %v5804_v14 = vpop.f32.mrf.mxu1 }
 0x33f   : > { %v4210_v22 = vadd.f32 %v7819_v32, %v5803_v37  ;;  %v7926_v33 = vpop.f32.mrf.mxu0  ;;  %v5850_v37 = vadd.f32 %v7841_v56, %v7836_v36  ;;  %v5853_v56 = vadd.f32 %v7848_v11, %v7843_v27  ;;  %v5868_v27 = vadd.f32 %v7885_v12, %v7880_v18 }
 0x340   : > { %v5805_v10 = vpop.f32.mrf.mxu1 }
 0x341   : > { %v5806_v42 = vadd.f32 %v5805_v10, %v5804_v14  ;;  %v7915_v40 = vadd.f32 %v4210_v22, %v7803_v46  ;;  %v7932_v13 = vpop.f32.mrf.mxu0 }
 0x342   : > { %v5807_v39 = vpop.f32.mrf.mxu1 }
 0x343   : > { %v4215_v4 = vadd.f32 %v5806_v42, %v7827_v62  ;;  %v7942_v22 = vpop.f32.mrf.mxu0 }
 0x344   : > { %v5808_v30 = vpop.f32.mrf.mxu1 }
 0x345   : > { %v5809_v28 = vadd.f32 %v5808_v30, %v5807_v39  ;;  %v7923_v34 = vadd.f32 %v4215_v4, %v7807_v23  ;;  %v5856_v23 = vadd.f32 %v7855_v3, %v7850_v57  ;;  %v5859_v57 = vadd.f32 %v7862_v8, %v7857_v7  ;;  %v7964_v8 = vpop.f32.mrf.mxu0 }
 0x346   : > { %v5810_v32 = vpop.f32.mrf.mxu1 }
 0x347   : > { %v4218_v38 = vadd.f32 %v5809_v28, %v7834_v17 }
 0x348   : > { %v5811_v19 = vpop.f32.mrf.mxu1 }
 0x349   : > { %v5812_v46 = vadd.f32 %v5811_v19, %v5810_v32  ;;  %v7929_v43 = vadd.f32 %v4218_v38, %v7811_v54  ;;  %v5862_v38 = vadd.f32 %v7869_v55, %v7864_v25 }
 0x34a   : > { %v5813_v1 = vpop.f32.mrf.mxu1 }
 0x34b   : > { %v4223_v62 = vadd.f32 %v7825_v0, %v5812_v46  ;;  %v7947_v0 = vld [vmem:[%s8070_s6] ss:$0 sm:$0xff] }
 0x34c   : > { %v5814_v21 = vpop.f32.mrf.mxu1 }
 0x34d   : > { %v5815_v59 = vadd.f32 %v5814_v21, %v5813_v1  ;;  %v7937_v50 = vadd.f32 %v4223_v62, %v7817_v44  ;;  %v7976_v62 = vpop.f32.mrf.mxu0 }
 0x34e   : > { %v6102_v17 = vpop.f32.mrf.mxu1 }
 0x34f   : > { %v4226_v54 = vadd.f32 %v7829_v49, %v5815_v59  ;;  %v4610_v14 = vadd.f32 %v6102_v17, %v5856_v23  ;;  %v7958_v49 = vld [vmem:[%s8071_s7] ss:$0 sm:$0xff]  ;;  %v5865_v59 = vadd.f32 %v7877_v20, %v7872_v60 }
 0x350   : > { %v4601_v10 = vpop.f32.mrf.mxu1 }
 0x351   : > { %v4682_v44 = vadd.f32 %v4610_v14, %v7846_v35  ;;  %v4602_v3 = vadd.f32 %v5850_v37, %v4601_v10  ;;  %v7953_v42 = vadd.f32 %v4226_v54, %v7823_v48  ;;  %v5890_v14 = vpop.f32.mrf.mxu0  ;;  %v5880_v10 = vadd.f32 %v7917_v16, %v7912_v2 }
 0x352   : > { %v6103_v36 = vpop.f32.mrf.mxu1 }
 0x353   : > { %v4737_v39 = vmul.f32 %v7947_v0, %v4682_v44  ;;  %v4680_v4 = vadd.f32 %v4602_v3, %v7832_v26  ;;  %v4613_v7 = vadd.f32 %v6103_v36, %v5859_v57 }
 0x354   : > { %v4604_v35 = vpop.f32.mrf.mxu1 }
 0x355   : > { %v4760_v48 = vadd.f32 %v7958_v49, %v4737_v39  ;;  %v4735_v30 = vmul.f32 %v7947_v0, %v4680_v4  ;;  %v4683_v28 = vadd.f32 %v4613_v7, %v7853_v24  ;;  %v4605_v32 = vadd.f32 %v5853_v56, %v4604_v35  ;;  %v5891_v4 = vpop.f32.mrf.mxu0 }
 0x356   : > { %v6106_v11 = vpop.f32.mrf.mxu1  ;;  %v5871_v24 = vadd.f32 %v7893_v52, %v7888_v61  ;;  %v5874_v7 = vadd.f32 %v7901_v51, %v7896_v9 }
 0x357   : > { %v4776_v26 = vmax.f32 %v4760_v48, 0.0  ;;  %v4758_v19 = vadd.f32 %v7958_v49, %v4735_v30  ;;  %v4738_v46 = vmul.f32 %v7947_v0, %v4683_v28  ;;  %v4681_v1 = vadd.f32 %v4605_v32, %v7839_v53 }
 0x358   : > { %v4626_v21 = vadd.f32 %v6106_v11, %v5868_v27  ;;  %v4617_v23 = vpop.f32.mrf.mxu1  ;;  %v5892_v11 = vadd.f32 %v5891_v4, %v5890_v14 }
 0x359   : > { %4792 = vst [vmem:[%s6557_s26 + $0x10] sm:$0xff] %v4776_v26  ;;  %v4774_v25 = vmax.f32 %v4758_v19, 0.0  ;;  %v4761_v55 = vadd.f32 %v7958_v49, %v4738_v46  ;;  %v4736_v18 = vmul.f32 %v7947_v0, %v4681_v1  ;;  %v4618_v12 = vadd.f32 %v5862_v38, %v4617_v23  ;;  %v5893_v19 = vpop.f32.mrf.mxu0 }
 0x35a   : > { %v4686_v53 = vadd.f32 %v4626_v21, %v7875_v58  ;;  %v6107_v17 = vpop.f32.mrf.mxu1  ;;  %v5886_v21 = vadd.f32 %v7942_v22, %v7932_v13 }
 0x35b   : > { %4790 = vst [vmem:[%s6557_s26] sm:$0xff] %v4774_v25  ;;  %v4777_v37 = vmax.f32 %v4761_v55, 0.0  ;;  %v4759_v61 = vadd.f32 %v7958_v49, %v4736_v18  ;;  %v4684_v52 = vadd.f32 %v4618_v12, %v7860_v41  ;;  %v4629_v54 = vadd.f32 %v6107_v17, %v5871_v24  ;;  %v5894_v12 = vpop.f32.mrf.mxu0 }
 0x35c   : > { %v4741_v57 = vmul.f32 %v7947_v0, %v4686_v53  ;;  %v4620_v44 = vpop.f32.mrf.mxu1 }
 0x35d   : > { %4793 = vst [vmem:[%s6557_s26 + $0x18] sm:$0xff] %v4777_v37  ;;  %v4775_v60 = vmax.f32 %v4759_v61, 0.0  ;;  %v4739_v58 = vmul.f32 %v7947_v0, %v4684_v52  ;;  %v4687_v20 = vadd.f32 %v4629_v54, %v7883_v15  ;;  %v4621_v3 = vadd.f32 %v5865_v59, %v4620_v44 }
 0x35e   : > { %v4764_v36 = vadd.f32 %v7958_v49, %v4741_v57  ;;  %v6110_v56 = vpop.f32.mrf.mxu1  ;;  %v5883_v15 = vadd.f32 %v7926_v33, %v7920_v5  ;;  %v5889_v61 = vadd.f32 %v7976_v62, %v7964_v8 }
 0x35f   : > { %4791 = vst [vmem:[%s6557_s26 + $0x8] sm:$0xff] %v4775_v60  ;;  %v4762_v41 = vadd.f32 %v7958_v49, %v4739_v58  ;;  %v4742_v39 = vmul.f32 %v7947_v0, %v4687_v20  ;;  %v4685_v2 = vadd.f32 %v4621_v3, %v7867_v31  ;;  %v4642_v16 = vadd.f32 %v6110_v56, %v5880_v10 }
 0x360   : > { %v4780_v35 = vmax.f32 %v4764_v36, 0.0  ;;  %v4633_v48 = vpop.f32.mrf.mxu1  ;;  %v5877_v31 = vadd.f32 %v7909_v29, %v7904_v6 }
 0x361   : > { %v4778_v30 = vmax.f32 %v4762_v41, 0.0  ;;  %v4765_v28 = vadd.f32 %v7958_v49, %v4742_v39  ;;  %v4740_v32 = vmul.f32 %v7947_v0, %v4685_v2  ;;  %v4690_v38 = vadd.f32 %v4642_v16, %v7907_v63 }
 0x362   : > { %4796 = vst [vmem:[%s6557_s26 + $0x30] sm:$0xff] %v4780_v35  ;;  %v4634_v27 = vadd.f32 %v5874_v7, %v4633_v48  ;;  %v6111_v9 = vpop.f32.mrf.mxu1 }
 0x363   : > { %4794 = vst [vmem:[%s6557_s26 + $0x20] sm:$0xff] %v4778_v30  ;;  %v4781_v51 = vmax.f32 %v4765_v28, 0.0  ;;  %v4763_v5 = vadd.f32 %v7958_v49, %v4740_v32  ;;  %v4745_v33 = vmul.f32 %v7947_v0, %v4690_v38  ;;  %v4645_v26 = vadd.f32 %v6111_v9, %v5883_v15 }
 0x364   : > { %v4688_v46 = vadd.f32 %v4634_v27, %v7891_v45  ;;  %v4636_v1 = vpop.f32.mrf.mxu1 }
 0x365   : > { %4797 = vst [vmem:[%s6557_s26 + $0x38] sm:$0xff] %v4781_v51  ;;  %v4779_v63 = vmax.f32 %v4763_v5, 0.0  ;;  %v4768_v6 = vadd.f32 %v7958_v49, %v4745_v33  ;;  %v4691_v29 = vadd.f32 %v4645_v26, %v7915_v40  ;;  %v4637_v24 = vadd.f32 %v5877_v31, %v4636_v1 }
 0x366   : > { %v4743_v23 = vmul.f32 %v7947_v0, %v4688_v46  ;;  %v6114_v25 = vpop.f32.mrf.mxu1 }
 0x367   : > { %4795 = vst [vmem:[%s6557_s26 + $0x28] sm:$0xff] %v4779_v63  ;;  %v4784_v55 = vmax.f32 %v4768_v6, 0.0  ;;  %v4746_v18 = vmul.f32 %v7947_v0, %v4691_v29  ;;  %v4689_v45 = vadd.f32 %v4637_v24, %v7899_v47  ;;  %v4658_v59 = vadd.f32 %v6114_v25, %v5892_v11 }
 0x368   : > { %v4766_v53 = vadd.f32 %v7958_v49, %v4743_v23  ;;  %v4649_v17 = vpop.f32.mrf.mxu1  ;;  %v5895_v47 = vadd.f32 %v5894_v12, %v5893_v19 }
 0x369   : > { %4800 = vst [vmem:[%s6557_s26 + $0x50] sm:$0xff] %v4784_v55  ;;  %v4769_v40 = vadd.f32 %v7958_v49, %v4746_v18  ;;  %v4744_v13 = vmul.f32 %v7947_v0, %v4689_v45  ;;  %v4694_v22 = vadd.f32 %v4658_v59, %v7937_v50  ;;  %v4650_v37 = vadd.f32 %v5886_v21, %v4649_v17 }
 0x36a   : > { %v4782_v52 = vmax.f32 %v4766_v53, 0.0  ;;  %v6115_v54 = vpop.f32.mrf.mxu1 }
 0x36b   : > { %v4785_v14 = vmax.f32 %v4769_v40, 0.0  ;;  %v4767_v10 = vadd.f32 %v7958_v49, %v4744_v13  ;;  %v4749_v57 = vmul.f32 %v7947_v0, %v4694_v22  ;;  %v4692_v44 = vadd.f32 %v4650_v37, %v7923_v34 }
 0x36c   : > { %4798 = vst [vmem:[%s6557_s26 + $0x40] sm:$0xff] %v4782_v52  ;;  %v4661_v60 = vadd.f32 %v6115_v54, %v5895_v47  ;;  %v4652_v58 = vpop.f32.mrf.mxu1 }
 0x36d   : > { %4801 = vst [vmem:[%s6557_s26 + $0x58] sm:$0xff] %v4785_v14  ;;  %v4783_v50 = vmax.f32 %v4767_v10, 0.0  ;;  %v4772_v8 = vadd.f32 %v7958_v49, %v4749_v57  ;;  %v4747_v62 = vmul.f32 %v7947_v0, %v4692_v44  ;;  %v4653_v20 = vadd.f32 %v5889_v61, %v4652_v58 }
 0x36e   : > { %v4695_v3 = vadd.f32 %v4661_v60, %v7953_v42 }
 0x36f   : > { %4799 = vst [vmem:[%s6557_s26 + $0x48] sm:$0xff] %v4783_v50  ;;  %v4788_v36 = vmax.f32 %v4772_v8, 0.0  ;;  %v4770_v56 = vadd.f32 %v7958_v49, %v4747_v62  ;;  %v4693_v34 = vadd.f32 %v4653_v20, %v7929_v43 }
 0x370   : > { %v4750_v41 = vmul.f32 %v7947_v0, %v4695_v3 }
 0x371   : > { %4804 = vst [vmem:[%s6557_s26 + $0x70] sm:$0xff] %v4788_v36  ;;  %v4786_v39 = vmax.f32 %v4770_v56, 0.0  ;;  %v4748_v2 = vmul.f32 %v7947_v0, %v4693_v34 }
 0x372   : > { %v4773_v16 = vadd.f32 %v7958_v49, %v4750_v41 }
 0x373   : > { %4802 = vst [vmem:[%s6557_s26 + $0x60] sm:$0xff] %v4786_v39  ;;  %v4771_v4 = vadd.f32 %v7958_v49, %v4748_v2 }
 0x374   : > { %v4789_v7 = vmax.f32 %v4773_v16, 0.0 }
 0x375   : > { %v4787_v15 = vmax.f32 %v4771_v4, 0.0 }
 0x376   : > { %4805 = vst [vmem:[%s6557_s26 + $0x78] sm:$0xff] %v4789_v7 }
 0x377   : > { %4803 = vst [vmem:[%s6557_s26 + $0x68] sm:$0xff] %v4787_v15 }
 0x378 PF: > { %s18_s9 = sadd.s32 1, %s6406_s9   ;;  %s8081_s27 = smov %s6398_s29 }
 0x379   : > { %p15_p10 = scmp.ge.s32.totalorder %s18_s9, 6   ;;  %s8082_s28 = smov %s6402_s30 }
 0x37a   : > { %s8083_s29 = smov %s8086_s10  ;;  %s8084_s30 = smov %s8090_s11 }
 0x37b   :  { %17 = sbr.rel (!%p15_p10) target bundleno = 3 (0x3), region = 101 }

</bundles_post_ra>
